<compile_context>
chip_gen: v6e
topology: v6e:2x2x1
jax: 0.10.0
libtpu: 0.0.40
codegen_flags: <defaults>
</compile_context>

<pallas_src>
import functools

import jax
import jax.numpy as jnp
from jax.experimental import pallas as pl
from jax.experimental.pallas import tpu as pltpu

LANE = 128  # TPU lane width; channel dims are padded up to a multiple of this.
VMEM_LIMIT = 32 * 1024 * 1024  # explicit scoped-VMEM budget (safe on v5e/v6e/v7x)


def _round_up(x, m):
    return (x + m - 1) // m * m


def _pad_axis(a, axis, size):
    pad = [(0, 0)] * a.ndim
    pad[axis] = (0, size - a.shape[axis])
    return jnp.pad(a, pad)


# ----------------------------- Conv kernel ---------------------------------

def _conv_kernel(x_ref, w_ref, o_ref, sum_ref, sq_ref, col_ref,
                 *, kh, kw, stride, th, wo, cin):
    """One (Cout tile, image, row tile) grid step of a KxK conv + BN stats.

    x_ref  : [s*s, Hps, Wps, Cin]     phase-decomposed padded image (bf16)
    w_ref  : [kh*kw*Cin, Tco]         im2col weight matrix (bf16), resident
    o_ref  : [1, th*Wo, Tco]          conv output rows (f32)
    sum_ref: [1, Tco] / sq_ref: [1, Tco]  resident BN stats accumulators (f32)
    col_ref: [th, Wo, kh*kw*Cin]      bf16 im2col slab scratch
    """
    r = pl.program_id(2)
    row0 = pl.multiple_of(r * th, th)

    if kh == 1 and kw == 1:
        # 1x1 conv: plain matmul over the row tile (no im2col slab needed).
        lhs = x_ref[0, pl.ds(row0, th), 0:wo, :].reshape(th * wo, cin)
    else:
        # Gather the kh*kw shifted windows into one contiguous slab, then let
        # the MXU accumulate over the full K = kh*kw*Cin contraction.
        for di in range(kh):                    # statically unrolled taps
            for dj in range(kw):
                ph = (di % stride) * stride + (dj % stride)
                r0 = di // stride
                c0 = dj // stride
                t = di * kw + dj
                col_ref[:, :, t * cin:(t + 1) * cin] = x_ref[
                    ph, pl.ds(row0 + r0, th), c0:c0 + wo, :]
        lhs = col_ref[...].reshape(th * wo, kh * kw * cin)

    acc = jnp.dot(lhs, w_ref[...], preferred_element_type=jnp.float32)
    o_ref[0] = acc                               # direct write, no extra copy

    # Fused BatchNorm statistics (batch stats: track_running_stats=False).
    @pl.when(jnp.logical_and(pl.program_id(1) == 0, r == 0))
    def _():
        sum_ref[...] = jnp.zeros_like(sum_ref)
        sq_ref[...] = jnp.zeros_like(sq_ref)

    sum_ref[...] += jnp.sum(acc, axis=0, keepdims=True)
    sq_ref[...] += jnp.sum(acc * acc, axis=0, keepdims=True)


def _pick_row_tile(ho, wo, max_rows=128):
    """Row tile th | ho with (th*wo) % 8 == 0 (or th == ho), ~<= max_rows rows."""
    th = ho
    while (th % 2 == 0 and th > 8 and th * wo > max_rows
           and ((th // 2) * wo) % 8 == 0):
        th //= 2
    return th


def conv2d_pallas(x_nhwc, w_oihw, *, stride, pad, tile_co=256):
    """Bias-free conv2d with fused per-channel BN statistics.

    x: [N,H,W,Cin] (Cin % 128 == 0), w: [Cout,Cin,kh,kw] (channels already
    zero-padded to multiples of 128).  Returns (out_flat [N,Ho*Wo,Cout] f32,
    channel_sum [1,Cout] f32, channel_sumsq [1,Cout] f32, Ho, Wo).
    """
    cout, cin_w, kh, kw = w_oihw.shape
    if kh == 1 and kw == 1 and pad == 0 and stride > 1:
        # 1x1 strided conv == 1x1 stride-1 conv on the subsampled input.
        x_nhwc = x_nhwc[:, ::stride, ::stride, :]
        stride = 1
    n, h, w, cin = x_nhwc.shape
    assert cin_w == cin and cin % LANE == 0 and cout % LANE == 0
    s = stride
    ho = (h + 2 * pad - kh) // s + 1
    wo = (w + 2 * pad - kw) // s + 1

    # Conv zero-padding + round spatial dims up to a stride multiple so the
    # phase decomposition stays rectangular (extra rows/cols are never read
    # by valid outputs).
    hp = _round_up(h + 2 * pad, s)
    wp = _round_up(w + 2 * pad, s)
    xp = jnp.pad(x_nhwc.astype(jnp.bfloat16),
                 ((0, 0), (pad, hp - h - pad), (pad, wp - w - pad), (0, 0)))
    hps, wps = hp // s, wp // s
    # xph[n*s*s + r*s + t, a, b, c] == xp[n, a*s + r, b*s + t, c]
    xph = xp.reshape(n, hps, s, wps, s, cin)
    xph = jnp.transpose(xph, (0, 2, 4, 1, 3, 5)).reshape(n * s * s, hps, wps, cin)

    # im2col weight matrix [kh*kw*Cin, Cout] (tap-major), bf16 for the MXU.
    wmat = jnp.transpose(w_oihw, (2, 3, 1, 0)).reshape(kh * kw * cin, cout)
    wmat = wmat.astype(jnp.bfloat16)

    tile_co = min(tile_co, cout)
    if cout % tile_co:
        tile_co = LANE
    th = _pick_row_tile(ho, wo)
    grid = (cout // tile_co, n, ho // th)        # (Cout tiles, images, row tiles)

    kernel = functools.partial(_conv_kernel, kh=kh, kw=kw, stride=s,
                               th=th, wo=wo, cin=cin)
    out_flat, csum, csq = pl.pallas_call(
        kernel,
        out_shape=(jax.ShapeDtypeStruct((n, ho * wo, cout), jnp.float32),
                   jax.ShapeDtypeStruct((1, cout), jnp.float32),
                   jax.ShapeDtypeStruct((1, cout), jnp.float32)),
        grid_spec=pltpu.PrefetchScalarGridSpec(
            num_scalar_prefetch=0,
            grid=grid,
            in_specs=[
                # whole (phase-decomposed) image; constant across row tiles
                pl.BlockSpec((s * s, hps, wps, cin), lambda j, b, r: (b, 0, 0, 0)),
                # weights: constant across batch / row tiles -> VMEM resident
                pl.BlockSpec((kh * kw * cin, tile_co), lambda j, b, r: (0, j)),
            ],
            out_specs=[
                pl.BlockSpec((1, th * wo, tile_co), lambda j, b, r: (b, r, j)),
                pl.BlockSpec((1, tile_co), lambda j, b, r: (0, j)),
                pl.BlockSpec((1, tile_co), lambda j, b, r: (0, j)),
            ],
            scratch_shapes=[pltpu.VMEM((th, wo, kh * kw * cin), jnp.bfloat16)],
        ),
        compiler_params=pltpu.CompilerParams(
            dimension_semantics=("parallel", "arbitrary", "arbitrary"),
            vmem_limit_bytes=VMEM_LIMIT),
    )(xph, wmat)
    return out_flat, csum, csq, ho, wo


# ------------------------------ BatchNorm -----------------------------------

def _bn_scale_shift(csum, csq, gamma, beta, count, eps):
    """Tiny (1, C) finalize: scale = g*rsqrt(var+eps), shift = b - mean*scale.

    Variance via E[x^2]-E[x]^2 (clamped at 0); fine for normalized activations,
    can lose precision when |mean| >> std.
    """
    mean = csum * (1.0 / count)
    var = jnp.maximum(csq * (1.0 / count) - mean * mean, 0.0)
    scale = gamma.reshape(1, -1).astype(jnp.float32) * jax.lax.rsqrt(var + eps)
    shift = beta.reshape(1, -1).astype(jnp.float32) - mean * scale
    return scale, shift


def _bn_apply_kernel(x_ref, scale_ref, shift_ref, o_ref, *, relu):
    y = x_ref[...].astype(jnp.float32) * scale_ref[...] + shift_ref[...]
    if relu:
        y = jnp.maximum(y, 0.0)
    o_ref[...] = y.astype(o_ref.dtype)


def _bn_apply_add_relu_kernel(x_ref, scale_ref, shift_ref, res_ref, o_ref):
    y = x_ref[...].astype(jnp.float32) * scale_ref[...] + shift_ref[...]
    y = y + res_ref[...].astype(jnp.float32)
    o_ref[...] = jnp.maximum(y, 0.0).astype(o_ref.dtype)


def _bn_row_tile(m, c, max_bytes=2 * 1024 * 1024):
    """Largest row tile (multiple of 8, divides m) within a VMEM budget."""
    cap = max(8, max_bytes // (4 * c))
    if m <= cap:
        return m
    t = cap - cap % 8
    while t >= 8:
        if m % t == 0:
            return t
        t -= 8
    return m


def bn_apply_pallas(x2d, scale, shift, residual=None, relu=False,
                    out_dtype=jnp.float32):
    m, c = x2d.shape
    tm = _bn_row_tile(m, c)
    row = pl.BlockSpec((tm, c), lambda i: (i, 0))
    vec = pl.BlockSpec((1, c), lambda i: (0, 0))
    if residual is None:
        kernel = functools.partial(_bn_apply_kernel, relu=relu)
        in_specs = [row, vec, vec]
        args = (x2d, scale, shift)
    else:
        kernel = _bn_apply_add_relu_kernel
        in_specs = [row, vec, vec, row]
        args = (x2d, scale, shift, residual)
    return pl.pallas_call(
        kernel,
        out_shape=jax.ShapeDtypeStruct((m, c), out_dtype),
        grid_spec=pltpu.PrefetchScalarGridSpec(
            num_scalar_prefetch=0,
            grid=(m // tm,),
            in_specs=in_specs,
            out_specs=row),
        compiler_params=pltpu.CompilerParams(
            dimension_semantics=("parallel",),
            vmem_limit_bytes=VMEM_LIMIT),
    )(*args)


# --------------------------- BasicBlock module ------------------------------

def basic_block_init(key, in_planes, planes, stride):
    """Deterministic synthetic parameters matching BasicBlock.__init__ shapes."""
    k1, k2, k3 = jax.random.split(key, 3)
    params = {
        "conv1_w": 0.1 * jax.random.normal(k1, (planes, in_planes, 3, 3), jnp.float32),
        "bn1_g": jnp.ones((planes,), jnp.float32),
        "bn1_b": jnp.zeros((planes,), jnp.float32),
        "conv2_w": 0.1 * jax.random.normal(k2, (planes, planes, 3, 3), jnp.float32),
        "bn2_g": jnp.ones((planes,), jnp.float32),
        "bn2_b": jnp.zeros((planes,), jnp.float32),
    }
    if stride != 1 or in_planes != planes:  # expansion == 1
        params["sc_w"] = 0.1 * jax.random.normal(k3, (planes, in_planes, 1, 1), jnp.float32)
        params["sc_g"] = jnp.ones((planes,), jnp.float32)
        params["sc_b"] = jnp.zeros((planes,), jnp.float32)
    return params


def _pad_weight(w_oihw, cout_p, cin_p):
    return _pad_axis(_pad_axis(w_oihw, 0, cout_p), 1, cin_p)


def _pad_vec(v, cp):
    return _pad_axis(v, 0, cp)


def basic_block_forward(params, x_nchw, *, stride, eps=1e-5):
    n, cin, h, w = x_nchw.shape
    planes = params["conv1_w"].shape[0]
    cin_p = _round_up(cin, LANE)
    cpl = _round_up(planes, LANE)

    # NCHW -> NHWC, channels zero-padded to a lane-dense multiple of 128.
    # Padded channels stay exactly zero through conv / BN / ReLU / residual.
    x = jnp.transpose(x_nchw, (0, 2, 3, 1)).astype(jnp.float32)
    x = _pad_axis(x, 3, cin_p)

    # conv1 (+ fused BN1 stats) -> BN1 apply + ReLU (bf16, feeds conv2)
    y1, s1, q1, ho, wo = conv2d_pallas(x, _pad_weight(params["conv1_w"], cpl, cin_p),
                                       stride=stride, pad=1)
    m = n * ho * wo
    sc1, sh1 = _bn_scale_shift(s1, q1, _pad_vec(params["bn1_g"], cpl),
                               _pad_vec(params["bn1_b"], cpl), float(m), eps)
    a1 = bn_apply_pallas(y1.reshape(m, cpl), sc1, sh1, relu=True,
                         out_dtype=jnp.bfloat16)

    # conv2 (+ fused BN2 stats)
    y2, s2, q2, _, _ = conv2d_pallas(a1.reshape(n, ho, wo, cpl),
                                     _pad_weight(params["conv2_w"], cpl, cpl),
                                     stride=1, pad=1)
    sc2, sh2 = _bn_scale_shift(s2, q2, _pad_vec(params["bn2_g"], cpl),
                               _pad_vec(params["bn2_b"], cpl), float(m), eps)

    # shortcut
    if "sc_w" in params:
        ys, ss, qs, _, _ = conv2d_pallas(x, _pad_weight(params["sc_w"], cpl, cin_p),
                                         stride=stride, pad=0)
        scs, shs = _bn_scale_shift(ss, qs, _pad_vec(params["sc_g"], cpl),
                                   _pad_vec(params["sc_b"], cpl), float(m), eps)
        res = bn_apply_pallas(ys.reshape(m, cpl), scs, shs, relu=False,
                              out_dtype=jnp.float32)
    else:
        res = x.reshape(m, cpl)                  # identity: cin_p == cpl here

    out = bn_apply_pallas(y2.reshape(m, cpl), sc2, sh2, residual=res, relu=True,
                          out_dtype=jnp.float32)
    out = out.reshape(n, ho, wo, cpl)[..., :planes]
    return jnp.transpose(out, (0, 3, 1, 2))      # NHWC -> NCHW


# ------------------------- pure-JAX reference check -------------------------

def _ref_bn(x, g, b, eps=1e-5):
    mean = jnp.mean(x, axis=(0, 2, 3), keepdims=True)
    var = jnp.mean((x - mean) ** 2, axis=(0, 2, 3), keepdims=True)
    return (x - mean) * jax.lax.rsqrt(var + eps) * g.reshape(1, -1, 1, 1) + b.reshape(1, -1, 1, 1)


def _ref_conv(x, w, stride, pad):
    return jax.lax.conv_general_dilated(
        x, w, (stride, stride), [(pad, pad), (pad, pad)],
        dimension_numbers=("NCHW", "OIHW", "NCHW"),
        precision=jax.lax.Precision.HIGHEST)


def ref_forward(params, x, stride):
    out = jax.nn.relu(_ref_bn(_ref_conv(x, params["conv1_w"], stride, 1),
                              params["bn1_g"], params["bn1_b"]))
    out = _ref_bn(_ref_conv(out, params["conv2_w"], 1, 1),
                  params["bn2_g"], params["bn2_b"])
    if "sc_w" in params:
        sc = _ref_bn(_ref_conv(x, params["sc_w"], stride, 0),
                     params["sc_g"], params["sc_b"])
    else:
        sc = x
    return jax.nn.relu(out + sc)


# ----------------------------------- main -----------------------------------

if __name__ == "__main__":
    key = jax.random.PRNGKey(0)
    configs = [
        dict(in_planes=4, planes=8, stride=2, hw=16),   # 1x1-conv shortcut, stride-2 phases
        dict(in_planes=8, planes=8, stride=1, hw=16),   # identity shortcut, row-tiled conv (R=2)
        dict(in_planes=8, planes=8, stride=1, hw=8),    # identity shortcut, single row tile
    ]
    for idx, cfg in enumerate(configs):
        kx, kp = jax.random.split(jax.random.fold_in(key, idx))
        x = jax.random.normal(kx, (2, cfg["in_planes"], cfg["hw"], cfg["hw"]), jnp.float32)
        params = basic_block_init(kp, cfg["in_planes"], cfg["planes"], cfg["stride"])

        fwd = jax.jit(functools.partial(basic_block_forward, stride=cfg["stride"]))
        y = fwd(params, x)
        jax.block_until_ready(y)

        ho = cfg["hw"] // cfg["stride"]
        assert y.shape == (2, cfg["planes"], ho, ho), y.shape
        y_ref = ref_forward(params, x, cfg["stride"])
        err = float(jnp.max(jnp.abs(y - y_ref)))
        assert jnp.allclose(y, y_ref, atol=2e-2, rtol=2e-2), err
    print("KERNEL_OK")
</pallas_src>

<mosaic_0001>
module attributes {stable_mosaic.version = 11 : i64} {
  func.func @_bn_apply_kernel(%arg0: i32, %arg1: memref<128x128xf32, #tpu.memory_space<vmem>>, %arg2: memref<1x128xf32, #tpu.memory_space<vmem>>, %arg3: memref<1x128xf32, #tpu.memory_space<vmem>>, %arg4: memref<128x128xbf16, #tpu.memory_space<vmem>>) attributes {dimension_semantics = [#tpu.dimension_semantics<parallel>], iteration_bounds = array<i64: 1>, scalar_prefetch = 0 : i64, scratch_operands = 0 : i64, tpu.core_type = #tpu.core_type<tc>, window_params = [{transform_indices = @transform_0, window_bounds = array<i64: 128, 128>}, {pipeline_mode = #tpu.pipeline_mode<synchronous>, transform_indices = @transform_1, window_bounds = array<i64: 1, 128>}, {pipeline_mode = #tpu.pipeline_mode<synchronous>, transform_indices = @transform_2, window_bounds = array<i64: 1, 128>}, {transform_indices = @transform_3, window_bounds = array<i64: 128, 128>}]} {
    %c0 = arith.constant 0 : index
    %c0_0 = arith.constant 0 : index
    %0 = vector.load %arg1[%c0, %c0_0] : memref<128x128xf32, #tpu.memory_space<vmem>>, vector<128x128xf32>
    %c0_1 = arith.constant 0 : index
    %c0_2 = arith.constant 0 : index
    %1 = vector.load %arg2[%c0_1, %c0_2] : memref<1x128xf32, #tpu.memory_space<vmem>>, vector<1x128xf32>
    %2 = vector.broadcast %1 : vector<1x128xf32> to vector<128x128xf32>
    %3 = arith.mulf %0, %2 : vector<128x128xf32>
    %c0_3 = arith.constant 0 : index
    %c0_4 = arith.constant 0 : index
    %4 = vector.load %arg3[%c0_3, %c0_4] : memref<1x128xf32, #tpu.memory_space<vmem>>, vector<1x128xf32>
    %5 = vector.broadcast %4 : vector<1x128xf32> to vector<128x128xf32>
    %6 = arith.addf %3, %5 : vector<128x128xf32>
    %cst = arith.constant 0.000000e+00 : f32
    %7 = vector.broadcast %cst : f32 to vector<128x128xf32>
    %8 = arith.maximumf %6, %7 : vector<128x128xf32>
    %9 = arith.truncf %8 : vector<128x128xf32> to vector<128x128xbf16>
    %c0_5 = arith.constant 0 : index
    %c0_6 = arith.constant 0 : index
    %10 = vector.load %arg4[%c0_5, %c0_6] : memref<128x128xbf16, #tpu.memory_space<vmem>>, vector<128x128xbf16>
    tpu.vector_store %arg4[%c0_5, %c0_6], %9 {strides = array<i32>} : memref<128x128xbf16, #tpu.memory_space<vmem>>, vector<128x128xbf16>,
    return
  }
  func.func @transform_0(%arg0: i32) -> (i32, i32) {
    %c0_i32 = arith.constant 0 : i32
    %c0_i32_0 = arith.constant 0 : i32
    return %arg0, %c0_i32 : i32, i32
  }
  func.func @transform_1(%arg0: i32) -> (i32, i32) {
    %c0_i32 = arith.constant 0 : i32
    %c0_i32_0 = arith.constant 0 : i32
    %c0_i32_1 = arith.constant 0 : i32
    return %c0_i32, %c0_i32_0 : i32, i32
  }
  func.func @transform_2(%arg0: i32) -> (i32, i32) {
    %c0_i32 = arith.constant 0 : i32
    %c0_i32_0 = arith.constant 0 : i32
    %c0_i32_1 = arith.constant 0 : i32
    return %c0_i32, %c0_i32_0 : i32, i32
  }
  func.func @transform_3(%arg0: i32) -> (i32, i32) {
    %c0_i32 = arith.constant 0 : i32
    %c0_i32_0 = arith.constant 0 : i32
    return %arg0, %c0_i32 : i32, i32
  }
}

module attributes {stable_mosaic.version = 11 : i64} {
  func.func @_conv_kernel(%arg0: i32, %arg1: i32, %arg2: i32, %arg3: memref<4x9x9x128xbf16, #tpu.memory_space<vmem>>, %arg4: memref<1152x128xbf16, #tpu.memory_space<vmem>>, %arg5: memref<1x64x128xf32, #tpu.memory_space<vmem>>, %arg6: memref<1x128xf32, #tpu.memory_space<vmem>>, %arg7: memref<1x128xf32, #tpu.memory_space<vmem>>, %arg8: memref<8x8x1152xbf16, #tpu.memory_space<vmem>>) attributes {dimension_semantics = [#tpu.dimension_semantics<parallel>, #tpu.dimension_semantics<arbitrary>, #tpu.dimension_semantics<arbitrary>], iteration_bounds = array<i64: 1, 2, 1>, scalar_prefetch = 0 : i64, scratch_operands = 1 : i64, tpu.core_type = #tpu.core_type<tc>, window_params = [{transform_indices = @transform_0, window_bounds = array<i64: 4, 9, 9, 128>}, {transform_indices = @transform_1, window_bounds = array<i64: 1152, 128>}, {transform_indices = @transform_2, window_bounds = array<i64: 1, 64, 128>}, {transform_indices = @transform_3, window_bounds = array<i64: 1, 128>}, {transform_indices = @transform_4, window_bounds = array<i64: 1, 128>}]} {
    %c8_i32 = arith.constant 8 : i32
    %0 = arith.muli %arg2, %c8_i32 : i32
    %1 = tpu.assume_multiple %0, 8 : i32
    %c0_i32 = arith.constant 0 : i32
    %2 = arith.addi %1, %c0_i32 : i32
    %c0 = arith.constant 0 : index
    %3 = arith.index_cast %2 : i32 to index
    %c0_0 = arith.constant 0 : index
    %c0_1 = arith.constant 0 : index
    %4 = vector.load %arg3[%c0, %3, %c0_0, %c0_1] : memref<4x9x9x128xbf16, #tpu.memory_space<vmem>>, vector<1x8x8x128xbf16>
    %5 = vector.shape_cast %4 : vector<1x8x8x128xbf16> to vector<8x8x128xbf16>
    %c0_2 = arith.constant 0 : index
    %c0_3 = arith.constant 0 : index
    %c0_4 = arith.constant 0 : index
    %6 = vector.load %arg8[%c0_2, %c0_3, %c0_4] : memref<8x8x1152xbf16, #tpu.memory_space<vmem>>, vector<8x8x128xbf16>
    tpu.vector_store %arg8[%c0_2, %c0_3, %c0_4], %5 {strides = array<i32>} : memref<8x8x1152xbf16, #tpu.memory_space<vmem>>, vector<8x8x128xbf16>,
    %c0_i32_5 = arith.constant 0 : i32
    %7 = arith.addi %1, %c0_i32_5 : i32
    %c1 = arith.constant 1 : index
    %8 = arith.index_cast %7 : i32 to index
    %c0_6 = arith.constant 0 : index
    %c0_7 = arith.constant 0 : index
    %9 = vector.load %arg3[%c1, %8, %c0_6, %c0_7] : memref<4x9x9x128xbf16, #tpu.memory_space<vmem>>, vector<1x8x8x128xbf16>
    %10 = vector.shape_cast %9 : vector<1x8x8x128xbf16> to vector<8x8x128xbf16>
    %c0_8 = arith.constant 0 : index
    %c0_9 = arith.constant 0 : index
    %c128 = arith.constant 128 : index
    %11 = vector.load %arg8[%c0_8, %c0_9, %c128] : memref<8x8x1152xbf16, #tpu.memory_space<vmem>>, vector<8x8x128xbf16>
    tpu.vector_store %arg8[%c0_8, %c0_9, %c128], %10 {strides = array<i32>} : memref<8x8x1152xbf16, #tpu.memory_space<vmem>>, vector<8x8x128xbf16>,
    %c0_i32_10 = arith.constant 0 : i32
    %12 = arith.addi %1, %c0_i32_10 : i32
    %c0_11 = arith.constant 0 : index
    %13 = arith.index_cast %12 : i32 to index
    %c1_12 = arith.constant 1 : index
    %c0_13 = arith.constant 0 : index
    %14 = vector.load %arg3[%c0_11, %13, %c1_12, %c0_13] : memref<4x9x9x128xbf16, #tpu.memory_space<vmem>>, vector<1x8x8x128xbf16>
    %15 = vector.shape_cast %14 : vector<1x8x8x128xbf16> to vector<8x8x128xbf16>
    %c0_14 = arith.constant 0 : index
    %c0_15 = arith.constant 0 : index
    %c256 = arith.constant 256 : index
    %16 = vector.load %arg8[%c0_14, %c0_15, %c256] : memref<8x8x1152xbf16, #tpu.memory_space<vmem>>, vector<8x8x128xbf16>
    tpu.vector_store %arg8[%c0_14, %c0_15, %c256], %15 {strides = array<i32>} : memref<8x8x1152xbf16, #tpu.memory_space<vmem>>, vector<8x8x128xbf16>,
    %c0_i32_16 = arith.constant 0 : i32
    %17 = arith.addi %1, %c0_i32_16 : i32
    %c2 = arith.constant 2 : index
    %18 = arith.index_cast %17 : i32 to index
    %c0_17 = arith.constant 0 : index
    %c0_18 = arith.constant 0 : index
    %19 = vector.load %arg3[%c2, %18, %c0_17, %c0_18] : memref<4x9x9x128xbf16, #tpu.memory_space<vmem>>, vector<1x8x8x128xbf16>
    %20 = vector.shape_cast %19 : vector<1x8x8x128xbf16> to vector<8x8x128xbf16>
    %c0_19 = arith.constant 0 : index
    %c0_20 = arith.constant 0 : index
    %c384 = arith.constant 384 : index
    %21 = vector.load %arg8[%c0_19, %c0_20, %c384] : memref<8x8x1152xbf16, #tpu.memory_space<vmem>>, vector<8x8x128xbf16>
    tpu.vector_store %arg8[%c0_19, %c0_20, %c384], %20 {strides = array<i32>} : memref<8x8x1152xbf16, #tpu.memory_space<vmem>>, vector<8x8x128xbf16>,
    %c0_i32_21 = arith.constant 0 : i32
    %22 = arith.addi %1, %c0_i32_21 : i32
    %c3 = arith.constant 3 : index
    %23 = arith.index_cast %22 : i32 to index
    %c0_22 = arith.constant 0 : index
    %c0_23 = arith.constant 0 : index
    %24 = vector.load %arg3[%c3, %23, %c0_22, %c0_23] : memref<4x9x9x128xbf16, #tpu.memory_space<vmem>>, vector<1x8x8x128xbf16>
    %25 = vector.shape_cast %24 : vector<1x8x8x128xbf16> to vector<8x8x128xbf16>
    %c0_24 = arith.constant 0 : index
    %c0_25 = arith.constant 0 : index
    %c512 = arith.constant 512 : index
    %26 = vector.load %arg8[%c0_24, %c0_25, %c512] : memref<8x8x1152xbf16, #tpu.memory_space<vmem>>, vector<8x8x128xbf16>
    tpu.vector_store %arg8[%c0_24, %c0_25, %c512], %25 {strides = array<i32>} : memref<8x8x1152xbf16, #tpu.memory_space<vmem>>, vector<8x8x128xbf16>,
    %c0_i32_26 = arith.constant 0 : i32
    %27 = arith.addi %1, %c0_i32_26 : i32
    %c2_27 = arith.constant 2 : index
    %28 = arith.index_cast %27 : i32 to index
    %c1_28 = arith.constant 1 : index
    %c0_29 = arith.constant 0 : index
    %29 = vector.load %arg3[%c2_27, %28, %c1_28, %c0_29] : memref<4x9x9x128xbf16, #tpu.memory_space<vmem>>, vector<1x8x8x128xbf16>
    %30 = vector.shape_cast %29 : vector<1x8x8x128xbf16> to vector<8x8x128xbf16>
    %c0_30 = arith.constant 0 : index
    %c0_31 = arith.constant 0 : index
    %c640 = arith.constant 640 : index
    %31 = vector.load %arg8[%c0_30, %c0_31, %c640] : memref<8x8x1152xbf16, #tpu.memory_space<vmem>>, vector<8x8x128xbf16>
    tpu.vector_store %arg8[%c0_30, %c0_31, %c640], %30 {strides = array<i32>} : memref<8x8x1152xbf16, #tpu.memory_space<vmem>>, vector<8x8x128xbf16>,
    %c1_i32 = arith.constant 1 : i32
    %32 = arith.addi %1, %c1_i32 : i32
    %c0_32 = arith.constant 0 : index
    %33 = arith.index_cast %32 : i32 to index
    %c0_33 = arith.constant 0 : index
    %c0_34 = arith.constant 0 : index
    %34 = vector.load %arg3[%c0_32, %33, %c0_33, %c0_34] : memref<4x9x9x128xbf16, #tpu.memory_space<vmem>>, vector<1x8x8x128xbf16>
    %35 = vector.shape_cast %34 : vector<1x8x8x128xbf16> to vector<8x8x128xbf16>
    %c0_35 = arith.constant 0 : index
    %c0_36 = arith.constant 0 : index
    %c768 = arith.constant 768 : index
    %36 = vector.load %arg8[%c0_35, %c0_36, %c768] : memref<8x8x1152xbf16, #tpu.memory_space<vmem>>, vector<8x8x128xbf16>
    tpu.vector_store %arg8[%c0_35, %c0_36, %c768], %35 {strides = array<i32>} : memref<8x8x1152xbf16, #tpu.memory_space<vmem>>, vector<8x8x128xbf16>,
    %c1_i32_37 = arith.constant 1 : i32
    %37 = arith.addi %1, %c1_i32_37 : i32
    %c1_38 = arith.constant 1 : index
    %38 = arith.index_cast %37 : i32 to index
    %c0_39 = arith.constant 0 : index
    %c0_40 = arith.constant 0 : index
    %39 = vector.load %arg3[%c1_38, %38, %c0_39, %c0_40] : memref<4x9x9x128xbf16, #tpu.memory_space<vmem>>, vector<1x8x8x128xbf16>
    %40 = vector.shape_cast %39 : vector<1x8x8x128xbf16> to vector<8x8x128xbf16>
    %c0_41 = arith.constant 0 : index
    %c0_42 = arith.constant 0 : index
    %c896 = arith.constant 896 : index
    %41 = vector.load %arg8[%c0_41, %c0_42, %c896] : memref<8x8x1152xbf16, #tpu.memory_space<vmem>>, vector<8x8x128xbf16>
    tpu.vector_store %arg8[%c0_41, %c0_42, %c896], %40 {strides = array<i32>} : memref<8x8x1152xbf16, #tpu.memory_space<vmem>>, vector<8x8x128xbf16>,
    %c1_i32_43 = arith.constant 1 : i32
    %42 = arith.addi %1, %c1_i32_43 : i32
    %c0_44 = arith.constant 0 : index
    %43 = arith.index_cast %42 : i32 to index
    %c1_45 = arith.constant 1 : index
    %c0_46 = arith.constant 0 : index
    %44 = vector.load %arg3[%c0_44, %43, %c1_45, %c0_46] : memref<4x9x9x128xbf16, #tpu.memory_space<vmem>>, vector<1x8x8x128xbf16>
    %45 = vector.shape_cast %44 : vector<1x8x8x128xbf16> to vector<8x8x128xbf16>
    %c0_47 = arith.constant 0 : index
    %c0_48 = arith.constant 0 : index
    %c1024 = arith.constant 1024 : index
    %46 = vector.load %arg8[%c0_47, %c0_48, %c1024] : memref<8x8x1152xbf16, #tpu.memory_space<vmem>>, vector<8x8x128xbf16>
    tpu.vector_store %arg8[%c0_47, %c0_48, %c1024], %45 {strides = array<i32>} : memref<8x8x1152xbf16, #tpu.memory_space<vmem>>, vector<8x8x128xbf16>,
    %c0_49 = arith.constant 0 : index
    %c0_50 = arith.constant 0 : index
    %c0_51 = arith.constant 0 : index
    %47 = vector.load %arg8[%c0_49, %c0_50, %c0_51] : memref<8x8x1152xbf16, #tpu.memory_space<vmem>>, vector<8x8x1152xbf16>
    %48 = vector.shape_cast %47 : vector<8x8x1152xbf16> to vector<64x1152xbf16>
    %c0_52 = arith.constant 0 : index
    %c0_53 = arith.constant 0 : index
    %49 = vector.load %arg4[%c0_52, %c0_53] : memref<1152x128xbf16, #tpu.memory_space<vmem>>, vector<1152x128xbf16>
    %cst = arith.constant dense<0.000000e+00> : vector<64x128xf32>
    %50 = tpu.matmul %48, %49, %cst {dimension_numbers = #tpu.dot_dimension_numbers<[1], [0], [0], [1], [0, 0, 1, 1], [], []>} : vector<64x1152xbf16>, vector<1152x128xbf16>, vector<64x128xf32> -> vector<64x128xf32>
    %c0_54 = arith.constant 0 : index
    %c0_55 = arith.constant 0 : index
    %c0_56 = arith.constant 0 : index
    %51 = vector.load %arg5[%c0_54, %c0_55, %c0_56] : memref<1x64x128xf32, #tpu.memory_space<vmem>>, vector<1x64x128xf32>
    %52 = vector.shape_cast %51 : vector<1x64x128xf32> to vector<64x128xf32>
    %53 = vector.shape_cast %50 : vector<64x128xf32> to vector<1x64x128xf32>
    tpu.vector_store %arg5[%c0_54, %c0_55, %c0_56], %53 {strides = array<i32>} : memref<1x64x128xf32, #tpu.memory_space<vmem>>, vector<1x64x128xf32>,
    %c0_i32_57 = arith.constant 0 : i32
    %54 = arith.cmpi eq, %arg1, %c0_i32_57 : i32
    %c0_i32_58 = arith.constant 0 : i32
    %55 = arith.cmpi eq, %arg2, %c0_i32_58 : i32
    %56 = arith.andi %54, %55 : i1
    %57 = arith.extui %56 : i1 to i32
    %c0_i32_59 = arith.constant 0 : i32
    %58 = arith.cmpi ne, %57, %c0_i32_59 : i32
    scf.if %58 {
      %cst_70 = arith.constant 0.000000e+00 : f32
      %70 = vector.broadcast %cst_70 : f32 to vector<1x128xf32>
      %c0_71 = arith.constant 0 : index
      %c0_72 = arith.constant 0 : index
      %71 = vector.load %arg6[%c0_71, %c0_72] : memref<1x128xf32, #tpu.memory_space<vmem>>, vector<1x128xf32>
      tpu.vector_store %arg6[%c0_71, %c0_72], %70 {strides = array<i32>} : memref<1x128xf32, #tpu.memory_space<vmem>>, vector<1x128xf32>,
      %cst_73 = arith.constant 0.000000e+00 : f32
      %72 = vector.broadcast %cst_73 : f32 to vector<1x128xf32>
      %c0_74 = arith.constant 0 : index
      %c0_75 = arith.constant 0 : index
      %73 = vector.load %arg7[%c0_74, %c0_75] : memref<1x128xf32, #tpu.memory_space<vmem>>, vector<1x128xf32>
      tpu.vector_store %arg7[%c0_74, %c0_75], %72 {strides = array<i32>} : memref<1x128xf32, #tpu.memory_space<vmem>>, vector<1x128xf32>,
    } else {
    }
    %c0_60 = arith.constant 0 : index
    %c0_61 = arith.constant 0 : index
    %59 = vector.load %arg6[%c0_60, %c0_61] : memref<1x128xf32, #tpu.memory_space<vmem>>, vector<1x128xf32>
    %cst_62 = arith.constant dense<0.000000e+00> : vector<128xf32>
    %60 = vector.multi_reduction <add>, %50, %cst_62 [0] : vector<64x128xf32> to vector<128xf32>
    %61 = vector.shape_cast %60 : vector<128xf32> to vector<1x128xf32>
    %62 = arith.addf %59, %61 : vector<1x128xf32>
    %c0_63 = arith.constant 0 : index
    %c0_64 = arith.constant 0 : index
    %63 = vector.load %arg6[%c0_63, %c0_64] : memref<1x128xf32, #tpu.memory_space<vmem>>, vector<1x128xf32>
    tpu.vector_store %arg6[%c0_63, %c0_64], %62 {strides = array<i32>} : memref<1x128xf32, #tpu.memory_space<vmem>>, vector<1x128xf32>,
    %c0_65 = arith.constant 0 : index
    %c0_66 = arith.constant 0 : index
    %64 = vector.load %arg7[%c0_65, %c0_66] : memref<1x128xf32, #tpu.memory_space<vmem>>, vector<1x128xf32>
    %65 = arith.mulf %50, %50 : vector<64x128xf32>
    %cst_67 = arith.constant dense<0.000000e+00> : vector<128xf32>
    %66 = vector.multi_reduction <add>, %65, %cst_67 [0] : vector<64x128xf32> to vector<128xf32>
    %67 = vector.shape_cast %66 : vector<128xf32> to vector<1x128xf32>
    %68 = arith.addf %64, %67 : vector<1x128xf32>
    %c0_68 = arith.constant 0 : index
    %c0_69 = arith.constant 0 : index
    %69 = vector.load %arg7[%c0_68, %c0_69] : memref<1x128xf32, #tpu.memory_space<vmem>>, vector<1x128xf32>
    tpu.vector_store %arg7[%c0_68, %c0_69], %68 {strides = array<i32>} : memref<1x128xf32, #tpu.memory_space<vmem>>, vector<1x128xf32>,
    return
  }
  func.func @transform_0(%arg0: i32, %arg1: i32, %arg2: i32) -> (i32, i32, i32, i32) {
    %c0_i32 = arith.constant 0 : i32
    %c0_i32_0 = arith.constant 0 : i32
    %c0_i32_1 = arith.constant 0 : i32
    %c0_i32_2 = arith.constant 0 : i32
    return %arg1, %c0_i32, %c0_i32_0, %c0_i32_1 : i32, i32, i32, i32
  }
  func.func @transform_1(%arg0: i32, %arg1: i32, %arg2: i32) -> (i32, i32) {
    %c0_i32 = arith.constant 0 : i32
    %c0_i32_0 = arith.constant 0 : i32
    return %c0_i32, %arg0 : i32, i32
  }
  func.func @transform_2(%arg0: i32, %arg1: i32, %arg2: i32) -> (i32, i32, i32) {
    %c0_i32 = arith.constant 0 : i32
    return %arg1, %arg2, %arg0 : i32, i32, i32
  }
  func.func @transform_3(%arg0: i32, %arg1: i32, %arg2: i32) -> (i32, i32) {
    %c0_i32 = arith.constant 0 : i32
    %c0_i32_0 = arith.constant 0 : i32
    return %c0_i32, %arg0 : i32, i32
  }
  func.func @transform_4(%arg0: i32, %arg1: i32, %arg2: i32) -> (i32, i32) {
    %c0_i32 = arith.constant 0 : i32
    %c0_i32_0 = arith.constant 0 : i32
    return %c0_i32, %arg0 : i32, i32
  }
}

module attributes {stable_mosaic.version = 11 : i64} {
  func.func @_conv_kernel(%arg0: i32, %arg1: i32, %arg2: i32, %arg3: memref<1x10x10x128xbf16, #tpu.memory_space<vmem>>, %arg4: memref<1152x128xbf16, #tpu.memory_space<vmem>>, %arg5: memref<1x64x128xf32, #tpu.memory_space<vmem>>, %arg6: memref<1x128xf32, #tpu.memory_space<vmem>>, %arg7: memref<1x128xf32, #tpu.memory_space<vmem>>, %arg8: memref<8x8x1152xbf16, #tpu.memory_space<vmem>>) attributes {dimension_semantics = [#tpu.dimension_semantics<parallel>, #tpu.dimension_semantics<arbitrary>, #tpu.dimension_semantics<arbitrary>], iteration_bounds = array<i64: 1, 2, 1>, scalar_prefetch = 0 : i64, scratch_operands = 1 : i64, tpu.core_type = #tpu.core_type<tc>, window_params = [{transform_indices = @transform_0, window_bounds = array<i64: 1, 10, 10, 128>}, {transform_indices = @transform_1, window_bounds = array<i64: 1152, 128>}, {transform_indices = @transform_2, window_bounds = array<i64: 1, 64, 128>}, {transform_indices = @transform_3, window_bounds = array<i64: 1, 128>}, {transform_indices = @transform_4, window_bounds = array<i64: 1, 128>}]} {
    %c8_i32 = arith.constant 8 : i32
    %0 = arith.muli %arg2, %c8_i32 : i32
    %1 = tpu.assume_multiple %0, 8 : i32
    %c0_i32 = arith.constant 0 : i32
    %2 = arith.addi %1, %c0_i32 : i32
    %c0 = arith.constant 0 : index
    %3 = arith.index_cast %2 : i32 to index
    %c0_0 = arith.constant 0 : index
    %c0_1 = arith.constant 0 : index
    %4 = vector.load %arg3[%c0, %3, %c0_0, %c0_1] : memref<1x10x10x128xbf16, #tpu.memory_space<vmem>>, vector<1x8x8x128xbf16>
    %5 = vector.shape_cast %4 : vector<1x8x8x128xbf16> to vector<8x8x128xbf16>
    %c0_2 = arith.constant 0 : index
    %c0_3 = arith.constant 0 : index
    %c0_4 = arith.constant 0 : index
    %6 = vector.load %arg8[%c0_2, %c0_3, %c0_4] : memref<8x8x1152xbf16, #tpu.memory_space<vmem>>, vector<8x8x128xbf16>
    tpu.vector_store %arg8[%c0_2, %c0_3, %c0_4], %5 {strides = array<i32>} : memref<8x8x1152xbf16, #tpu.memory_space<vmem>>, vector<8x8x128xbf16>,
    %c0_i32_5 = arith.constant 0 : i32
    %7 = arith.addi %1, %c0_i32_5 : i32
    %c0_6 = arith.constant 0 : index
    %8 = arith.index_cast %7 : i32 to index
    %c1 = arith.constant 1 : index
    %c0_7 = arith.constant 0 : index
    %9 = vector.load %arg3[%c0_6, %8, %c1, %c0_7] : memref<1x10x10x128xbf16, #tpu.memory_space<vmem>>, vector<1x8x8x128xbf16>
    %10 = vector.shape_cast %9 : vector<1x8x8x128xbf16> to vector<8x8x128xbf16>
    %c0_8 = arith.constant 0 : index
    %c0_9 = arith.constant 0 : index
    %c128 = arith.constant 128 : index
    %11 = vector.load %arg8[%c0_8, %c0_9, %c128] : memref<8x8x1152xbf16, #tpu.memory_space<vmem>>, vector<8x8x128xbf16>
    tpu.vector_store %arg8[%c0_8, %c0_9, %c128], %10 {strides = array<i32>} : memref<8x8x1152xbf16, #tpu.memory_space<vmem>>, vector<8x8x128xbf16>,
    %c0_i32_10 = arith.constant 0 : i32
    %12 = arith.addi %1, %c0_i32_10 : i32
    %c0_11 = arith.constant 0 : index
    %13 = arith.index_cast %12 : i32 to index
    %c2 = arith.constant 2 : index
    %c0_12 = arith.constant 0 : index
    %14 = vector.load %arg3[%c0_11, %13, %c2, %c0_12] : memref<1x10x10x128xbf16, #tpu.memory_space<vmem>>, vector<1x8x8x128xbf16>
    %15 = vector.shape_cast %14 : vector<1x8x8x128xbf16> to vector<8x8x128xbf16>
    %c0_13 = arith.constant 0 : index
    %c0_14 = arith.constant 0 : index
    %c256 = arith.constant 256 : index
    %16 = vector.load %arg8[%c0_13, %c0_14, %c256] : memref<8x8x1152xbf16, #tpu.memory_space<vmem>>, vector<8x8x128xbf16>
    tpu.vector_store %arg8[%c0_13, %c0_14, %c256], %15 {strides = array<i32>} : memref<8x8x1152xbf16, #tpu.memory_space<vmem>>, vector<8x8x128xbf16>,
    %c1_i32 = arith.constant 1 : i32
    %17 = arith.addi %1, %c1_i32 : i32
    %c0_15 = arith.constant 0 : index
    %18 = arith.index_cast %17 : i32 to index
    %c0_16 = arith.constant 0 : index
    %c0_17 = arith.constant 0 : index
    %19 = vector.load %arg3[%c0_15, %18, %c0_16, %c0_17] : memref<1x10x10x128xbf16, #tpu.memory_space<vmem>>, vector<1x8x8x128xbf16>
    %20 = vector.shape_cast %19 : vector<1x8x8x128xbf16> to vector<8x8x128xbf16>
    %c0_18 = arith.constant 0 : index
    %c0_19 = arith.constant 0 : index
    %c384 = arith.constant 384 : index
    %21 = vector.load %arg8[%c0_18, %c0_19, %c384] : memref<8x8x1152xbf16, #tpu.memory_space<vmem>>, vector<8x8x128xbf16>
    tpu.vector_store %arg8[%c0_18, %c0_19, %c384], %20 {strides = array<i32>} : memref<8x8x1152xbf16, #tpu.memory_space<vmem>>, vector<8x8x128xbf16>,
    %c1_i32_20 = arith.constant 1 : i32
    %22 = arith.addi %1, %c1_i32_20 : i32
    %c0_21 = arith.constant 0 : index
    %23 = arith.index_cast %22 : i32 to index
    %c1_22 = arith.constant 1 : index
    %c0_23 = arith.constant 0 : index
    %24 = vector.load %arg3[%c0_21, %23, %c1_22, %c0_23] : memref<1x10x10x128xbf16, #tpu.memory_space<vmem>>, vector<1x8x8x128xbf16>
    %25 = vector.shape_cast %24 : vector<1x8x8x128xbf16> to vector<8x8x128xbf16>
    %c0_24 = arith.constant 0 : index
    %c0_25 = arith.constant 0 : index
    %c512 = arith.constant 512 : index
    %26 = vector.load %arg8[%c0_24, %c0_25, %c512] : memref<8x8x1152xbf16, #tpu.memory_space<vmem>>, vector<8x8x128xbf16>
    tpu.vector_store %arg8[%c0_24, %c0_25, %c512], %25 {strides = array<i32>} : memref<8x8x1152xbf16, #tpu.memory_space<vmem>>, vector<8x8x128xbf16>,
    %c1_i32_26 = arith.constant 1 : i32
    %27 = arith.addi %1, %c1_i32_26 : i32
    %c0_27 = arith.constant 0 : index
    %28 = arith.index_cast %27 : i32 to index
    %c2_28 = arith.constant 2 : index
    %c0_29 = arith.constant 0 : index
    %29 = vector.load %arg3[%c0_27, %28, %c2_28, %c0_29] : memref<1x10x10x128xbf16, #tpu.memory_space<vmem>>, vector<1x8x8x128xbf16>
    %30 = vector.shape_cast %29 : vector<1x8x8x128xbf16> to vector<8x8x128xbf16>
    %c0_30 = arith.constant 0 : index
    %c0_31 = arith.constant 0 : index
    %c640 = arith.constant 640 : index
    %31 = vector.load %arg8[%c0_30, %c0_31, %c640] : memref<8x8x1152xbf16, #tpu.memory_space<vmem>>, vector<8x8x128xbf16>
    tpu.vector_store %arg8[%c0_30, %c0_31, %c640], %30 {strides = array<i32>} : memref<8x8x1152xbf16, #tpu.memory_space<vmem>>, vector<8x8x128xbf16>,
    %c2_i32 = arith.constant 2 : i32
    %32 = arith.addi %1, %c2_i32 : i32
    %c0_32 = arith.constant 0 : index
    %33 = arith.index_cast %32 : i32 to index
    %c0_33 = arith.constant 0 : index
    %c0_34 = arith.constant 0 : index
    %34 = vector.load %arg3[%c0_32, %33, %c0_33, %c0_34] : memref<1x10x10x128xbf16, #tpu.memory_space<vmem>>, vector<1x8x8x128xbf16>
    %35 = vector.shape_cast %34 : vector<1x8x8x128xbf16> to vector<8x8x128xbf16>
    %c0_35 = arith.constant 0 : index
    %c0_36 = arith.constant 0 : index
    %c768 = arith.constant 768 : index
    %36 = vector.load %arg8[%c0_35, %c0_36, %c768] : memref<8x8x1152xbf16, #tpu.memory_space<vmem>>, vector<8x8x128xbf16>
    tpu.vector_store %arg8[%c0_35, %c0_36, %c768], %35 {strides = array<i32>} : memref<8x8x1152xbf16, #tpu.memory_space<vmem>>, vector<8x8x128xbf16>,
    %c2_i32_37 = arith.constant 2 : i32
    %37 = arith.addi %1, %c2_i32_37 : i32
    %c0_38 = arith.constant 0 : index
    %38 = arith.index_cast %37 : i32 to index
    %c1_39 = arith.constant 1 : index
    %c0_40 = arith.constant 0 : index
    %39 = vector.load %arg3[%c0_38, %38, %c1_39, %c0_40] : memref<1x10x10x128xbf16, #tpu.memory_space<vmem>>, vector<1x8x8x128xbf16>
    %40 = vector.shape_cast %39 : vector<1x8x8x128xbf16> to vector<8x8x128xbf16>
    %c0_41 = arith.constant 0 : index
    %c0_42 = arith.constant 0 : index
    %c896 = arith.constant 896 : index
    %41 = vector.load %arg8[%c0_41, %c0_42, %c896] : memref<8x8x1152xbf16, #tpu.memory_space<vmem>>, vector<8x8x128xbf16>
    tpu.vector_store %arg8[%c0_41, %c0_42, %c896], %40 {strides = array<i32>} : memref<8x8x1152xbf16, #tpu.memory_space<vmem>>, vector<8x8x128xbf16>,
    %c2_i32_43 = arith.constant 2 : i32
    %42 = arith.addi %1, %c2_i32_43 : i32
    %c0_44 = arith.constant 0 : index
    %43 = arith.index_cast %42 : i32 to index
    %c2_45 = arith.constant 2 : index
    %c0_46 = arith.constant 0 : index
    %44 = vector.load %arg3[%c0_44, %43, %c2_45, %c0_46] : memref<1x10x10x128xbf16, #tpu.memory_space<vmem>>, vector<1x8x8x128xbf16>
    %45 = vector.shape_cast %44 : vector<1x8x8x128xbf16> to vector<8x8x128xbf16>
    %c0_47 = arith.constant 0 : index
    %c0_48 = arith.constant 0 : index
    %c1024 = arith.constant 1024 : index
    %46 = vector.load %arg8[%c0_47, %c0_48, %c1024] : memref<8x8x1152xbf16, #tpu.memory_space<vmem>>, vector<8x8x128xbf16>
    tpu.vector_store %arg8[%c0_47, %c0_48, %c1024], %45 {strides = array<i32>} : memref<8x8x1152xbf16, #tpu.memory_space<vmem>>, vector<8x8x128xbf16>,
    %c0_49 = arith.constant 0 : index
    %c0_50 = arith.constant 0 : index
    %c0_51 = arith.constant 0 : index
    %47 = vector.load %arg8[%c0_49, %c0_50, %c0_51] : memref<8x8x1152xbf16, #tpu.memory_space<vmem>>, vector<8x8x1152xbf16>
    %48 = vector.shape_cast %47 : vector<8x8x1152xbf16> to vector<64x1152xbf16>
    %c0_52 = arith.constant 0 : index
    %c0_53 = arith.constant 0 : index
    %49 = vector.load %arg4[%c0_52, %c0_53] : memref<1152x128xbf16, #tpu.memory_space<vmem>>, vector<1152x128xbf16>
    %cst = arith.constant dense<0.000000e+00> : vector<64x128xf32>
    %50 = tpu.matmul %48, %49, %cst {dimension_numbers = #tpu.dot_dimension_numbers<[1], [0], [0], [1], [0, 0, 1, 1], [], []>} : vector<64x1152xbf16>, vector<1152x128xbf16>, vector<64x128xf32> -> vector<64x128xf32>
    %c0_54 = arith.constant 0 : index
    %c0_55 = arith.constant 0 : index
    %c0_56 = arith.constant 0 : index
    %51 = vector.load %arg5[%c0_54, %c0_55, %c0_56] : memref<1x64x128xf32, #tpu.memory_space<vmem>>, vector<1x64x128xf32>
    %52 = vector.shape_cast %51 : vector<1x64x128xf32> to vector<64x128xf32>
    %53 = vector.shape_cast %50 : vector<64x128xf32> to vector<1x64x128xf32>
    tpu.vector_store %arg5[%c0_54, %c0_55, %c0_56], %53 {strides = array<i32>} : memref<1x64x128xf32, #tpu.memory_space<vmem>>, vector<1x64x128xf32>,
    %c0_i32_57 = arith.constant 0 : i32
    %54 = arith.cmpi eq, %arg1, %c0_i32_57 : i32
    %c0_i32_58 = arith.constant 0 : i32
    %55 = arith.cmpi eq, %arg2, %c0_i32_58 : i32
    %56 = arith.andi %54, %55 : i1
    %57 = arith.extui %56 : i1 to i32
    %c0_i32_59 = arith.constant 0 : i32
    %58 = arith.cmpi ne, %57, %c0_i32_59 : i32
    scf.if %58 {
      %cst_70 = arith.constant 0.000000e+00 : f32
      %70 = vector.broadcast %cst_70 : f32 to vector<1x128xf32>
      %c0_71 = arith.constant 0 : index
      %c0_72 = arith.constant 0 : index
      %71 = vector.load %arg6[%c0_71, %c0_72] : memref<1x128xf32, #tpu.memory_space<vmem>>, vector<1x128xf32>
      tpu.vector_store %arg6[%c0_71, %c0_72], %70 {strides = array<i32>} : memref<1x128xf32, #tpu.memory_space<vmem>>, vector<1x128xf32>,
      %cst_73 = arith.constant 0.000000e+00 : f32
      %72 = vector.broadcast %cst_73 : f32 to vector<1x128xf32>
      %c0_74 = arith.constant 0 : index
      %c0_75 = arith.constant 0 : index
      %73 = vector.load %arg7[%c0_74, %c0_75] : memref<1x128xf32, #tpu.memory_space<vmem>>, vector<1x128xf32>
      tpu.vector_store %arg7[%c0_74, %c0_75], %72 {strides = array<i32>} : memref<1x128xf32, #tpu.memory_space<vmem>>, vector<1x128xf32>,
    } else {
    }
    %c0_60 = arith.constant 0 : index
    %c0_61 = arith.constant 0 : index
    %59 = vector.load %arg6[%c0_60, %c0_61] : memref<1x128xf32, #tpu.memory_space<vmem>>, vector<1x128xf32>
    %cst_62 = arith.constant dense<0.000000e+00> : vector<128xf32>
    %60 = vector.multi_reduction <add>, %50, %cst_62 [0] : vector<64x128xf32> to vector<128xf32>
    %61 = vector.shape_cast %60 : vector<128xf32> to vector<1x128xf32>
    %62 = arith.addf %59, %61 : vector<1x128xf32>
    %c0_63 = arith.constant 0 : index
    %c0_64 = arith.constant 0 : index
    %63 = vector.load %arg6[%c0_63, %c0_64] : memref<1x128xf32, #tpu.memory_space<vmem>>, vector<1x128xf32>
    tpu.vector_store %arg6[%c0_63, %c0_64], %62 {strides = array<i32>} : memref<1x128xf32, #tpu.memory_space<vmem>>, vector<1x128xf32>,
    %c0_65 = arith.constant 0 : index
    %c0_66 = arith.constant 0 : index
    %64 = vector.load %arg7[%c0_65, %c0_66] : memref<1x128xf32, #tpu.memory_space<vmem>>, vector<1x128xf32>
    %65 = arith.mulf %50, %50 : vector<64x128xf32>
    %cst_67 = arith.constant dense<0.000000e+00> : vector<128xf32>
    %66 = vector.multi_reduction <add>, %65, %cst_67 [0] : vector<64x128xf32> to vector<128xf32>
    %67 = vector.shape_cast %66 : vector<128xf32> to vector<1x128xf32>
    %68 = arith.addf %64, %67 : vector<1x128xf32>
    %c0_68 = arith.constant 0 : index
    %c0_69 = arith.constant 0 : index
    %69 = vector.load %arg7[%c0_68, %c0_69] : memref<1x128xf32, #tpu.memory_space<vmem>>, vector<1x128xf32>
    tpu.vector_store %arg7[%c0_68, %c0_69], %68 {strides = array<i32>} : memref<1x128xf32, #tpu.memory_space<vmem>>, vector<1x128xf32>,
    return
  }
  func.func @transform_0(%arg0: i32, %arg1: i32, %arg2: i32) -> (i32, i32, i32, i32) {
    %c0_i32 = arith.constant 0 : i32
    %c0_i32_0 = arith.constant 0 : i32
    %c0_i32_1 = arith.constant 0 : i32
    %c0_i32_2 = arith.constant 0 : i32
    return %arg1, %c0_i32, %c0_i32_0, %c0_i32_1 : i32, i32, i32, i32
  }
  func.func @transform_1(%arg0: i32, %arg1: i32, %arg2: i32) -> (i32, i32) {
    %c0_i32 = arith.constant 0 : i32
    %c0_i32_0 = arith.constant 0 : i32
    return %c0_i32, %arg0 : i32, i32
  }
  func.func @transform_2(%arg0: i32, %arg1: i32, %arg2: i32) -> (i32, i32, i32) {
    %c0_i32 = arith.constant 0 : i32
    return %arg1, %arg2, %arg0 : i32, i32, i32
  }
  func.func @transform_3(%arg0: i32, %arg1: i32, %arg2: i32) -> (i32, i32) {
    %c0_i32 = arith.constant 0 : i32
    %c0_i32_0 = arith.constant 0 : i32
    return %c0_i32, %arg0 : i32, i32
  }
  func.func @transform_4(%arg0: i32, %arg1: i32, %arg2: i32) -> (i32, i32) {
    %c0_i32 = arith.constant 0 : i32
    %c0_i32_0 = arith.constant 0 : i32
    return %c0_i32, %arg0 : i32, i32
  }
}

module attributes {stable_mosaic.version = 11 : i64} {
  func.func @_bn_apply_kernel(%arg0: i32, %arg1: memref<128x128xf32, #tpu.memory_space<vmem>>, %arg2: memref<1x128xf32, #tpu.memory_space<vmem>>, %arg3: memref<1x128xf32, #tpu.memory_space<vmem>>, %arg4: memref<128x128xf32, #tpu.memory_space<vmem>>) attributes {dimension_semantics = [#tpu.dimension_semantics<parallel>], iteration_bounds = array<i64: 1>, scalar_prefetch = 0 : i64, scratch_operands = 0 : i64, tpu.core_type = #tpu.core_type<tc>, window_params = [{transform_indices = @transform_0, window_bounds = array<i64: 128, 128>}, {pipeline_mode = #tpu.pipeline_mode<synchronous>, transform_indices = @transform_1, window_bounds = array<i64: 1, 128>}, {pipeline_mode = #tpu.pipeline_mode<synchronous>, transform_indices = @transform_2, window_bounds = array<i64: 1, 128>}, {transform_indices = @transform_3, window_bounds = array<i64: 128, 128>}]} {
    %c0 = arith.constant 0 : index
    %c0_0 = arith.constant 0 : index
    %0 = vector.load %arg1[%c0, %c0_0] : memref<128x128xf32, #tpu.memory_space<vmem>>, vector<128x128xf32>
    %c0_1 = arith.constant 0 : index
    %c0_2 = arith.constant 0 : index
    %1 = vector.load %arg2[%c0_1, %c0_2] : memref<1x128xf32, #tpu.memory_space<vmem>>, vector<1x128xf32>
    %2 = vector.broadcast %1 : vector<1x128xf32> to vector<128x128xf32>
    %3 = arith.mulf %0, %2 : vector<128x128xf32>
    %c0_3 = arith.constant 0 : index
    %c0_4 = arith.constant 0 : index
    %4 = vector.load %arg3[%c0_3, %c0_4] : memref<1x128xf32, #tpu.memory_space<vmem>>, vector<1x128xf32>
    %5 = vector.broadcast %4 : vector<1x128xf32> to vector<128x128xf32>
    %6 = arith.addf %3, %5 : vector<128x128xf32>
    %c0_5 = arith.constant 0 : index
    %c0_6 = arith.constant 0 : index
    %7 = vector.load %arg4[%c0_5, %c0_6] : memref<128x128xf32, #tpu.memory_space<vmem>>, vector<128x128xf32>
    tpu.vector_store %arg4[%c0_5, %c0_6], %6 {strides = array<i32>} : memref<128x128xf32, #tpu.memory_space<vmem>>, vector<128x128xf32>,
    return
  }
  func.func @transform_0(%arg0: i32) -> (i32, i32) {
    %c0_i32 = arith.constant 0 : i32
    %c0_i32_0 = arith.constant 0 : i32
    return %arg0, %c0_i32 : i32, i32
  }
  func.func @transform_1(%arg0: i32) -> (i32, i32) {
    %c0_i32 = arith.constant 0 : i32
    %c0_i32_0 = arith.constant 0 : i32
    %c0_i32_1 = arith.constant 0 : i32
    return %c0_i32, %c0_i32_0 : i32, i32
  }
  func.func @transform_2(%arg0: i32) -> (i32, i32) {
    %c0_i32 = arith.constant 0 : i32
    %c0_i32_0 = arith.constant 0 : i32
    %c0_i32_1 = arith.constant 0 : i32
    return %c0_i32, %c0_i32_0 : i32, i32
  }
  func.func @transform_3(%arg0: i32) -> (i32, i32) {
    %c0_i32 = arith.constant 0 : i32
    %c0_i32_0 = arith.constant 0 : i32
    return %arg0, %c0_i32 : i32, i32
  }
}

module attributes {stable_mosaic.version = 11 : i64} {
  func.func @_conv_kernel(%arg0: i32, %arg1: i32, %arg2: i32, %arg3: memref<1x8x8x128xbf16, #tpu.memory_space<vmem>>, %arg4: memref<128x128xbf16, #tpu.memory_space<vmem>>, %arg5: memref<1x64x128xf32, #tpu.memory_space<vmem>>, %arg6: memref<1x128xf32, #tpu.memory_space<vmem>>, %arg7: memref<1x128xf32, #tpu.memory_space<vmem>>, %arg8: memref<8x8x128xbf16, #tpu.memory_space<vmem>>) attributes {dimension_semantics = [#tpu.dimension_semantics<parallel>, #tpu.dimension_semantics<arbitrary>, #tpu.dimension_semantics<arbitrary>], iteration_bounds = array<i64: 1, 2, 1>, scalar_prefetch = 0 : i64, scratch_operands = 1 : i64, tpu.core_type = #tpu.core_type<tc>, window_params = [{transform_indices = @transform_0, window_bounds = array<i64: 1, 8, 8, 128>}, {transform_indices = @transform_1, window_bounds = array<i64: 128, 128>}, {transform_indices = @transform_2, window_bounds = array<i64: 1, 64, 128>}, {transform_indices = @transform_3, window_bounds = array<i64: 1, 128>}, {transform_indices = @transform_4, window_bounds = array<i64: 1, 128>}]} {
    %c8_i32 = arith.constant 8 : i32
    %0 = arith.muli %arg2, %c8_i32 : i32
    %1 = tpu.assume_multiple %0, 8 : i32
    %c0 = arith.constant 0 : index
    %2 = arith.index_cast %1 : i32 to index
    %c0_0 = arith.constant 0 : index
    %c0_1 = arith.constant 0 : index
    %3 = vector.load %arg3[%c0, %2, %c0_0, %c0_1] : memref<1x8x8x128xbf16, #tpu.memory_space<vmem>>, vector<1x8x8x128xbf16>
    %4 = vector.shape_cast %3 : vector<1x8x8x128xbf16> to vector<8x8x128xbf16>
    %5 = vector.shape_cast %4 : vector<8x8x128xbf16> to vector<64x128xbf16>
    %c0_2 = arith.constant 0 : index
    %c0_3 = arith.constant 0 : index
    %6 = vector.load %arg4[%c0_2, %c0_3] : memref<128x128xbf16, #tpu.memory_space<vmem>>, vector<128x128xbf16>
    %cst = arith.constant dense<0.000000e+00> : vector<64x128xf32>
    %7 = tpu.matmul %5, %6, %cst {dimension_numbers = #tpu.dot_dimension_numbers<[1], [0], [0], [1], [0, 0, 1, 1], [], []>} : vector<64x128xbf16>, vector<128x128xbf16>, vector<64x128xf32> -> vector<64x128xf32>
    %c0_4 = arith.constant 0 : index
    %c0_5 = arith.constant 0 : index
    %c0_6 = arith.constant 0 : index
    %8 = vector.load %arg5[%c0_4, %c0_5, %c0_6] : memref<1x64x128xf32, #tpu.memory_space<vmem>>, vector<1x64x128xf32>
    %9 = vector.shape_cast %8 : vector<1x64x128xf32> to vector<64x128xf32>
    %10 = vector.shape_cast %7 : vector<64x128xf32> to vector<1x64x128xf32>
    tpu.vector_store %arg5[%c0_4, %c0_5, %c0_6], %10 {strides = array<i32>} : memref<1x64x128xf32, #tpu.memory_space<vmem>>, vector<1x64x128xf32>,
    %c0_i32 = arith.constant 0 : i32
    %11 = arith.cmpi eq, %arg1, %c0_i32 : i32
    %c0_i32_7 = arith.constant 0 : i32
    %12 = arith.cmpi eq, %arg2, %c0_i32_7 : i32
    %13 = arith.andi %11, %12 : i1
    %14 = arith.extui %13 : i1 to i32
    %c0_i32_8 = arith.constant 0 : i32
    %15 = arith.cmpi ne, %14, %c0_i32_8 : i32
    scf.if %15 {
      %cst_19 = arith.constant 0.000000e+00 : f32
      %27 = vector.broadcast %cst_19 : f32 to vector<1x128xf32>
      %c0_20 = arith.constant 0 : index
      %c0_21 = arith.constant 0 : index
      %28 = vector.load %arg6[%c0_20, %c0_21] : memref<1x128xf32, #tpu.memory_space<vmem>>, vector<1x128xf32>
      tpu.vector_store %arg6[%c0_20, %c0_21], %27 {strides = array<i32>} : memref<1x128xf32, #tpu.memory_space<vmem>>, vector<1x128xf32>,
      %cst_22 = arith.constant 0.000000e+00 : f32
      %29 = vector.broadcast %cst_22 : f32 to vector<1x128xf32>
      %c0_23 = arith.constant 0 : index
      %c0_24 = arith.constant 0 : index
      %30 = vector.load %arg7[%c0_23, %c0_24] : memref<1x128xf32, #tpu.memory_space<vmem>>, vector<1x128xf32>
      tpu.vector_store %arg7[%c0_23, %c0_24], %29 {strides = array<i32>} : memref<1x128xf32, #tpu.memory_space<vmem>>, vector<1x128xf32>,
    } else {
    }
    %c0_9 = arith.constant 0 : index
    %c0_10 = arith.constant 0 : index
    %16 = vector.load %arg6[%c0_9, %c0_10] : memref<1x128xf32, #tpu.memory_space<vmem>>, vector<1x128xf32>
    %cst_11 = arith.constant dense<0.000000e+00> : vector<128xf32>
    %17 = vector.multi_reduction <add>, %7, %cst_11 [0] : vector<64x128xf32> to vector<128xf32>
    %18 = vector.shape_cast %17 : vector<128xf32> to vector<1x128xf32>
    %19 = arith.addf %16, %18 : vector<1x128xf32>
    %c0_12 = arith.constant 0 : index
    %c0_13 = arith.constant 0 : index
    %20 = vector.load %arg6[%c0_12, %c0_13] : memref<1x128xf32, #tpu.memory_space<vmem>>, vector<1x128xf32>
    tpu.vector_store %arg6[%c0_12, %c0_13], %19 {strides = array<i32>} : memref<1x128xf32, #tpu.memory_space<vmem>>, vector<1x128xf32>,
    %c0_14 = arith.constant 0 : index
    %c0_15 = arith.constant 0 : index
    %21 = vector.load %arg7[%c0_14, %c0_15] : memref<1x128xf32, #tpu.memory_space<vmem>>, vector<1x128xf32>
    %22 = arith.mulf %7, %7 : vector<64x128xf32>
    %cst_16 = arith.constant dense<0.000000e+00> : vector<128xf32>
    %23 = vector.multi_reduction <add>, %22, %cst_16 [0] : vector<64x128xf32> to vector<128xf32>
    %24 = vector.shape_cast %23 : vector<128xf32> to vector<1x128xf32>
    %25 = arith.addf %21, %24 : vector<1x128xf32>
    %c0_17 = arith.constant 0 : index
    %c0_18 = arith.constant 0 : index
    %26 = vector.load %arg7[%c0_17, %c0_18] : memref<1x128xf32, #tpu.memory_space<vmem>>, vector<1x128xf32>
    tpu.vector_store %arg7[%c0_17, %c0_18], %25 {strides = array<i32>} : memref<1x128xf32, #tpu.memory_space<vmem>>, vector<1x128xf32>,
    return
  }
  func.func @transform_0(%arg0: i32, %arg1: i32, %arg2: i32) -> (i32, i32, i32, i32) {
    %c0_i32 = arith.constant 0 : i32
    %c0_i32_0 = arith.constant 0 : i32
    %c0_i32_1 = arith.constant 0 : i32
    %c0_i32_2 = arith.constant 0 : i32
    return %arg1, %c0_i32, %c0_i32_0, %c0_i32_1 : i32, i32, i32, i32
  }
  func.func @transform_1(%arg0: i32, %arg1: i32, %arg2: i32) -> (i32, i32) {
    %c0_i32 = arith.constant 0 : i32
    %c0_i32_0 = arith.constant 0 : i32
    return %c0_i32, %arg0 : i32, i32
  }
  func.func @transform_2(%arg0: i32, %arg1: i32, %arg2: i32) -> (i32, i32, i32) {
    %c0_i32 = arith.constant 0 : i32
    return %arg1, %arg2, %arg0 : i32, i32, i32
  }
  func.func @transform_3(%arg0: i32, %arg1: i32, %arg2: i32) -> (i32, i32) {
    %c0_i32 = arith.constant 0 : i32
    %c0_i32_0 = arith.constant 0 : i32
    return %c0_i32, %arg0 : i32, i32
  }
  func.func @transform_4(%arg0: i32, %arg1: i32, %arg2: i32) -> (i32, i32) {
    %c0_i32 = arith.constant 0 : i32
    %c0_i32_0 = arith.constant 0 : i32
    return %c0_i32, %arg0 : i32, i32
  }
}

module attributes {stable_mosaic.version = 11 : i64} {
  func.func @_bn_apply_add_relu_kernel(%arg0: i32, %arg1: memref<128x128xf32, #tpu.memory_space<vmem>>, %arg2: memref<1x128xf32, #tpu.memory_space<vmem>>, %arg3: memref<1x128xf32, #tpu.memory_space<vmem>>, %arg4: memref<128x128xf32, #tpu.memory_space<vmem>>, %arg5: memref<128x128xf32, #tpu.memory_space<vmem>>) attributes {dimension_semantics = [#tpu.dimension_semantics<parallel>], iteration_bounds = array<i64: 1>, scalar_prefetch = 0 : i64, scratch_operands = 0 : i64, tpu.core_type = #tpu.core_type<tc>, window_params = [{transform_indices = @transform_0, window_bounds = array<i64: 128, 128>}, {pipeline_mode = #tpu.pipeline_mode<synchronous>, transform_indices = @transform_1, window_bounds = array<i64: 1, 128>}, {pipeline_mode = #tpu.pipeline_mode<synchronous>, transform_indices = @transform_2, window_bounds = array<i64: 1, 128>}, {transform_indices = @transform_3, window_bounds = array<i64: 128, 128>}, {transform_indices = @transform_4, window_bounds = array<i64: 128, 128>}]} {
    %c0 = arith.constant 0 : index
    %c0_0 = arith.constant 0 : index
    %0 = vector.load %arg1[%c0, %c0_0] : memref<128x128xf32, #tpu.memory_space<vmem>>, vector<128x128xf32>
    %c0_1 = arith.constant 0 : index
    %c0_2 = arith.constant 0 : index
    %1 = vector.load %arg2[%c0_1, %c0_2] : memref<1x128xf32, #tpu.memory_space<vmem>>, vector<1x128xf32>
    %2 = vector.broadcast %1 : vector<1x128xf32> to vector<128x128xf32>
    %3 = arith.mulf %0, %2 : vector<128x128xf32>
    %c0_3 = arith.constant 0 : index
    %c0_4 = arith.constant 0 : index
    %4 = vector.load %arg3[%c0_3, %c0_4] : memref<1x128xf32, #tpu.memory_space<vmem>>, vector<1x128xf32>
    %5 = vector.broadcast %4 : vector<1x128xf32> to vector<128x128xf32>
    %6 = arith.addf %3, %5 : vector<128x128xf32>
    %c0_5 = arith.constant 0 : index
    %c0_6 = arith.constant 0 : index
    %7 = vector.load %arg4[%c0_5, %c0_6] : memref<128x128xf32, #tpu.memory_space<vmem>>, vector<128x128xf32>
    %8 = arith.addf %6, %7 : vector<128x128xf32>
    %cst = arith.constant 0.000000e+00 : f32
    %9 = vector.broadcast %cst : f32 to vector<128x128xf32>
    %10 = arith.maximumf %8, %9 : vector<128x128xf32>
    %c0_7 = arith.constant 0 : index
    %c0_8 = arith.constant 0 : index
    %11 = vector.load %arg5[%c0_7, %c0_8] : memref<128x128xf32, #tpu.memory_space<vmem>>, vector<128x128xf32>
    tpu.vector_store %arg5[%c0_7, %c0_8], %10 {strides = array<i32>} : memref<128x128xf32, #tpu.memory_space<vmem>>, vector<128x128xf32>,
    return
  }
  func.func @transform_0(%arg0: i32) -> (i32, i32) {
    %c0_i32 = arith.constant 0 : i32
    %c0_i32_0 = arith.constant 0 : i32
    return %arg0, %c0_i32 : i32, i32
  }
  func.func @transform_1(%arg0: i32) -> (i32, i32) {
    %c0_i32 = arith.constant 0 : i32
    %c0_i32_0 = arith.constant 0 : i32
    %c0_i32_1 = arith.constant 0 : i32
    return %c0_i32, %c0_i32_0 : i32, i32
  }
  func.func @transform_2(%arg0: i32) -> (i32, i32) {
    %c0_i32 = arith.constant 0 : i32
    %c0_i32_0 = arith.constant 0 : i32
    %c0_i32_1 = arith.constant 0 : i32
    return %c0_i32, %c0_i32_0 : i32, i32
  }
  func.func @transform_3(%arg0: i32) -> (i32, i32) {
    %c0_i32 = arith.constant 0 : i32
    %c0_i32_0 = arith.constant 0 : i32
    return %arg0, %c0_i32 : i32, i32
  }
  func.func @transform_4(%arg0: i32) -> (i32, i32) {
    %c0_i32 = arith.constant 0 : i32
    %c0_i32_0 = arith.constant 0 : i32
    return %arg0, %c0_i32 : i32, i32
  }
}

</mosaic_0001>

<bundles_post_ra>
// kernel: basic_block_forward.7
= control target key start
LH: loop header
LB: loop body
LE: loop exit
PB: predicated region body
PF: predicated region fallthrough
CT: control target
= control target key end

     0   :  { %s391_s0 = inlined_call_operand.vmem [shape: f32[128,128], index: 0, kind: input, shape index: {}]   ;;  %s392_s1 = inlined_call_operand.vmem [shape: f32[1,128], index: 1, kind: input, shape index: {}]   ;;  %s393_s2 = inlined_call_operand.vmem [shape: f32[1,128], index: 2, kind: input, shape index: {}]   ;;  %s394_s3 = inlined_call_operand.vmem [shape: bf16[128,128], index: 3, kind: output, shape index: {}]  }
   0x1   :  { %v14_v0 = vld [vmem:[%s391_s0] sm:$0xff]  ;;  %v15_v1 = vld [vmem:[%s391_s0 + $0x8] sm:$0xff]  ;;  %v16_v6 = vld [vmem:[%s391_s0 + $0x10] sm:$0xff] }
   0x2   :  { %v286_v2 = vld [vmem:[%s392_s1] ss:$0 sm:$0xff]  ;;  %v17_v7 = vld [vmem:[%s391_s0 + $0x18] sm:$0xff]  ;;  %v19_v11 = vld [vmem:[%s391_s0 + $0x28] sm:$0xff] }
   0x3   :  { %v37_v3 = vmul.f32 %v286_v2, %v14_v0  ;;  %v38_v4 = vmul.f32 %v286_v2, %v15_v1  ;;  %v293_v5 = vld [vmem:[%s393_s2] ss:$0 sm:$0xff]  ;;  %v39_v8 = vmul.f32 %v286_v2, %v16_v6  ;;  %v40_v9 = vmul.f32 %v286_v2, %v17_v7  ;;  %v20_v12 = vld [vmem:[%s391_s0 + $0x30] sm:$0xff]  ;;  %v21_v17 = vld [vmem:[%s391_s0 + $0x38] sm:$0xff] }
   0x4   :  { %v18_v10 = vld [vmem:[%s391_s0 + $0x20] sm:$0xff]  ;;  %v42_v16 = vmul.f32 %v286_v2, %v19_v11  ;;  %v43_v20 = vmul.f32 %v286_v2, %v20_v12  ;;  %v44_v21 = vmul.f32 %v286_v2, %v21_v17  ;;  %v23_v27 = vld [vmem:[%s391_s0 + $0x48] sm:$0xff]  ;;  %v24_v32 = vld [vmem:[%s391_s0 + $0x50] sm:$0xff] }
   0x5   :  { %v60_v13 = vadd.f32 %v293_v5, %v37_v3  ;;  %v61_v14 = vadd.f32 %v293_v5, %v38_v4  ;;  %v41_v15 = vmul.f32 %v286_v2, %v18_v10  ;;  %v62_v18 = vadd.f32 %v293_v5, %v39_v8  ;;  %v22_v22 = vld [vmem:[%s391_s0 + $0x40] sm:$0xff]  ;;  %v25_v33 = vld [vmem:[%s391_s0 + $0x58] sm:$0xff]  ;;  %v27_v39 = vld [vmem:[%s391_s0 + $0x68] sm:$0xff] }
   0x6   :  { %v63_v19 = vadd.f32 %v293_v5, %v40_v9  ;;  %v65_v26 = vadd.f32 %v293_v5, %v42_v16  ;;  %v66_v30 = vadd.f32 %v293_v5, %v43_v20  ;;  %v67_v31 = vadd.f32 %v293_v5, %v44_v21  ;;  %v26_v38 = vld [vmem:[%s391_s0 + $0x60] sm:$0xff]  ;;  %v28_v44 = vld [vmem:[%s391_s0 + $0x70] sm:$0xff]  ;;  %v29_v49 = vld [vmem:[%s391_s0 + $0x78] sm:$0xff] }
   0x7   :  { %v76_v23 = vmax.f32 %v60_v13, 0.0  ;;  %v77_v24 = vmax.f32 %v61_v14, 0.0  ;;  %v64_v25 = vadd.f32 %v293_v5, %v41_v15  ;;  %v78_v28 = vmax.f32 %v62_v18, 0.0 }
   0x8   :  { %v79_v29 = vmax.f32 %v63_v19, 0.0  ;;  %v81_v36 = vmax.f32 %v65_v26, 0.0  ;;  %v45_v37 = vmul.f32 %v286_v2, %v22_v22  ;;  %v82_v41 = vmax.f32 %v66_v30, 0.0 }
   0x9   :  { %v213_v34 = vpack.c.bf16 %v77_v24, %v76_v23  ;;  %v80_v35 = vmax.f32 %v64_v25, 0.0  ;;  %v83_v42 = vmax.f32 %v67_v31, 0.0  ;;  %v46_v43 = vmul.f32 %v286_v2, %v23_v27 }
   0xa   :  { %v218_v40 = vpack.c.bf16 %v79_v29, %v78_v28  ;;  %v68_v46 = vadd.f32 %v293_v5, %v45_v37  ;;  %v47_v47 = vmul.f32 %v286_v2, %v24_v32  ;;  %v48_v48 = vmul.f32 %v286_v2, %v25_v33 }
   0xb   :  { %214 = vst [vmem:[%s394_s3] sm:$0xff] %v213_v34   ;;  %v223_v45 = vpack.c.bf16 %v81_v36, %v80_v35  ;;  %v228_v50 = vpack.c.bf16 %v83_v42, %v82_v41  ;;  %v69_v51 = vadd.f32 %v293_v5, %v46_v43  ;;  %v49_v52 = vmul.f32 %v286_v2, %v26_v38 }
   0xc   :  { %250 = vst [vmem:[%s394_s3 + $0x8] sm:$0xff] %v218_v40   ;;  %v50_v53 = vmul.f32 %v286_v2, %v27_v39  ;;  %v84_v54 = vmax.f32 %v68_v46, 0.0  ;;  %v70_v55 = vadd.f32 %v293_v5, %v47_v47  ;;  %v71_v56 = vadd.f32 %v293_v5, %v48_v48 }
   0xd   :  { %251 = vst [vmem:[%s394_s3 + $0x10] sm:$0xff] %v223_v45   ;;  %v51_v57 = vmul.f32 %v286_v2, %v28_v44  ;;  %252 = vst [vmem:[%s394_s3 + $0x18] sm:$0xff] %v228_v50   ;;  %v85_v58 = vmax.f32 %v69_v51, 0.0  ;;  %v72_v59 = vadd.f32 %v293_v5, %v49_v52  ;;  %v52_v61 = vmul.f32 %v286_v2, %v29_v49 }
   0xe   :  { %v73_v60 = vadd.f32 %v293_v5, %v50_v53  ;;  %v86_v62 = vmax.f32 %v70_v55, 0.0  ;;  %v87_v63 = vmax.f32 %v71_v56, 0.0 }
   0xf   :  { %v74_v0 = vadd.f32 %v293_v5, %v51_v57  ;;  %v233_v1 = vpack.c.bf16 %v85_v58, %v84_v54  ;;  %v88_v3 = vmax.f32 %v72_v59, 0.0  ;;  %v75_v6 = vadd.f32 %v293_v5, %v52_v61 }
  0x10   :  { %v89_v4 = vmax.f32 %v73_v60, 0.0  ;;  %v238_v7 = vpack.c.bf16 %v87_v63, %v86_v62 }
  0x11   :  { %v90_v8 = vmax.f32 %v74_v0, 0.0  ;;  %253 = vst [vmem:[%s394_s3 + $0x20] sm:$0xff] %v233_v1   ;;  %v91_v10 = vmax.f32 %v75_v6, 0.0 }
  0x12   :  { %v243_v9 = vpack.c.bf16 %v89_v4, %v88_v3  ;;  %254 = vst [vmem:[%s394_s3 + $0x28] sm:$0xff] %v238_v7  }
  0x13   :  { %v248_v2 = vpack.c.bf16 %v91_v10, %v90_v8 }
  0x14   :  { %255 = vst [vmem:[%s394_s3 + $0x30] sm:$0xff] %v243_v9  }
  0x15   :  { %256 = vst [vmem:[%s394_s3 + $0x38] sm:$0xff] %v248_v2  }

// kernel: basic_block_forward.10
= control target key start
LH: loop header
LB: loop body
LE: loop exit
PB: predicated region body
PF: predicated region fallthrough
CT: control target
= control target key end

     0   :  { %s220_s0 = inlined_call_operand.vmem [shape: f32[128,128], index: 0, kind: input, shape index: {}]   ;;  %s221_s1 = inlined_call_operand.vmem [shape: f32[1,128], index: 1, kind: input, shape index: {}]   ;;  %s222_s2 = inlined_call_operand.vmem [shape: f32[1,128], index: 2, kind: input, shape index: {}]   ;;  %s223_s3 = inlined_call_operand.vmem [shape: f32[128,128], index: 3, kind: output, shape index: {}]  }
   0x1   :  { %v14_v0 = vld [vmem:[%s220_s0] sm:$0xff]  ;;  %v15_v4 = vld [vmem:[%s220_s0 + $0x8] sm:$0xff]  ;;  %v16_v5 = vld [vmem:[%s220_s0 + $0x10] sm:$0xff] }
   0x2   :  { %v96_v1 = vld [vmem:[%s221_s1] ss:$0 sm:$0xff]  ;;  %v17_v6 = vld [vmem:[%s220_s0 + $0x18] sm:$0xff]  ;;  %v19_v11 = vld [vmem:[%s220_s0 + $0x28] sm:$0xff] }
   0x3   :  { %v97_v2 = vld [vmem:[%s222_s2] ss:$0 sm:$0xff]  ;;  %v37_v3 = vmul.f32 %v96_v1, %v14_v0  ;;  %v38_v7 = vmul.f32 %v96_v1, %v15_v4  ;;  %v39_v8 = vmul.f32 %v96_v1, %v16_v5  ;;  %v40_v9 = vmul.f32 %v96_v1, %v17_v6  ;;  %v20_v12 = vld [vmem:[%s220_s0 + $0x30] sm:$0xff]  ;;  %v21_v17 = vld [vmem:[%s220_s0 + $0x38] sm:$0xff] }
   0x4   :  { %v18_v10 = vld [vmem:[%s220_s0 + $0x20] sm:$0xff]  ;;  %v42_v15 = vmul.f32 %v96_v1, %v19_v11  ;;  %v43_v16 = vmul.f32 %v96_v1, %v20_v12  ;;  %v23_v19 = vld [vmem:[%s220_s0 + $0x48] sm:$0xff]  ;;  %v44_v23 = vmul.f32 %v96_v1, %v21_v17  ;;  %v24_v24 = vld [vmem:[%s220_s0 + $0x50] sm:$0xff] }
   0x5   :  { %v60_v13 = vadd.f32 %v97_v2, %v37_v3  ;;  %v41_v14 = vmul.f32 %v96_v1, %v18_v10  ;;  %v22_v18 = vld [vmem:[%s220_s0 + $0x40] sm:$0xff]  ;;  %v61_v20 = vadd.f32 %v97_v2, %v38_v7  ;;  %v62_v21 = vadd.f32 %v97_v2, %v39_v8  ;;  %v25_v25 = vld [vmem:[%s220_s0 + $0x58] sm:$0xff]  ;;  %v27_v31 = vld [vmem:[%s220_s0 + $0x68] sm:$0xff] }
   0x6   :  { %v63_v22 = vadd.f32 %v97_v2, %v40_v9  ;;  %v26_v26 = vld [vmem:[%s220_s0 + $0x60] sm:$0xff]  ;;  %v65_v28 = vadd.f32 %v97_v2, %v42_v15  ;;  %v66_v29 = vadd.f32 %v97_v2, %v43_v16  ;;  %v45_v30 = vmul.f32 %v96_v1, %v22_v18  ;;  %v28_v32 = vld [vmem:[%s220_s0 + $0x70] sm:$0xff]  ;;  %v29_v33 = vld [vmem:[%s220_s0 + $0x78] sm:$0xff] }
   0x7   :  { %76 = vst [vmem:[%s223_s3] sm:$0xff] %v60_v13  ;;  %v64_v27 = vadd.f32 %v97_v2, %v41_v14  ;;  %77 = vst [vmem:[%s223_s3 + $0x8] sm:$0xff] %v61_v20  ;;  %v67_v34 = vadd.f32 %v97_v2, %v44_v23  ;;  %v46_v35 = vmul.f32 %v96_v1, %v23_v19 }
   0x8   :  { %78 = vst [vmem:[%s223_s3 + $0x10] sm:$0xff] %v62_v21  ;;  %79 = vst [vmem:[%s223_s3 + $0x18] sm:$0xff] %v63_v22  ;;  %v47_v36 = vmul.f32 %v96_v1, %v24_v24  ;;  %v48_v37 = vmul.f32 %v96_v1, %v25_v25  ;;  %v68_v38 = vadd.f32 %v97_v2, %v45_v30 }
   0x9   :  { %80 = vst [vmem:[%s223_s3 + $0x20] sm:$0xff] %v64_v27  ;;  %81 = vst [vmem:[%s223_s3 + $0x28] sm:$0xff] %v65_v28  ;;  %v49_v39 = vmul.f32 %v96_v1, %v26_v26  ;;  %v50_v40 = vmul.f32 %v96_v1, %v27_v31  ;;  %v51_v41 = vmul.f32 %v96_v1, %v28_v32 }
   0xa   :  { %82 = vst [vmem:[%s223_s3 + $0x30] sm:$0xff] %v66_v29  ;;  %83 = vst [vmem:[%s223_s3 + $0x38] sm:$0xff] %v67_v34  ;;  %v69_v42 = vadd.f32 %v97_v2, %v46_v35  ;;  %v70_v43 = vadd.f32 %v97_v2, %v47_v36  ;;  %v71_v44 = vadd.f32 %v97_v2, %v48_v37 }
   0xb   :  { %v52_v45 = vmul.f32 %v96_v1, %v29_v33  ;;  %84 = vst [vmem:[%s223_s3 + $0x40] sm:$0xff] %v68_v38  ;;  %v72_v46 = vadd.f32 %v97_v2, %v49_v39  ;;  %v73_v47 = vadd.f32 %v97_v2, %v50_v40  ;;  %v74_v48 = vadd.f32 %v97_v2, %v51_v41 }
   0xc   :  { %85 = vst [vmem:[%s223_s3 + $0x48] sm:$0xff] %v69_v42  ;;  %86 = vst [vmem:[%s223_s3 + $0x50] sm:$0xff] %v70_v43 }
   0xd   :  { %87 = vst [vmem:[%s223_s3 + $0x58] sm:$0xff] %v71_v44  ;;  %v75_v49 = vadd.f32 %v97_v2, %v52_v45  ;;  %88 = vst [vmem:[%s223_s3 + $0x60] sm:$0xff] %v72_v46 }
   0xe   :  { %89 = vst [vmem:[%s223_s3 + $0x68] sm:$0xff] %v73_v47  ;;  %90 = vst [vmem:[%s223_s3 + $0x70] sm:$0xff] %v74_v48 }
   0xf   :  { %91 = vst [vmem:[%s223_s3 + $0x78] sm:$0xff] %v75_v49 }

// kernel: basic_block_forward.9
= control target key start
LH: loop header
LB: loop body
LE: loop exit
PB: predicated region body
PF: predicated region fallthrough
CT: control target
= control target key end

     0   :  { %s815_s15 = smov 0   ;;  %s817_s16 = smov 0   ;;  %s907_s0 = inlined_call_operand.vmem [shape: bf16[2,8,8,128], index: 0, kind: input, shape index: {}]   ;;  %s908_s1 = inlined_call_operand.vmem [shape: bf16[128,128], index: 1, kind: input, shape index: {}]   ;;  %s909_s2 = inlined_call_operand.vmem [shape: f32[2,64,128], index: 2, kind: output, shape index: {0}]   ;;  %s910_s3 = inlined_call_operand.vmem [shape: f32[1,128], index: 3, kind: output, shape index: {1}]   ;;  %s911_s4 = inlined_call_operand.vmem [shape: f32[1,128], index: 4, kind: output, shape index: {2}]  }
   0x1   :  { %s819_s17 = smov 0  }
   0x2 LB: > { %s30_s18 = sadd.s32 1, %s783_s16  ;;  %p651_p0 = scmp.ge.s32.totalorder %s787_s17, 1  ;;  %s787_s17 = sphi %s819_s17, %s15_s17   ;;  %s783_s16 = sphi %s817_s16, %s913_s16   ;;  %s779_s15 = sphi %s815_s15, %s912_s15  }
   0x3   : > { %p32_p1 = scmp.ge.s32.totalorder %s30_s18, 2  ;;  %p199_p2 = scmp.lt.s32.totalorder %s787_s17, 3 }
   0x5   : > { %s915_s18 = smov (%p32_p1, %s30_s18), 0  ;;  %p200_p3 = pnand %p651_p0, %p199_p2 }
   0x6   : > { %p242_p4 = scmp.lt.s32.totalorder (!%p200_p3), %s779_s15, 1  ;;  %p443_p5 = scmp.eq.s32.totalorder (!%p200_p3), %s779_s15, 0 }
   0x7   : > { %203 = sbr.rel (%p200_p3) target bundleno = 276 (0x114), region = 28 }
   0xc   : > { %v753_v0 = vld [vmem:[%s908_s1 + $0x38] sm:$0xff]   ;;  %v754_v1 = vld [vmem:[%s908_s1 + $0x30] sm:$0xff]   ;;  %s843_s23 = scalar_select %p242_p4, %s779_s15, 1  ;;  %v755_v2 = vld [vmem:[%s908_s1 + $0x28] sm:$0xff]   ;;  %v789_v20 = vmov (%p443_p5), 0.0  }
   0xd   : > { %688 = vmatprep.subr.bf16.mxu0 %v753_v0  ;;  %712 = vmatprep.subr.bf16.mxu1 %v753_v0  ;;  %v756_v3 = vld [vmem:[%s908_s1 + $0x20] sm:$0xff]   ;;  %v757_v6 = vld [vmem:[%s908_s1 + $0x18] sm:$0xff]   ;;  %v758_v7 = vld [vmem:[%s908_s1 + $0x10] sm:$0xff]   ;;  %449 = vst [vmem:[%s910_s3] sm:$0x1] (%p443_p5), %v789_v20 }
   0xe   : > { %689 = vmatpush3.bf16.msra.mxu0 %v753_v0  ;;  %720 = vmatpush3.bf16.msra.mxu1 %v753_v0  ;;  %s673_s26 = sshll.u32 %s843_s23, 5  ;;  %v759_v8 = vld [vmem:[%s908_s1 + $0x8] sm:$0xff]   ;;  %v760_v9 = vld [vmem:[%s908_s1] sm:$0xff]   ;;  %s674_s14 = sshll.u32 %s843_s23, 6  ;;  %450 = vst [vmem:[%s911_s4] sm:$0x1] (%p443_p5), %v789_v20 }
   0xf   : > { %690 = vmatprep.subr.bf16.mxu0 %v754_v1  ;;  %713 = vmatprep.subr.bf16.mxu1 %v754_v1  ;;  %s852_s29 = scalar_lea.vmem %s907_s0, %s673_s26  ;;  %s262_s21 = scalar_lea.vmem %s909_s2, %s674_s14 }
  0x10   : > { %v761_v4 = vld [vmem:[%s852_s29] sm:$0xff]   ;;  %v762_v5 = vld [vmem:[%s852_s29 + $0x10] sm:$0xff]   ;;  %v763_v10 = vld [vmem:[%s852_s29 + $0x8] sm:$0xff]  }
  0x11   : > { %704 = vmatprep.mubr.bf16.mxu0 %v761_v4  ;;  %708 = vmatprep.mubr.bf16.mxu1 %v762_v5  ;;  %v764_v11 = vld [vmem:[%s852_s29 + $0x18] sm:$0xff]  }
  0x12   : > { %691 = vmatpush3.bf16.msra.mxu0 %v754_v1  ;;  %721 = vmatpush3.bf16.msra.mxu1 %v754_v1 }
  0x13   : > { %692 = vmatprep.subr.bf16.mxu0 %v755_v2  ;;  %714 = vmatprep.subr.bf16.mxu1 %v755_v2 }
  0x16   : > { %693 = vmatpush3.bf16.msra.mxu0 %v755_v2  ;;  %722 = vmatpush3.bf16.msra.mxu1 %v755_v2 }
  0x17   : > { %694 = vmatprep.subr.bf16.mxu0 %v756_v3  ;;  %715 = vmatprep.subr.bf16.mxu1 %v756_v3 }
  0x1a   : > { %695 = vmatpush3.bf16.msra.mxu0 %v756_v3  ;;  %723 = vmatpush3.bf16.msra.mxu1 %v756_v3 }
  0x1b   : > { %696 = vmatprep.subr.bf16.mxu0 %v757_v6  ;;  %716 = vmatprep.subr.bf16.mxu1 %v757_v6 }
  0x1e   : > { %697 = vmatpush3.bf16.msra.mxu0 %v757_v6  ;;  %724 = vmatpush3.bf16.msra.mxu1 %v757_v6 }
  0x1f   : > { %698 = vmatprep.subr.bf16.mxu0 %v758_v7  ;;  %717 = vmatprep.subr.bf16.mxu1 %v758_v7 }
  0x22   : > { %699 = vmatpush3.bf16.msra.mxu0 %v758_v7  ;;  %725 = vmatpush3.bf16.msra.mxu1 %v758_v7 }
  0x23   : > { %700 = vmatprep.subr.bf16.mxu0 %v759_v8  ;;  %718 = vmatprep.subr.bf16.mxu1 %v759_v8 }
  0x26   : > { %701 = vmatpush3.bf16.msra.mxu0 %v759_v8  ;;  %726 = vmatpush3.bf16.msra.mxu1 %v759_v8 }
  0x27   : > { %702 = vmatprep.subr.bf16.mxu0 %v760_v9  ;;  %719 = vmatprep.subr.bf16.mxu1 %v760_v9 }
  0x2a   : > { %703 = vmatpush3.bf16.msra.mxu0 %v760_v9  ;;  %727 = vmatpush3.bf16.msra.mxu1 %v760_v9 }
  0x2d   : > { %705 = vmatmul.mubr.bf16.vlgmr.msra.gmra.mxu0 %v763_v10  ;;  %709 = vmatmul.mubr.bf16.vlgmr.msra.gmra.mxu1 %v764_v11 }
  0xed   : > { %v706_v12 = vpop.f32.mrf.mxu0  ;;  %v710_v13 = vpop.f32.mrf.mxu1 }
  0xee   : > { %437 = vst [vmem:[%s262_s21 + $0x10] sm:$0xff] %v706_v12  ;;  %441 = vst [vmem:[%s262_s21 + $0x30] sm:$0xff] %v710_v13 }
  0xef   : > { %v404_v14 = vpop.f32.mrf.mxu0  ;;  %v420_v15 = vpop.f32.mrf.mxu1 }
  0xf0   : > { %435 = vst [vmem:[%s262_s21] sm:$0xff] %v404_v14  ;;  %439 = vst [vmem:[%s262_s21 + $0x20] sm:$0xff] %v420_v15  ;;  %448 = sbr.rel (!%p443_p5) target bundleno = 245 (0xf5), region = 32 }
  0xf1   : > { %v707_v16 = vpop.f32.mrf.mxu0  ;;  %v711_v17 = vpop.f32.mrf.mxu1 }
  0xf2   : > { %438 = vst [vmem:[%s262_s21 + $0x18] sm:$0xff] %v707_v16  ;;  %442 = vst [vmem:[%s262_s21 + $0x38] sm:$0xff] %v711_v17 }
  0xf3   : > { %v407_v18 = vpop.f32.mrf.mxu0  ;;  %v423_v19 = vpop.f32.mrf.mxu1 }
  0xf4   : > { %436 = vst [vmem:[%s262_s21 + $0x8] sm:$0xff] %v407_v18  ;;  %440 = vst [vmem:[%s262_s21 + $0x28] sm:$0xff] %v423_v19 }
  0xf5 PF: > { %v452_v21 = vadd.f32 %v407_v18, %v404_v14  ;;  %v468_v22 = vmul.f32 %v404_v14, %v404_v14  ;;  %v469_v23 = vmul.f32 %v407_v18, %v407_v18  ;;  %v470_v24 = vmul.f32 %v706_v12, %v706_v12  ;;  %v451_v52 = vld [vmem:[%s910_s3] sm:$0x1] }
  0xf6   : > { %v471_v26 = vmul.f32 %v707_v16, %v707_v16  ;;  %v472_v29 = vmul.f32 %v420_v15, %v420_v15  ;;  %v473_v32 = vmul.f32 %v423_v19, %v423_v19  ;;  %v474_v35 = vmul.f32 %v710_v13, %v710_v13  ;;  %v467_v55 = vld [vmem:[%s911_s4] sm:$0x1] }
  0xf7   : > { %v453_v25 = vadd.f32 %v706_v12, %v452_v21  ;;  %v476_v27 = vadd.f32 %v469_v23, %v468_v22  ;;  %v475_v38 = vmul.f32 %v711_v17, %v711_v17 }
  0xf9   : > { %v454_v28 = vadd.f32 %v707_v16, %v453_v25  ;;  %v477_v30 = vadd.f32 %v476_v27, %v470_v24 }
  0xfb   : > { %v455_v31 = vadd.f32 %v454_v28, %v420_v15  ;;  %v478_v33 = vadd.f32 %v477_v30, %v471_v26 }
  0xfd   : > { %v456_v34 = vadd.f32 %v455_v31, %v423_v19  ;;  %v479_v36 = vadd.f32 %v478_v33, %v472_v29 }
  0xff   : > { %v457_v37 = vadd.f32 %v710_v13, %v456_v34  ;;  %v480_v39 = vadd.f32 %v479_v36, %v473_v32 }
 0x101   : > { %v458_v40 = vadd.f32 %v711_v17, %v457_v37  ;;  %v481_v41 = vadd.f32 %v480_v39, %v474_v35 }
 0x103   : > { %v459_v42 = vrot.slane %v458_v40, 4  ;;  %v482_v43 = vadd.f32 %v481_v41, %v475_v38 }
 0x105   : > { %v460_v44 = vadd.f32 %v459_v42, %v458_v40  ;;  %v483_v45 = vrot.slane %v482_v43, 4 }
 0x107   : > { %v461_v46 = vrot.slane %v460_v44, 2  ;;  %v484_v47 = vadd.f32 %v483_v45, %v482_v43 }
 0x109   : > { %v462_v48 = vadd.f32 %v461_v46, %v460_v44  ;;  %v485_v49 = vrot.slane %v484_v47, 2 }
 0x10b   : > { %v463_v50 = vrot.slane %v462_v48, 1  ;;  %v486_v51 = vadd.f32 %v485_v49, %v484_v47 }
 0x10d   : > { %v464_v53 = vadd.f32 %v463_v50, %v462_v48  ;;  %v487_v54 = vrot.slane %v486_v51, 1 }
 0x10f   : > { %v465_v56 = vadd.f32 %v464_v53, %v451_v52  ;;  %v488_v57 = vadd.f32 %v487_v54, %v486_v51 }
 0x111   : > { %466 = vst [vmem:[%s910_s3] sm:$0x1] %v465_v56  ;;  %v489_v58 = vadd.f32 %v488_v57, %v467_v55 }
 0x113   : > { %490 = vst [vmem:[%s911_s4] sm:$0x1] %v489_v58 }
 0x114 PF: > { %s15_s17 = sadd.s32 1, %s787_s17   ;;  %s912_s15 = smov %s783_s16 }
 0x115   : > { %p12_p6 = scmp.ge.s32.totalorder %s15_s17, 4   ;;  %s913_s16 = smov %s915_s18 }
 0x117   :  { %14 = sbr.rel (!%p12_p6) target bundleno = 2 (0x2), region = 90 }

// kernel: basic_block_forward.6
= control target key start
LH: loop header
LB: loop body
LE: loop exit
PB: predicated region body
PF: predicated region fallthrough
CT: control target
= control target key end

     0   :  { %s2787_s15 = smov 0   ;;  %s2789_s16 = smov 0   ;;  %s3319_s0 = inlined_call_operand.vmem [shape: bf16[8,9,9,128], index: 0, kind: input, shape index: {}]   ;;  %s3320_s1 = inlined_call_operand.vmem [shape: bf16[1152,128], index: 1, kind: input, shape index: {}]   ;;  %s3321_s2 = inlined_call_operand.vmem [shape: f32[2,64,128], index: 2, kind: output, shape index: {0}]   ;;  %s3322_s3 = inlined_call_operand.vmem [shape: f32[1,128], index: 3, kind: output, shape index: {1}]   ;;  %s3323_s4 = inlined_call_operand.vmem [shape: f32[1,128], index: 4, kind: output, shape index: {2}]  }
   0x1   :  { %s2791_s17 = smov 0  }
   0x2 LB: > { %s30_s18 = sadd.s32 1, %s2755_s16  ;;  %p2189_p0 = scmp.ge.s32.totalorder %s2759_s17, 1  ;;  %s2759_s17 = sphi %s2791_s17, %s15_s17   ;;  %s2755_s16 = sphi %s2789_s16, %s3347_s16   ;;  %s2751_s15 = sphi %s2787_s15, %s3346_s15  }
   0x3   : > { %p32_p1 = scmp.ge.s32.totalorder %s30_s18, 2  ;;  %p201_p2 = scmp.lt.s32.totalorder %s2759_s17, 3 }
   0x5   : > { %s3349_s18 = smov (%p32_p1, %s30_s18), 0  ;;  %p202_p3 = pnand %p2189_p0, %p201_p2 }
   0x7   : > { %205 = sbr.rel (%p202_p3) target bundleno = 373 (0x175), region = 28 }
   0xc   : > { %v2619_v0 = vld [vmem:[%s3320_s1 + $0x78] sm:$0xff]   ;;  %v2623_v4 = vld [vmem:[%s3320_s1 + $0x70] sm:$0xff]   ;;  %v2627_v8 = vld [vmem:[%s3320_s1 + $0x68] sm:$0xff]   ;;  %s2190_s29 = sshll.u32 %s2751_s15, 2  ;;  %vm331_vm0 = vsmask.f32 3328 }
   0xd   : > { %v2620_v1 = vld [vmem:[%s3320_s1 + $0xf8] sm:$0xff]   ;;  %2381 = vmatprep.subr.bf16.mxu0 %v2619_v0  ;;  %v2624_v5 = vld [vmem:[%s3320_s1 + $0xf0] sm:$0xff]   ;;  %v2628_v9 = vld [vmem:[%s3320_s1 + $0xe8] sm:$0xff]   ;;  %p246_p4 = scmp.lt.s32.totalorder %s2190_s29, 7  ;;  %vm332_vm1 = vsmask.f32 7440 }
   0xe   : > { %v2621_v2 = vld [vmem:[%s3320_s1 + $0x38] sm:$0xff]   ;;  %2421 = vmatprep.subr.bf16.mxu1 %v2620_v1  ;;  %v2625_v6 = vld [vmem:[%s3320_s1 + $0x30] sm:$0xff]   ;;  %v2629_v10 = vld [vmem:[%s3320_s1 + $0x28] sm:$0xff]   ;;  %p1960_p5 = scmp.eq.s32.totalorder %s2751_s15, 0  ;;  %p257_p6 = scmp.lt.s32.totalorder %s2751_s15, 1 }
   0xf   : > { %v2622_v3 = vld [vmem:[%s3320_s1 + $0xb8] sm:$0xff]   ;;  %2382 = vmatpush3.bf16.msra.mxu0 %v2621_v2  ;;  %v2626_v7 = vld [vmem:[%s3320_s1 + $0xb0] sm:$0xff]   ;;  %v2630_v11 = vld [vmem:[%s3320_s1 + $0xa8] sm:$0xff]   ;;  %s3351_s29 = smov (!%p246_p4, %s2190_s29), 7 }
  0x10   : > { %2422 = vmatpush3.bf16.msra.mxu1 %v2622_v3  ;;  %2383 = vmatprep.subr.bf16.mxu0 %v2623_v4  ;;  %v2631_v12 = vld [vmem:[%s3320_s1 + $0x60] sm:$0xff]   ;;  %v2635_v16 = vld [vmem:[%s3320_s1 + $0x58] sm:$0xff]   ;;  %v2639_v20 = vld [vmem:[%s3320_s1 + $0x50] sm:$0xff]   ;;  %s2593_s5 = smul.u32 72, %s3351_s29 }
  0x11   : > { %2423 = vmatprep.subr.bf16.mxu1 %v2624_v5  ;;  %v2632_v13 = vld [vmem:[%s3320_s1 + $0xe0] sm:$0xff]   ;;  %v2636_v17 = vld [vmem:[%s3320_s1 + $0xd8] sm:$0xff]   ;;  %v2640_v21 = vld [vmem:[%s3320_s1 + $0xd0] sm:$0xff]  }
  0x12   : > { %v2633_v14 = vld [vmem:[%s3320_s1 + $0x20] sm:$0xff]   ;;  %v2637_v18 = vld [vmem:[%s3320_s1 + $0x18] sm:$0xff]   ;;  %v2641_v22 = vld [vmem:[%s3320_s1 + $0x10] sm:$0xff]   ;;  %s2904_s19 = scalar_lea.vmem %s3319_s0, %s2593_s5 }
  0x13   : > { %2384 = vmatpush3.bf16.msra.mxu0 %v2625_v6  ;;  %v2634_v15 = vld [vmem:[%s3320_s1 + $0xa0] sm:$0xff]   ;;  %v2638_v19 = vld [vmem:[%s3320_s1 + $0x98] sm:$0xff]   ;;  %v2642_v23 = vld [vmem:[%s3320_s1 + $0x90] sm:$0xff]  }
  0x14   : > { %2424 = vmatpush3.bf16.msra.mxu1 %v2626_v7  ;;  %2385 = vmatprep.subr.bf16.mxu0 %v2627_v8  ;;  %v2643_v24 = vld [vmem:[%s3320_s1 + $0x48] sm:$0xff]   ;;  %v2647_v28 = vld [vmem:[%s3320_s1 + $0x40] sm:$0xff]   ;;  %v2195_v35 = vld [vmem:[%s2904_s19 + $0x50] sm:$0xf] }
  0x15   : > { %2425 = vmatprep.subr.bf16.mxu1 %v2628_v9  ;;  %v2644_v25 = vld [vmem:[%s3320_s1 + $0xc8] sm:$0xff]   ;;  %v2648_v29 = vld [vmem:[%s3320_s1 + $0xc0] sm:$0xff]   ;;  %308 = vst [vmem:[#allocation2 + $0x28] sm:$0xf] %v2195_v35  ;;  %v2657_v43 = vld [vmem:[%s3320_s1 + $0x178] sm:$0xff]  }
  0x16   : > { %v2645_v26 = vld [vmem:[%s3320_s1 + $0x8] sm:$0xff]   ;;  %v2649_v30 = vld [vmem:[%s3320_s1] sm:$0xff]   ;;  %v2202_v47 = vld [vmem:[%s2904_s19 + $0x90] sm:$0xf] }
  0x17   : > { %2386 = vmatpush3.bf16.msra.mxu0 %v2629_v10  ;;  %v2646_v27 = vld [vmem:[%s3320_s1 + $0x88] sm:$0xff]   ;;  %v2650_v31 = vld [vmem:[%s3320_s1 + $0x80] sm:$0xff]   ;;  %v2658_v48 = vld [vmem:[%s3320_s1 + $0x1f8] sm:$0xff]   ;;  %473 = vst [vmem:[#allocation2 + $0xc] sm:$0xf] %v2202_v47 }
  0x18   : > { %2426 = vmatpush3.bf16.msra.mxu1 %v2630_v11  ;;  %2387 = vmatprep.subr.bf16.mxu0 %v2631_v12  ;;  %v280_v32 = vld [vmem:[%s2904_s19] sm:$0xf]  ;;  %v281_v33 = vld [vmem:[%s2904_s19 + $0x8] sm:$0xf]  ;;  %v316_v37 = vld [vmem:[%s2904_s19 + $0x4] sm:$0x1] }
  0x19   : > { %2427 = vmatprep.subr.bf16.mxu1 %v2632_v13  ;;  %v2194_v34 = vld [vmem:[%s2904_s19 + $0x48] sm:$0xf]  ;;  %288 = vst [vmem:[#allocation2] sm:$0xf] %v280_v32  ;;  %289 = vst [vmem:[#allocation2 + $0x24] sm:$0xf] %v281_v33 }
  0x1a   : > { %307 = vst [vmem:[#allocation2 + $0x4] sm:$0xf] %v2194_v34  ;;  %v315_v36 = vld [vmem:[%s2904_s19] sm:$0xf]  ;;  %v317_v38 = vld [vmem:[%s2904_s19 + $0x8] sm:$0xf]  ;;  %vm2927_vm2 = vmor %vm331_vm0, %vm332_vm1 }
  0x1b   : > { %2388 = vmatpush3.bf16.msra.mxu0 %v2633_v14  ;;  %v318_v39 = vld [vmem:[%s2904_s19 + $0xc] sm:$0x1]  ;;  %v335_v40 = vshrl.u32 %v315_v36, 16  ;;  %v338_v41 = vshll.u32 %v315_v36, 16  ;;  %v344_v42 = vshll.u32 %v316_v37, 16  ;;  %v349_v44 = vshrl.u32 %v317_v38, 16 }
  0x1c   : > { %2428 = vmatpush3.bf16.msra.mxu1 %v2634_v15  ;;  %2389 = vmatprep.subr.bf16.mxu0 %v2635_v16  ;;  %v352_v45 = vshll.u32 %v317_v38, 16  ;;  %v358_v46 = vshll.u32 %v318_v39, 16  ;;  %v2203_v51 = vld [vmem:[%s2904_s19 + $0x98] sm:$0xf]  ;;  %v2661_v0 = vld [vmem:[%s3320_s1 + $0x170] sm:$0xff]   ;;  %v2675_v47 = vld [vmem:[%s3320_s1 + $0x1e0] sm:$0xff]  }
  0x1d   : > { %2429 = vmatprep.subr.bf16.mxu1 %v2636_v17  ;;  %v337_v49 = vrot.slane %v335_v40, 4  ;;  %v340_v50 = vrot.slane %v338_v41, 5  ;;  %v346_v53 = vrot.slane %v344_v42, 5  ;;  %v351_v54 = vrot.slane %v349_v44, 4  ;;  %474 = vst [vmem:[#allocation2 + $0x30] sm:$0xf] %v2203_v51 }
  0x1e   : > { %v354_v55 = vrot.slane %v352_v45, 5  ;;  %v2659_v57 = vld [vmem:[%s3320_s1 + $0x138] sm:$0xff]   ;;  %v360_v59 = vrot.slane %v358_v46, 5  ;;  %v2663_v3 = vld [vmem:[%s3320_s1 + $0x130] sm:$0xff]   ;;  %v2197_v7 = vld [vmem:[%s2904_s19 + $0x60] sm:$0xf] }
  0x1f   : > { %2390 = vmatpush3.bf16.msra.mxu0 %v2637_v18  ;;  %v341_v56 = vor.u32 %v340_v50, %v337_v49  ;;  %v282_v4 = vld [vmem:[%s2904_s19 + $0x10] sm:$0xf]  ;;  %v283_v5 = vld [vmem:[%s2904_s19 + $0x18] sm:$0xf]  ;;  %310 = vst [vmem:[#allocation2 + $0x70] sm:$0xf] %v2197_v7 }
  0x20   : > { %2430 = vmatpush3.bf16.msra.mxu1 %v2638_v19  ;;  %2391 = vmatprep.subr.bf16.mxu0 %v2639_v20  ;;  %v355_v58 = vor.u32 %v354_v55, %v351_v54  ;;  %v2651_v60 = vld [vmem:[#allocation2] ss:$36 sps:$4 sm:$0xff]   ;;  %290 = vst [vmem:[#allocation2 + $0x48] sm:$0xf] %v282_v4  ;;  %v2196_v6 = vld [vmem:[%s2904_s19 + $0x58] sm:$0xf] }
  0x21   : > { %2431 = vmatprep.subr.bf16.mxu1 %v2640_v21  ;;  %v2653_v61 = vld [vmem:[#allocation2 + $0x4] ss:$36 sps:$4 sm:$0xff]   ;;  %v342_v62 = vrot.slane %v341_v56, 4  ;;  %291 = vst [vmem:[#allocation2 + $0x6c] sm:$0xf] %v283_v5  ;;  %v2660_v16 = vld [vmem:[%s3320_s1 + $0x1b8] sm:$0xff]  }
  0x22   : > { %v356_v63 = vrot.slane %v355_v58, 4  ;;  %1659 = vmatprep.mubr.bf16.mxu0 %v2653_v61  ;;  %309 = vst [vmem:[#allocation2 + $0x4c] sm:$0xf] %v2196_v6  ;;  %v319_v8 = vld [vmem:[%s2904_s19 + $0x10] sm:$0xf]  ;;  %v2672_v40 = vld [vmem:[%s3320_s1 + $0x128] sm:$0xff]  }
  0x23   : > { %2392 = vmatpush3.bf16.msra.mxu0 %v2641_v22  ;;  %v347_v1 = vsel %vm2927_vm2, %v342_v62, %v346_v53  ;;  %v320_v9 = vld [vmem:[%s2904_s19 + $0x14] sm:$0x1]  ;;  %v321_v10 = vld [vmem:[%s2904_s19 + $0x18] sm:$0xf]  ;;  %v322_v11 = vld [vmem:[%s2904_s19 + $0x1c] sm:$0x1] }
  0x24   : > { %2432 = vmatpush3.bf16.msra.mxu1 %v2642_v23  ;;  %2393 = vmatprep.subr.bf16.mxu0 %v2643_v24  ;;  %v361_v2 = vsel %vm2927_vm2, %v356_v63, %v360_v59  ;;  %454 = vst [vmem:[#allocation2 + $0x8] sm:$0xf] %v347_v1  ;;  %v363_v12 = vshrl.u32 %v319_v8, 16  ;;  %v366_v13 = vshll.u32 %v319_v8, 16  ;;  %v372_v14 = vshll.u32 %v320_v9, 16  ;;  %v2662_v21 = vld [vmem:[%s3320_s1 + $0x1f0] sm:$0xff]  }
  0x25   : > { %2433 = vmatprep.subr.bf16.mxu1 %v2644_v25  ;;  %455 = vst [vmem:[#allocation2 + $0x2c] sm:$0xf] %v361_v2  ;;  %v377_v15 = vshrl.u32 %v321_v10, 16  ;;  %v380_v17 = vshll.u32 %v321_v10, 16  ;;  %v386_v18 = vshll.u32 %v322_v11, 16  ;;  %v2670_v25 = vld [vmem:[%s3320_s1 + $0x168] sm:$0xff]  }
  0x26   : > { %v2204_v19 = vld [vmem:[%s2904_s19 + $0xa0] sm:$0xf]  ;;  %v2205_v20 = vld [vmem:[%s2904_s19 + $0xa8] sm:$0xf]  ;;  %v365_v22 = vrot.slane %v363_v12, 4  ;;  %v368_v23 = vrot.slane %v366_v13, 5 }
  0x27   : > { %2394 = vmatpush3.bf16.msra.mxu0 %v2645_v26  ;;  %v379_v24 = vrot.slane %v377_v15, 4  ;;  %475 = vst [vmem:[#allocation2 + $0x54] sm:$0xf] %v2204_v19  ;;  %476 = vst [vmem:[#allocation2 + $0x78] sm:$0xf] %v2205_v20  ;;  %v2664_v32 = vld [vmem:[%s3320_s1 + $0x1b0] sm:$0xff]  }
  0x28   : > { %2434 = vmatpush3.bf16.msra.mxu1 %v2646_v27  ;;  %2395 = vmatprep.subr.bf16.mxu0 %v2647_v28  ;;  %v2656_v27 = vld [vmem:[#allocation2 + $0xc] ss:$36 sps:$4 sm:$0xff]   ;;  %v382_v28 = vrot.slane %v380_v17, 5  ;;  %v2674_v44 = vld [vmem:[%s3320_s1 + $0x160] sm:$0xff]   ;;  %v285_v50 = vld [vmem:[%s2904_s19 + $0x28] sm:$0xf] }
  0x29   : > { %2435 = vmatprep.subr.bf16.mxu1 %v2648_v29  ;;  %v369_v29 = vor.u32 %v368_v23, %v365_v22  ;;  %1724 = vmatprep.mubr.bf16.mxu1 %v2656_v27  ;;  %v837_v34 = vld [vmem:[#allocation2 + $0x48] sm:$0xff]  ;;  %v2676_v46 = vld [vmem:[%s3320_s1 + $0x120] sm:$0xff]   ;;  %v2199_v53 = vld [vmem:[%s2904_s19 + $0x70] sm:$0xf]  ;;  %293 = vst [vmem:[#allocation2 + $0xb4] sm:$0xf] %v285_v50 }
  0x2a   : > { %v383_v33 = vor.u32 %v382_v28, %v379_v24  ;;  %v842_v35 = vld [vmem:[#allocation2 + $0x6c] sm:$0xff]  ;;  %v2677_v49 = vld [vmem:[%s3320_s1 + $0x1a0] sm:$0xff]   ;;  %v2198_v51 = vld [vmem:[%s2904_s19 + $0x68] sm:$0xf]  ;;  %312 = vst [vmem:[#allocation2 + $0xb8] sm:$0xf] %v2199_v53 }
  0x2b   : > { %2396 = vmatpush3.bf16.msra.mxu0 %v2649_v30  ;;  %v374_v30 = vrot.slane %v372_v14, 5  ;;  %v2665_v36 = vld [vmem:[#allocation2 + $0x4c] ss:$36 sps:$4 sm:$0xff]   ;;  %v370_v37 = vrot.slane %v369_v29, 4  ;;  %v2275_v39 = vcombine.low %v837_v34, %v842_v35  ;;  %311 = vst [vmem:[#allocation2 + $0x94] sm:$0xf] %v2198_v51 }
  0x2c   : > { %2436 = vmatpush3.bf16.msra.mxu1 %v2650_v31  ;;  %2461 = vmatprep.subr.bf16.mxu0 %v2657_v43  ;;  %v2654_v26 = vld [vmem:[#allocation2 + $0x8] ss:$36 sps:$4 sm:$0xff]   ;;  %v388_v31 = vrot.slane %v386_v18, 5  ;;  %v384_v38 = vrot.slane %v383_v33, 4  ;;  %v323_v54 = vld [vmem:[%s2904_s19 + $0x20] sm:$0xf] }
  0x2d   : > { %2501 = vmatprep.subr.bf16.mxu1 %v2658_v48  ;;  %v375_v41 = vsel %vm2927_vm2, %v370_v37, %v374_v30  ;;  %v2671_v42 = vld [vmem:[%s3320_s1 + $0x1e8] sm:$0xff]   ;;  %v284_v48 = vld [vmem:[%s2904_s19 + $0x20] sm:$0xf]  ;;  %v324_v55 = vld [vmem:[%s2904_s19 + $0x24] sm:$0x1]  ;;  %v391_v58 = vshrl.u32 %v323_v54, 16 }
  0x2e   : > { %1660 = vmatmul.mubr.bf16.vlgmr.msra.gmra.mxu0 %v2651_v60  ;;  %v389_v43 = vsel %vm2927_vm2, %v384_v38, %v388_v31  ;;  %456 = vst [vmem:[#allocation2 + $0x50] sm:$0xf] %v375_v41  ;;  %v2673_v45 = vld [vmem:[%s3320_s1 + $0x1a8] sm:$0xff]   ;;  %292 = vst [vmem:[#allocation2 + $0x90] sm:$0xf] %v284_v48  ;;  %v394_v59 = vshll.u32 %v323_v54, 16 }
  0x2f   : > { %2462 = vmatpush3.bf16.msra.mxu0 %v2659_v57  ;;  %1725 = vmatmul.mubr.bf16.vlgmr.msra.gmra.mxu1 %v2654_v26  ;;  %457 = vst [vmem:[#allocation2 + $0x74] sm:$0xf] %v389_v43  ;;  %v325_v56 = vld [vmem:[%s2904_s19 + $0x28] sm:$0xf]  ;;  %v326_v57 = vld [vmem:[%s2904_s19 + $0x2c] sm:$0x1] }
  0x30   : > { %2463 = vmatprep.subr.bf16.mxu0 %v2661_v0  ;;  %2502 = vmatpush3.bf16.msra.mxu1 %v2660_v16  ;;  %v400_v60 = vshll.u32 %v324_v55, 16  ;;  %v405_v61 = vshrl.u32 %v325_v56, 16  ;;  %v408_v62 = vshll.u32 %v325_v56, 16  ;;  %v414_v63 = vshll.u32 %v326_v57, 16  ;;  %v2206_v0 = vld [vmem:[%s2904_s19 + $0xb0] sm:$0xf] }
  0x31   : > { %2503 = vmatprep.subr.bf16.mxu1 %v2662_v21  ;;  %1667 = vmatprep.mubr.bf16.mxu0 %v2665_v36  ;;  %v2683_v1 = vld [vmem:[%s3320_s1 + $0x158] sm:$0xff]   ;;  %v393_v4 = vrot.slane %v391_v58, 4  ;;  %477 = vst [vmem:[#allocation2 + $0x9c] sm:$0xf] %v2206_v0  ;;  %v396_v5 = vrot.slane %v394_v59, 5  ;;  %v2687_v24 = vld [vmem:[%s3320_s1 + $0x150] sm:$0xff]  }
  0x32   : > { %v2667_v2 = vld [vmem:[#allocation2 + $0x54] ss:$36 sps:$4 sm:$0xff]   ;;  %v402_v6 = vrot.slane %v400_v60, 5  ;;  %v407_v7 = vrot.slane %v405_v61, 4  ;;  %v410_v8 = vrot.slane %v408_v62, 5  ;;  %v416_v10 = vrot.slane %v414_v63, 5 }
  0x33   : > { %2464 = vmatpush3.bf16.msra.mxu0 %v2663_v3  ;;  %v2207_v9 = vld [vmem:[%s2904_s19 + $0xb8] sm:$0xf]  ;;  %1732 = vmatprep.mubr.bf16.mxu1 %v2667_v2  ;;  %v397_v12 = vor.u32 %v396_v5, %v393_v4  ;;  %v2689_v26 = vld [vmem:[%s3320_s1 + $0x110] sm:$0xff]   ;;  %v2201_v31 = vld [vmem:[%s2904_s19 + $0x80] sm:$0xf] }
  0x34   : > { %2465 = vmatprep.subr.bf16.mxu0 %v2670_v25  ;;  %2504 = vmatpush3.bf16.msra.mxu1 %v2664_v32  ;;  %478 = vst [vmem:[#allocation2 + $0xc0] sm:$0xf] %v2207_v9  ;;  %v2684_v11 = vld [vmem:[%s3320_s1 + $0x1d8] sm:$0xff]   ;;  %v411_v13 = vor.u32 %v410_v8, %v407_v7  ;;  %v2688_v25 = vld [vmem:[%s3320_s1 + $0x1d0] sm:$0xff]   ;;  %314 = vst [vmem:[#allocation2 + $0x100] sm:$0xf] %v2201_v31 }
  0x35   : > { %2505 = vmatprep.subr.bf16.mxu1 %v2671_v42  ;;  %v847_v14 = vld [vmem:[#allocation2 + $0x90] sm:$0xff]  ;;  %v398_v17 = vrot.slane %v397_v12, 4  ;;  %v2685_v20 = vld [vmem:[%s3320_s1 + $0x118] sm:$0xff]   ;;  %v2208_v42 = vld [vmem:[%s2904_s19 + $0xc0] sm:$0xf] }
  0x36   : > { %1668 = vmatmul.mubr.bf16.gmra.mxu0 %v2275_v39  ;;  %v2669_v3 = vld [vmem:[#allocation2 + $0x50] ss:$36 sps:$4 sm:$0xff]   ;;  %v412_v18 = vrot.slane %v411_v13, 4  ;;  %v2686_v21 = vld [vmem:[%s3320_s1 + $0x198] sm:$0xff]   ;;  %v2209_v43 = vld [vmem:[%s2904_s19 + $0xc8] sm:$0xf] }
  0x37   : > { %2466 = vmatpush3.bf16.msra.mxu0 %v2672_v40  ;;  %1733 = vmatmul.mubr.bf16.gmra.mxu1 %v2669_v3  ;;  %v852_v15 = vld [vmem:[#allocation2 + $0xb4] sm:$0xff]  ;;  %v403_v22 = vsel %vm2927_vm2, %v398_v17, %v402_v6  ;;  %v286_v28 = vld [vmem:[%s2904_s19 + $0x30] sm:$0xf]  ;;  %v330_v35 = vld [vmem:[%s2904_s19 + $0x3c] sm:$0x1] }
  0x38   : > { %2467 = vmatprep.subr.bf16.mxu0 %v2674_v44  ;;  %2506 = vmatpush3.bf16.msra.mxu1 %v2673_v45  ;;  %v2678_v16 = vld [vmem:[#allocation2 + $0x94] ss:$36 sps:$4 sm:$0xff]   ;;  %v2284_v19 = vcombine.low %v847_v14, %v852_v15  ;;  %v417_v23 = vsel %vm2927_vm2, %v412_v18, %v416_v10  ;;  %458 = vst [vmem:[#allocation2 + $0x98] sm:$0xf] %v403_v22  ;;  %294 = vst [vmem:[#allocation2 + $0xd8] sm:$0xf] %v286_v28 }
  0x39   : > { %2507 = vmatprep.subr.bf16.mxu1 %v2675_v47  ;;  %1675 = vmatprep.mubr.bf16.mxu0 %v2678_v16  ;;  %459 = vst [vmem:[#allocation2 + $0xbc] sm:$0xf] %v417_v23  ;;  %v2690_v27 = vld [vmem:[%s3320_s1 + $0x190] sm:$0xff]   ;;  %v287_v29 = vld [vmem:[%s2904_s19 + $0x38] sm:$0xf]  ;;  %v442_v41 = vshll.u32 %v330_v35, 16 }
  0x3a   : > { %v2200_v30 = vld [vmem:[%s2904_s19 + $0x78] sm:$0xf]  ;;  %295 = vst [vmem:[#allocation2 + $0xfc] sm:$0xf] %v287_v29  ;;  %v327_v32 = vld [vmem:[%s2904_s19 + $0x30] sm:$0xf] }
  0x3b   : > { %2468 = vmatpush3.bf16.msra.mxu0 %v2676_v46  ;;  %313 = vst [vmem:[#allocation2 + $0xdc] sm:$0xf] %v2200_v30  ;;  %v328_v33 = vld [vmem:[%s2904_s19 + $0x34] sm:$0x1]  ;;  %v329_v34 = vld [vmem:[%s2904_s19 + $0x38] sm:$0xf] }
  0x3c   : > { %2469 = vmatprep.subr.bf16.mxu0 %v2683_v1  ;;  %2508 = vmatpush3.bf16.msra.mxu1 %v2677_v49  ;;  %v419_v36 = vshrl.u32 %v327_v32, 16  ;;  %v422_v37 = vshll.u32 %v327_v32, 16  ;;  %v428_v38 = vshll.u32 %v328_v33, 16  ;;  %v433_v39 = vshrl.u32 %v329_v34, 16  ;;  %v2680_v44 = vld [vmem:[#allocation2 + $0x9c] ss:$36 sps:$4 sm:$0xff]  }
  0x3d   : > { %2509 = vmatprep.subr.bf16.mxu1 %v2684_v11  ;;  %v436_v40 = vshll.u32 %v329_v34, 16  ;;  %479 = vst [vmem:[#allocation2 + $0xe4] sm:$0xf] %v2208_v42  ;;  %480 = vst [vmem:[#allocation2 + $0x108] sm:$0xf] %v2209_v43  ;;  %1740 = vmatprep.mubr.bf16.mxu1 %v2680_v44  ;;  %v2696_v53 = vld [vmem:[%s3320_s1 + $0x148] sm:$0xff]  }
  0x3e   : > { %1676 = vmatmul.mubr.bf16.gmra.mxu0 %v2284_v19  ;;  %v421_v45 = vrot.slane %v419_v36, 4  ;;  %v424_v46 = vrot.slane %v422_v37, 5  ;;  %v435_v48 = vrot.slane %v433_v39, 4  ;;  %v430_v51 = vrot.slane %v428_v38, 5  ;;  %v2697_v56 = vld [vmem:[%s3320_s1 + $0x1c8] sm:$0xff]   ;;  %v2700_v3 = vld [vmem:[%s3320_s1 + $0x140] sm:$0xff]  }
  0x3f   : > { %2470 = vmatpush3.bf16.msra.mxu0 %v2685_v20  ;;  %v438_v49 = vrot.slane %v436_v40, 5  ;;  %v444_v55 = vrot.slane %v442_v41, 5  ;;  %v2698_v63 = vld [vmem:[%s3320_s1 + $0x108] sm:$0xff]   ;;  %v2701_v4 = vld [vmem:[%s3320_s1 + $0x1c0] sm:$0xff]   ;;  %v2210_v7 = vld [vmem:[%s2904_s19 + $0xd8] sm:$0xf] }
  0x40   : > { %2510 = vmatpush3.bf16.msra.mxu1 %v2686_v21  ;;  %2471 = vmatprep.subr.bf16.mxu0 %v2687_v24  ;;  %v2682_v47 = vld [vmem:[#allocation2 + $0x98] ss:$36 sps:$4 sm:$0xff]   ;;  %v425_v50 = vor.u32 %v424_v46, %v421_v45  ;;  %v2699_v1 = vld [vmem:[%s3320_s1 + $0x188] sm:$0xff]   ;;  %v2702_v5 = vld [vmem:[%s3320_s1 + $0x100] sm:$0xff]   ;;  %492 = vst [vmem:[#allocation2 + $0x10] sm:$0xf] %v2210_v7 }
  0x41   : > { %2511 = vmatprep.subr.bf16.mxu1 %v2688_v25  ;;  %1741 = vmatmul.mubr.bf16.gmra.mxu1 %v2682_v47  ;;  %v439_v54 = vor.u32 %v438_v49, %v435_v48  ;;  %v862_v58 = vld [vmem:[#allocation2 + $0xfc] sm:$0xff]  ;;  %v2218_v9 = vld [vmem:[%s2904_s19 + $0x90] sm:$0xf]  ;;  %v2219_v10 = vld [vmem:[%s2904_s19 + $0x94] sm:$0x1] }
  0x42   : > { %v857_v57 = vld [vmem:[#allocation2 + $0xd8] sm:$0xff]  ;;  %v426_v60 = vrot.slane %v425_v50, 4  ;;  %v2703_v6 = vld [vmem:[%s3320_s1 + $0x180] sm:$0xff]   ;;  %v517_v13 = vshrl.u32 %v2218_v9, 16  ;;  %v520_v14 = vshll.u32 %v2218_v9, 16  ;;  %v526_v15 = vshll.u32 %v2219_v10, 16 }
  0x43   : > { %2472 = vmatpush3.bf16.msra.mxu0 %v2689_v26  ;;  %v2691_v59 = vld [vmem:[#allocation2 + $0xdc] ss:$36 sps:$4 sm:$0xff]   ;;  %v440_v61 = vrot.slane %v439_v54, 4  ;;  %v2293_v62 = vcombine.low %v857_v57, %v862_v58  ;;  %v2220_v11 = vld [vmem:[%s2904_s19 + $0x98] sm:$0xf]  ;;  %v3100_v57 = vld [vmem:[%s3320_s1 + $0x230] sm:$0xff]  }
  0x44   : > { %2512 = vmatpush3.bf16.msra.mxu1 %v2690_v27  ;;  %2473 = vmatprep.subr.bf16.mxu0 %v2696_v53  ;;  %v431_v0 = vsel %vm2927_vm2, %v426_v60, %v430_v51  ;;  %v2211_v8 = vld [vmem:[%s2904_s19 + $0xe0] sm:$0xf]  ;;  %v2221_v12 = vld [vmem:[%s2904_s19 + $0x9c] sm:$0x1]  ;;  %v531_v16 = vshrl.u32 %v2220_v11, 16  ;;  %v534_v18 = vshll.u32 %v2220_v11, 16 }
  0x45   : > { %2513 = vmatprep.subr.bf16.mxu1 %v2697_v56  ;;  %1683 = vmatprep.mubr.bf16.mxu0 %v2691_v59  ;;  %v445_v2 = vsel %vm2927_vm2, %v440_v61, %v444_v55  ;;  %460 = vst [vmem:[#allocation2 + $0xe0] sm:$0xf] %v431_v0  ;;  %493 = vst [vmem:[#allocation2 + $0x34] sm:$0xf] %v2211_v8  ;;  %v2234_v17 = vld [vmem:[%s2904_s19 + $0x8] sm:$0xf] }
  0x46   : > { %1684 = vmatmul.mubr.bf16.gmra.mxu0 %v2293_v62  ;;  %461 = vst [vmem:[#allocation2 + $0x104] sm:$0xf] %v445_v2  ;;  %v540_v19 = vshll.u32 %v2221_v12, 16  ;;  %v2235_v20 = vld [vmem:[%s2904_s19 + $0x10] sm:$0xf]  ;;  %v3078_v21 = vld [vmem:[%s3320_s1 + $0x238] sm:$0xff]  }
  0x47   : > { %2474 = vmatpush3.bf16.msra.mxu0 %v2698_v63  ;;  %656 = vst [vmem:[#allocation2 + $0x18] sm:$0xf] %v2234_v17  ;;  %v2693_v22 = vld [vmem:[#allocation2 + $0xe4] ss:$36 sps:$4 sm:$0xff]   ;;  %v519_v24 = vrot.slane %v517_v13, 4  ;;  %v522_v25 = vrot.slane %v520_v14, 5 }
  0x48   : > { %2514 = vmatpush3.bf16.msra.mxu1 %v2699_v1  ;;  %2475 = vmatprep.subr.bf16.mxu0 %v2700_v3  ;;  %657 = vst [vmem:[#allocation2 + $0x3c] sm:$0xf] %v2235_v20  ;;  %v533_v26 = vrot.slane %v531_v16, 4  ;;  %v536_v27 = vrot.slane %v534_v18, 5  ;;  %v2242_v28 = vld [vmem:[%s2904_s19 + $0x50] sm:$0xf] }
  0x49   : > { %2515 = vmatprep.subr.bf16.mxu1 %v2701_v4  ;;  %1748 = vmatprep.mubr.bf16.mxu1 %v2693_v22  ;;  %v528_v29 = vrot.slane %v526_v15, 5  ;;  %v542_v30 = vrot.slane %v540_v19, 5  ;;  %v2243_v31 = vld [vmem:[%s2904_s19 + $0x58] sm:$0xf]  ;;  %675 = vst [vmem:[#allocation2 + $0x1c] sm:$0xf] %v2242_v28  ;;  %v523_v32 = vor.u32 %v522_v25, %v519_v24 }
  0x4a   : > { %v537_v33 = vor.u32 %v536_v27, %v533_v26  ;;  %676 = vst [vmem:[#allocation2 + $0x40] sm:$0xf] %v2243_v31  ;;  %v2212_v34 = vld [vmem:[%s2904_s19 + $0xe8] sm:$0xf]  ;;  %v2213_v35 = vld [vmem:[%s2904_s19 + $0xf0] sm:$0xf] }
  0x4b   : > { %2476 = vmatpush3.bf16.msra.mxu0 %v2702_v5  ;;  %v2222_v36 = vld [vmem:[%s2904_s19 + $0xa0] sm:$0xf]  ;;  %v524_v37 = vrot.slane %v523_v32, 4  ;;  %494 = vst [vmem:[#allocation2 + $0x58] sm:$0xf] %v2212_v34  ;;  %v3112_v8 = vld [vmem:[%s3320_s1 + $0x228] sm:$0xff]  }
  0x4c   : > { %2516 = vmatpush3.bf16.msra.mxu1 %v2703_v6  ;;  %2553 = vmatprep.subr.bf16.mxu0 %v3078_v21  ;;  %v538_v38 = vrot.slane %v537_v33, 4  ;;  %495 = vst [vmem:[#allocation2 + $0x7c] sm:$0xf] %v2213_v35  ;;  %v2223_v39 = vld [vmem:[%s2904_s19 + $0xa4] sm:$0x1]  ;;  %v545_v42 = vshrl.u32 %v2222_v36, 16 }
  0x4d   : > { %v2695_v23 = vld [vmem:[#allocation2 + $0xe0] ss:$36 sps:$4 sm:$0xff]   ;;  %2577 = vmatprep.subr.bf16.mxu1 %v3078_v21  ;;  %v2224_v40 = vld [vmem:[%s2904_s19 + $0xa8] sm:$0xf]  ;;  %v2225_v41 = vld [vmem:[%s2904_s19 + $0xac] sm:$0x1]  ;;  %v529_v46 = vsel %vm2927_vm2, %v524_v37, %v528_v29 }
  0x4e   : > { %1749 = vmatmul.mubr.bf16.gmra.mxu1 %v2695_v23  ;;  %v548_v43 = vshll.u32 %v2222_v36, 16  ;;  %v554_v44 = vshll.u32 %v2223_v39, 16  ;;  %v559_v45 = vshrl.u32 %v2224_v40, 16  ;;  %v543_v47 = vsel %vm2927_vm2, %v538_v38, %v542_v30  ;;  %v2236_v50 = vld [vmem:[%s2904_s19 + $0x18] sm:$0xf]  ;;  %v3124_v24 = vld [vmem:[%s3320_s1 + $0x220] sm:$0xff]  }
  0x4f   : > { %v562_v48 = vshll.u32 %v2224_v40, 16  ;;  %v568_v49 = vshll.u32 %v2225_v41, 16  ;;  %v2237_v51 = vld [vmem:[%s2904_s19 + $0x20] sm:$0xf]  ;;  %636 = vst [vmem:[#allocation2 + $0x14] sm:$0xf] %v529_v46 }
  0x50   : > { %637 = vst [vmem:[#allocation2 + $0x38] sm:$0xf] %v543_v47  ;;  %v547_v53 = vrot.slane %v545_v42, 4  ;;  %v550_v54 = vrot.slane %v548_v43, 5  ;;  %v561_v55 = vrot.slane %v559_v45, 4  ;;  %v556_v58 = vrot.slane %v554_v44, 5 }
  0x51   : > { %658 = vst [vmem:[#allocation2 + $0x60] sm:$0xf] %v2236_v50  ;;  %659 = vst [vmem:[#allocation2 + $0x84] sm:$0xf] %v2237_v51  ;;  %v2244_v56 = vld [vmem:[%s2904_s19 + $0x60] sm:$0xf] }
  0x52   : > { %v564_v59 = vrot.slane %v562_v48, 5  ;;  %v2245_v60 = vld [vmem:[%s2904_s19 + $0x68] sm:$0xf]  ;;  %677 = vst [vmem:[#allocation2 + $0x64] sm:$0xf] %v2244_v56  ;;  %v551_v63 = vor.u32 %v550_v54, %v547_v53  ;;  %v570_v0 = vrot.slane %v568_v49, 5 }
  0x53   : > { %v2707_v61 = vld [vmem:[#allocation2 + $0x18] ss:$36 sps:$4 sm:$0xff]   ;;  %678 = vst [vmem:[#allocation2 + $0x88] sm:$0xf] %v2245_v60  ;;  %v2215_v5 = vld [vmem:[%s2904_s19 + $0x100] sm:$0xf] }
  0x54   : > { %v2709_v62 = vld [vmem:[#allocation2 + $0x1c] ss:$36 sps:$4 sm:$0xff]   ;;  %v565_v1 = vor.u32 %v564_v59, %v561_v55  ;;  %v552_v2 = vrot.slane %v551_v63, 4  ;;  %v2214_v3 = vld [vmem:[%s2904_s19 + $0xf8] sm:$0xf]  ;;  %v3159_v60 = vld [vmem:[%s3320_s1 + $0x210] sm:$0xff]  }
  0x55   : > { %1854 = vmatprep.mubr.bf16.mxu1 %v2709_v62  ;;  %496 = vst [vmem:[#allocation2 + $0xa0] sm:$0xf] %v2214_v3  ;;  %v2226_v6 = vld [vmem:[%s2904_s19 + $0xb0] sm:$0xf]  ;;  %497 = vst [vmem:[#allocation2 + $0xc4] sm:$0xf] %v2215_v5 }
  0x56   : > { %1855 = vmatmul.mubr.bf16.vlgmr.msra.gmra.mxu1 %v2707_v61  ;;  %v566_v4 = vrot.slane %v565_v1, 4  ;;  %v557_v7 = vsel %vm2927_vm2, %v552_v2, %v556_v58  ;;  %v2227_v9 = vld [vmem:[%s2904_s19 + $0xb4] sm:$0x1]  ;;  %v2228_v10 = vld [vmem:[%s2904_s19 + $0xb8] sm:$0xf]  ;;  %v573_v14 = vshrl.u32 %v2226_v6, 16 }
  0x57   : > { %2585 = vmatpush3.bf16.msra.mxu1 %v3078_v21  ;;  %v2229_v11 = vld [vmem:[%s2904_s19 + $0xbc] sm:$0x1]  ;;  %v2704_v12 = vld [vmem:[#allocation2 + $0x10] ss:$36 sps:$4 sm:$0xff]   ;;  %638 = vst [vmem:[#allocation2 + $0x5c] sm:$0xf] %v557_v7 }
  0x58   : > { %2578 = vmatprep.subr.bf16.mxu1 %v3100_v57  ;;  %v571_v13 = vsel %vm2927_vm2, %v566_v4, %v570_v0  ;;  %v576_v15 = vshll.u32 %v2226_v6, 16  ;;  %v2706_v16 = vld [vmem:[#allocation2 + $0x14] ss:$36 sps:$4 sm:$0xff]   ;;  %v582_v17 = vshll.u32 %v2227_v9, 16  ;;  %v587_v18 = vshrl.u32 %v2228_v10, 16 }
  0x59   : > { %639 = vst [vmem:[#allocation2 + $0x80] sm:$0xf] %v571_v13  ;;  %v590_v19 = vshll.u32 %v2228_v10, 16  ;;  %v2716_v22 = vld [vmem:[#allocation2 + $0x60] ss:$36 sps:$4 sm:$0xff]   ;;  %v575_v23 = vrot.slane %v573_v14, 4  ;;  %1789 = vmatprep.mubr.bf16.mxu0 %v2706_v16 }
  0x5a   : > { %v2714_v20 = vld [vmem:[#allocation2 + $0x64] ss:$36 sps:$4 sm:$0xff]   ;;  %v578_v25 = vrot.slane %v576_v15, 5  ;;  %v589_v26 = vrot.slane %v587_v18, 4  ;;  %1790 = vmatmul.mubr.bf16.vlgmr.msra.gmra.mxu0 %v2704_v12  ;;  %v584_v29 = vrot.slane %v582_v17, 5  ;;  %v596_v30 = vshll.u32 %v2229_v11, 16 }
  0x5b   : > { %2586 = vmatpush3.bf16.msra.mxu1 %v3100_v57  ;;  %v592_v27 = vrot.slane %v590_v19, 5  ;;  %v2238_v28 = vld [vmem:[%s2904_s19 + $0x28] sm:$0xf]  ;;  %1862 = vmatprep.mubr.bf16.mxu1 %v2714_v20  ;;  %v2239_v31 = vld [vmem:[%s2904_s19 + $0x30] sm:$0xf]  ;;  %v3137_v39 = vld [vmem:[%s3320_s1 + $0x218] sm:$0xff]  }
  0x5c   : > { %660 = vst [vmem:[#allocation2 + $0xa8] sm:$0xf] %v2238_v28  ;;  %v2246_v32 = vld [vmem:[%s2904_s19 + $0x70] sm:$0xf]  ;;  %2554 = vmatpush3.bf16.msra.mxu0 %v3078_v21  ;;  %2579 = vmatprep.subr.bf16.mxu1 %v3112_v8  ;;  %v579_v33 = vor.u32 %v578_v25, %v575_v23  ;;  %661 = vst [vmem:[#allocation2 + $0xcc] sm:$0xf] %v2239_v31 }
  0x5d   : > { %v593_v34 = vor.u32 %v592_v27, %v589_v26  ;;  %v2247_v35 = vld [vmem:[%s2904_s19 + $0x78] sm:$0xf]  ;;  %679 = vst [vmem:[#allocation2 + $0xac] sm:$0xf] %v2246_v32  ;;  %2555 = vmatprep.subr.bf16.mxu0 %v3100_v57  ;;  %v598_v36 = vrot.slane %v596_v30, 5  ;;  %v3170_v10 = vld [vmem:[%s3320_s1 + $0x208] sm:$0xff]  }
  0x5e   : > { %1863 = vmatmul.mubr.bf16.gmra.mxu1 %v2716_v22  ;;  %680 = vst [vmem:[#allocation2 + $0xd0] sm:$0xf] %v2247_v35  ;;  %v839_v37 = vld [vmem:[#allocation2 + $0x58] sm:$0xff]  ;;  %v580_v21 = vrot.slane %v579_v33, 4  ;;  %v2216_v40 = vld [vmem:[%s2904_s19 + $0x108] sm:$0xf] }
  0x5f   : > { %2587 = vmatpush3.bf16.msra.mxu1 %v3112_v8  ;;  %v594_v38 = vrot.slane %v593_v34, 4  ;;  %v2217_v43 = vld [vmem:[%s2904_s19 + $0x110] sm:$0xf]  ;;  %498 = vst [vmem:[#allocation2 + $0xe8] sm:$0xf] %v2216_v40 }
  0x60   : > { %v844_v41 = vld [vmem:[#allocation2 + $0x7c] sm:$0xff]  ;;  %2580 = vmatprep.subr.bf16.mxu1 %v3124_v24  ;;  %2556 = vmatpush3.bf16.msra.mxu0 %v3100_v57  ;;  %v585_v45 = vsel %vm2927_vm2, %v580_v21, %v584_v29  ;;  %499 = vst [vmem:[#allocation2 + $0x10c] sm:$0xf] %v2217_v43  ;;  %v2231_v48 = vld [vmem:[%s2904_s19 + $0xc4] sm:$0x1] }
  0x61   : > { %v2712_v42 = vld [vmem:[#allocation2 + $0x5c] ss:$36 sps:$4 sm:$0xff]   ;;  %v2279_v44 = vcombine.low %v839_v37, %v844_v41  ;;  %v599_v46 = vsel %vm2927_vm2, %v594_v38, %v598_v36  ;;  %v2232_v49 = vld [vmem:[%s2904_s19 + $0xc8] sm:$0xf]  ;;  %2557 = vmatprep.subr.bf16.mxu0 %v3112_v8  ;;  %640 = vst [vmem:[#allocation2 + $0xa4] sm:$0xf] %v585_v45 }
  0x62   : > { %v2230_v47 = vld [vmem:[%s2904_s19 + $0xc0] sm:$0xf]  ;;  %1797 = vmatprep.mubr.bf16.mxu0 %v2712_v42  ;;  %641 = vst [vmem:[#allocation2 + $0xc8] sm:$0xf] %v599_v46  ;;  %v2233_v50 = vld [vmem:[%s2904_s19 + $0xcc] sm:$0x1] }
  0x63   : > { %v601_v51 = vshrl.u32 %v2230_v47, 16  ;;  %v604_v53 = vshll.u32 %v2230_v47, 16  ;;  %v610_v54 = vshll.u32 %v2231_v48, 16  ;;  %v615_v55 = vshrl.u32 %v2232_v49, 16  ;;  %2588 = vmatpush3.bf16.msra.mxu1 %v3124_v24  ;;  %v2240_v58 = vld [vmem:[%s2904_s19 + $0x38] sm:$0xf]  ;;  %1798 = vmatmul.mubr.bf16.gmra.mxu0 %v2279_v44 }
  0x64   : > { %v618_v56 = vshll.u32 %v2232_v49, 16  ;;  %v624_v57 = vshll.u32 %v2233_v50, 16  ;;  %v2241_v59 = vld [vmem:[%s2904_s19 + $0x40] sm:$0xf]  ;;  %2581 = vmatprep.subr.bf16.mxu1 %v3137_v39  ;;  %662 = vst [vmem:[#allocation2 + $0xf0] sm:$0xf] %v2240_v58  ;;  %2558 = vmatpush3.bf16.msra.mxu0 %v3112_v8 }
  0x65   : > { %v603_v61 = vrot.slane %v601_v51, 4  ;;  %v606_v62 = vrot.slane %v604_v53, 5  ;;  %v617_v63 = vrot.slane %v615_v55, 4  ;;  %663 = vst [vmem:[#allocation2 + $0x114] sm:$0xf] %v2241_v59  ;;  %2559 = vmatprep.subr.bf16.mxu0 %v3124_v24  ;;  %v612_v4 = vrot.slane %v610_v54, 5 }
  0x66   : > { %v2721_v0 = vld [vmem:[#allocation2 + $0xac] ss:$36 sps:$4 sm:$0xff]   ;;  %v620_v2 = vrot.slane %v618_v56, 5  ;;  %v626_v5 = vrot.slane %v624_v57, 5  ;;  %v2248_v6 = vld [vmem:[%s2904_s19 + $0x80] sm:$0xf] }
  0x67   : > { %v2723_v1 = vld [vmem:[#allocation2 + $0xa8] ss:$36 sps:$4 sm:$0xff]   ;;  %v607_v3 = vor.u32 %v606_v62, %v603_v61  ;;  %1870 = vmatprep.mubr.bf16.mxu1 %v2721_v0  ;;  %2589 = vmatpush3.bf16.msra.mxu1 %v3137_v39  ;;  %681 = vst [vmem:[#allocation2 + $0xf4] sm:$0xf] %v2248_v6  ;;  %v2252_v20 = vld [vmem:[%s2904_s19 + $0x10] sm:$0xf] }
  0x68   : > { %v2249_v7 = vld [vmem:[%s2904_s19 + $0x88] sm:$0xf]  ;;  %v621_v9 = vor.u32 %v620_v2, %v617_v63  ;;  %1871 = vmatmul.mubr.bf16.gmra.mxu1 %v2723_v1  ;;  %2582 = vmatprep.subr.bf16.mxu1 %v3159_v60  ;;  %v849_v12 = vld [vmem:[#allocation2 + $0xa0] sm:$0xff]  ;;  %v2251_v19 = vld [vmem:[%s2904_s19 + $0xc] sm:$0x1]  ;;  %v714_v29 = vshrl.u32 %v2252_v20, 16 }
  0x69   : > { %682 = vst [vmem:[#allocation2 + $0x118] sm:$0xf] %v2249_v7  ;;  %v608_v8 = vrot.slane %v607_v3, 4  ;;  %v2250_v11 = vld [vmem:[%s2904_s19 + $0x8] sm:$0xf]  ;;  %2560 = vmatpush3.bf16.msra.mxu0 %v3124_v24  ;;  %v3186_v24 = vld [vmem:[%s3320_s1 + $0x200] sm:$0xff]  }
  0x6a   : > { %v854_v13 = vld [vmem:[#allocation2 + $0xc4] sm:$0xff]  ;;  %v622_v15 = vrot.slane %v621_v9, 4  ;;  %v700_v16 = vshrl.u32 %v2250_v11, 16  ;;  %2561 = vmatprep.subr.bf16.mxu0 %v3137_v39  ;;  %v2253_v22 = vld [vmem:[%s2904_s19 + $0x14] sm:$0x1]  ;;  %v703_v26 = vshll.u32 %v2250_v11, 16 }
  0x6b   : > { %v2719_v14 = vld [vmem:[#allocation2 + $0xa4] ss:$36 sps:$4 sm:$0xff]   ;;  %v2288_v17 = vcombine.low %v849_v12, %v854_v13  ;;  %v613_v18 = vsel %vm2927_vm2, %v608_v8, %v612_v4  ;;  %2590 = vmatpush3.bf16.msra.mxu1 %v3159_v60  ;;  %v709_v27 = vshll.u32 %v2251_v19, 16  ;;  %v717_v30 = vshll.u32 %v2252_v20, 16  ;;  %v2259_v32 = vld [vmem:[%s2904_s19 + $0x2c] sm:$0x1] }
  0x6c   : > { %1805 = vmatprep.mubr.bf16.mxu0 %v2719_v14  ;;  %v627_v23 = vsel %vm2927_vm2, %v622_v15, %v626_v5  ;;  %642 = vst [vmem:[#allocation2 + $0xec] sm:$0xf] %v613_v18  ;;  %v702_v25 = vrot.slane %v700_v16, 4  ;;  %v2258_v28 = vld [vmem:[%s2904_s19 + $0x28] sm:$0xf]  ;;  %2583 = vmatprep.subr.bf16.mxu1 %v3170_v10  ;;  %v723_v31 = vshll.u32 %v2253_v22, 16 }
  0x6d   : > { %1806 = vmatmul.mubr.bf16.gmra.mxu0 %v2288_v17  ;;  %643 = vst [vmem:[#allocation2 + $0x110] sm:$0xf] %v627_v23  ;;  %v756_v33 = vshrl.u32 %v2258_v28, 16  ;;  %v705_v34 = vrot.slane %v703_v26, 5  ;;  %v711_v35 = vrot.slane %v709_v27, 5  ;;  %v716_v38 = vrot.slane %v714_v29, 4 }
  0x6e   : > { %2562 = vmatpush3.bf16.msra.mxu0 %v3137_v39  ;;  %v2260_v36 = vld [vmem:[%s2904_s19 + $0x30] sm:$0xf]  ;;  %v2261_v37 = vld [vmem:[%s2904_s19 + $0x34] sm:$0x1]  ;;  %v719_v40 = vrot.slane %v717_v30, 5  ;;  %v725_v43 = vrot.slane %v723_v31, 5 }
  0x6f   : > { %2563 = vmatprep.subr.bf16.mxu0 %v3159_v60  ;;  %v2730_v41 = vld [vmem:[#allocation2 + $0xf0] ss:$36 sps:$4 sm:$0xff]   ;;  %2591 = vmatpush3.bf16.msra.mxu1 %v3170_v10  ;;  %v706_v42 = vor.u32 %v705_v34, %v702_v25  ;;  %v758_v44 = vrot.slane %v756_v33, 4  ;;  %v759_v45 = vshll.u32 %v2258_v28, 16  ;;  %v765_v46 = vshll.u32 %v2259_v32, 16 }
  0x70   : > { %v2728_v21 = vld [vmem:[#allocation2 + $0xf4] ss:$36 sps:$4 sm:$0xff]   ;;  %2584 = vmatprep.subr.bf16.mxu1 %v3186_v24  ;;  %v720_v39 = vor.u32 %v719_v40, %v716_v38  ;;  %v770_v47 = vshrl.u32 %v2260_v36, 16  ;;  %v773_v48 = vshll.u32 %v2260_v36, 16  ;;  %v779_v53 = vshll.u32 %v2261_v37, 16 }
  0x71   : > { %1878 = vmatprep.mubr.bf16.mxu1 %v2728_v21  ;;  %v2254_v49 = vld [vmem:[%s2904_s19 + $0x18] sm:$0xf]  ;;  %v707_v50 = vrot.slane %v706_v42, 4  ;;  %v761_v51 = vrot.slane %v759_v45, 5  ;;  %v2255_v54 = vld [vmem:[%s2904_s19 + $0x1c] sm:$0x1] }
  0x72   : > { %2564 = vmatpush3.bf16.msra.mxu0 %v3159_v60  ;;  %1879 = vmatmul.mubr.bf16.gmra.mxu1 %v2730_v41  ;;  %v728_v55 = vshrl.u32 %v2254_v49, 16  ;;  %v721_v57 = vrot.slane %v720_v39, 4  ;;  %v767_v58 = vrot.slane %v765_v46, 5  ;;  %v772_v59 = vrot.slane %v770_v47, 4  ;;  %v2256_v2 = vld [vmem:[%s2904_s19 + $0x20] sm:$0xf] }
  0x73   : > { %v859_v56 = vld [vmem:[#allocation2 + $0xe8] sm:$0xff]  ;;  %2565 = vmatprep.subr.bf16.mxu0 %v3170_v10  ;;  %v775_v61 = vrot.slane %v773_v48, 5  ;;  %2592 = vmatpush3.bf16.msra.mxu1 %v3186_v24  ;;  %v712_v60 = vsel %vm2927_vm2, %v707_v50, %v711_v35  ;;  %v762_v0 = vor.u32 %v761_v51, %v758_v44  ;;  %v781_v1 = vrot.slane %v779_v53, 5  ;;  %v2257_v6 = vld [vmem:[%s2904_s19 + $0x24] sm:$0x1] }
  0x74   : > { %v864_v62 = vld [vmem:[#allocation2 + $0x10c] sm:$0xff]  ;;  %v726_v4 = vsel %vm2927_vm2, %v721_v57, %v725_v43  ;;  %819 = vst [vmem:[#allocation2 + $0x20] sm:$0xf] %v712_v60  ;;  %v730_v7 = vrot.slane %v728_v55, 4  ;;  %v2262_v9 = vld [vmem:[%s2904_s19 + $0x38] sm:$0xf] }
  0x75   : > { %v2726_v63 = vld [vmem:[#allocation2 + $0xec] ss:$36 sps:$4 sm:$0xff]   ;;  %v2297_v3 = vcombine.low %v859_v56, %v864_v62  ;;  %v776_v5 = vor.u32 %v775_v61, %v772_v59  ;;  %820 = vst [vmem:[#allocation2 + $0x44] sm:$0xf] %v726_v4  ;;  %v763_v8 = vrot.slane %v762_v0, 4  ;;  %v731_v11 = vshll.u32 %v2254_v49, 16 }
  0x76   : > { %1813 = vmatprep.mubr.bf16.mxu0 %v2726_v63  ;;  %2566 = vmatpush3.bf16.msra.mxu0 %v3170_v10  ;;  %v737_v12 = vshll.u32 %v2255_v54, 16  ;;  %v742_v13 = vshrl.u32 %v2256_v2, 16  ;;  %v2263_v14 = vld [vmem:[%s2904_s19 + $0x3c] sm:$0x1]  ;;  %v745_v16 = vshll.u32 %v2256_v2, 16  ;;  %v751_v17 = vshll.u32 %v2257_v6, 16 }
  0x77   : > { %1814 = vmatmul.mubr.bf16.gmra.mxu0 %v2297_v3  ;;  %2567 = vmatprep.subr.bf16.mxu0 %v3186_v24  ;;  %v777_v15 = vrot.slane %v776_v5, 4  ;;  %v2264_v18 = vld [vmem:[%s2904_s19 + $0x40] sm:$0xf]  ;;  %v784_v19 = vshrl.u32 %v2262_v9, 16  ;;  %v768_v20 = vsel %vm2927_vm2, %v763_v8, %v767_v58  ;;  %v733_v22 = vrot.slane %v731_v11, 5 }
  0x78   : > { %v744_v10 = vrot.slane %v742_v13, 4  ;;  %v2265_v23 = vld [vmem:[%s2904_s19 + $0x44] sm:$0x1]  ;;  %823 = vst [vmem:[#allocation2 + $0xb0] sm:$0xf] %v768_v20  ;;  %v739_v26 = vrot.slane %v737_v12, 5 }
  0x79   : > { %v782_v25 = vsel %vm2927_vm2, %v777_v15, %v781_v1  ;;  %v747_v27 = vrot.slane %v745_v16, 5  ;;  %v786_v28 = vrot.slane %v784_v19, 4  ;;  %v734_v29 = vor.u32 %v733_v22, %v730_v7  ;;  %s3262_s19 = scalar_select %p257_p6, %s2751_s15, 1 }
  0x7a   : > { %2568 = vmatpush3.bf16.msra.mxu0 %v3186_v24  ;;  %824 = vst [vmem:[#allocation2 + $0xd4] sm:$0xf] %v782_v25  ;;  %v787_v30 = vshll.u32 %v2262_v9, 16  ;;  %v793_v31 = vshll.u32 %v2263_v14, 16  ;;  %v798_v32 = vshrl.u32 %v2264_v18, 16  ;;  %v753_v34 = vrot.slane %v751_v17, 5 }
  0x7b   : > { %v748_v33 = vor.u32 %v747_v27, %v744_v10  ;;  %v801_v35 = vshll.u32 %v2264_v18, 16  ;;  %v807_v36 = vshll.u32 %v2265_v23, 16  ;;  %v735_v37 = vrot.slane %v734_v29, 4  ;;  %s2379_s29 = sshll.u32 %s3262_s19, 6 }
  0x7c   : > { %v789_v21 = vrot.slane %v787_v30, 5  ;;  %v800_v38 = vrot.slane %v798_v32, 4  ;;  %v2733_v40 = vld [vmem:[#allocation2 + $0x20] ss:$36 sps:$4 sm:$0xff]   ;;  %v795_v24 = vrot.slane %v793_v31, 5  ;;  %s3274_s21 = scalar_lea.vmem %s3321_s2, %s2379_s29 }
  0x7d   : > { %v749_v41 = vrot.slane %v748_v33, 4  ;;  %v803_v42 = vrot.slane %v801_v35, 5  ;;  %v740_v43 = vsel %vm2927_vm2, %v735_v37, %v739_v26  ;;  %2569 = vmatprep.mubr.bf16.mxu0 %v2733_v40  ;;  %v809_v46 = vrot.slane %v807_v36, 5 }
  0x7e   : > { %v790_v44 = vor.u32 %v789_v21, %v786_v28  ;;  %821 = vst [vmem:[#allocation2 + $0x68] sm:$0xf] %v740_v43 }
  0x7f   : > { %v754_v45 = vsel %vm2927_vm2, %v749_v41, %v753_v34  ;;  %v804_v39 = vor.u32 %v803_v42, %v800_v38 }
  0x80   : > { %822 = vst [vmem:[#allocation2 + $0x8c] sm:$0xf] %v754_v45  ;;  %v791_v47 = vrot.slane %v790_v44, 4 }
  0x81   : > { %v2734_v48 = vld [vmem:[#allocation2 + $0xb0] ss:$36 sps:$4 sm:$0xff]   ;;  %v805_v49 = vrot.slane %v804_v39, 4 }
  0x82   : > { %v796_v50 = vsel %vm2927_vm2, %v791_v47, %v795_v24  ;;  %2573 = vmatprep.mubr.bf16.mxu1 %v2734_v48 }
  0x83   : > { %v810_v51 = vsel %vm2927_vm2, %v805_v49, %v809_v46  ;;  %825 = vst [vmem:[#allocation2 + $0xf8] sm:$0xf] %v796_v50 }
  0x84   : > { %826 = vst [vmem:[#allocation2 + $0x11c] sm:$0xf] %v810_v51 }
  0x87   : > { %v2735_v53 = vld [vmem:[#allocation2 + $0x68] ss:$36 sps:$4 sm:$0xff]  }
  0x88   : > { %2570 = vmatmul.mubr.bf16.vlgmr.msra.gmra.mxu0 %v2735_v53 }
  0x8b   : > { %v2736_v54 = vld [vmem:[#allocation2 + $0xf8] ss:$36 sps:$4 sm:$0xff]  }
  0x8c   : > { %2574 = vmatmul.mubr.bf16.vlgmr.msra.gmra.mxu1 %v2736_v54 }
  0xee   : > { %v2397_v55 = vpop.f32.mrf.mxu0 }
  0xef   : > { %v2437_v56 = vpop.f32.mrf.mxu1 }
  0xf0   : > { %v2398_v57 = vpop.f32.mrf.mxu0 }
  0xf1   : > { %v2438_v58 = vpop.f32.mrf.mxu1  ;;  %v2399_v51 = vadd.f32 %v2398_v57, %v2397_v55 }
  0xf2   : > { %v3228_v59 = vpop.f32.mrf.mxu0  ;;  %v2439_v53 = vadd.f32 %v2438_v58, %v2437_v56 }
  0xf3   : > { %v3230_v61 = vpop.f32.mrf.mxu1 }
  0xf4   : > { %v2401_v62 = vpop.f32.mrf.mxu0 }
  0xf5   : > { %v2441_v63 = vpop.f32.mrf.mxu1 }
  0xf6   : > { %v2403_v60 = vpop.f32.mrf.mxu0 }
  0xf7   : > { %v2443_v52 = vpop.f32.mrf.mxu1 }
  0xf8   : > { %v2404_v0 = vpop.f32.mrf.mxu0 }
  0xf9   : > { %v2444_v1 = vpop.f32.mrf.mxu1  ;;  %v2405_v49 = vadd.f32 %v2404_v0, %v2403_v60 }
  0xfa   : > { %v2406_v2 = vpop.f32.mrf.mxu0  ;;  %v2445_v50 = vadd.f32 %v2444_v1, %v2443_v52  ;;  %v1727_v52 = vadd.f32 %v2439_v53, %v2399_v51 }
  0xfb   : > { %v2446_v3 = vpop.f32.mrf.mxu1 }
  0xfc   : > { %v2407_v4 = vpop.f32.mrf.mxu0 }
  0xfd   : > { %v2447_v5 = vpop.f32.mrf.mxu1 }
  0xfe   : > { %v2409_v6 = vpop.f32.mrf.mxu0 }
 0x100   : > { %v2410_v9 = vpop.f32.mrf.mxu0 }
 0x101   : > { %v2449_v7 = vpop.f32.mrf.mxu1  ;;  %v2411_v55 = vadd.f32 %v2410_v9, %v2409_v6 }
 0x102   : > { %v3232_v11 = vpop.f32.mrf.mxu0 }
 0x103   : > { %v2450_v8 = vpop.f32.mrf.mxu1 }
 0x104   : > { %v3236_v13 = vpop.f32.mrf.mxu0  ;;  %v2451_v56 = vadd.f32 %v2450_v8, %v2449_v7 }
 0x105   : > { %v3234_v12 = vpop.f32.mrf.mxu1  ;;  %v2414_v6 = vadd.f32 %v3236_v13, %v3232_v11 }
 0x106   : > { %3326 = vst [vmem:[#allocation3_spill] sm:$0xff] %v3234_v12  ;;  %v2415_v15 = vpop.f32.mrf.mxu0  ;;  %v2448_v12 = vadd.f32 %v2447_v5, %v2446_v3 }
 0x107   : > { %v3238_v14 = vpop.f32.mrf.mxu1 }
 0x108   : > { %3327 = vst [vmem:[#allocation4_spill] sm:$0xff] %v3238_v14  ;;  %v2416_v18 = vpop.f32.mrf.mxu0  ;;  %v2408_v14 = vadd.f32 %v2407_v4, %v2406_v2 }
 0x10a   : > { %v2418_v22 = vpop.f32.mrf.mxu0  ;;  %v1738_v3 = vadd.f32 %v2448_v12, %v2408_v14 }
 0x10c   : > { %v2419_v23 = vpop.f32.mrf.mxu0 }
 0x10d   : > { %v2420_v57 = vadd.f32 %v2419_v23, %v2418_v22  ;;  %v3336_v7 = vld [vmem:[#allocation3_spill] sm:$0xff] }
 0x10e   : > { %v2455_v16 = vpop.f32.mrf.mxu1 }
 0x10f   : > { %v3337_v9 = vld [vmem:[#allocation4_spill] sm:$0xff] }
 0x110   : > { %v2456_v17 = vpop.f32.mrf.mxu1  ;;  %v2454_v8 = vadd.f32 %v3337_v9, %v3336_v7 }
 0x112   : > { %v2458_v19 = vpop.f32.mrf.mxu1 }
 0x114   : > { %v2459_v20 = vpop.f32.mrf.mxu1 }
 0x115   : > { %v2460_v1 = vadd.f32 %v2459_v20, %v2458_v19 }
 0x116   : > { %v3240_v10 = vpop.f32.mrf.mxu1 }
 0x117   : > { %3328 = vst [vmem:[#allocation5_spill] sm:$0xff] %v3240_v10  ;;  %v1754_v23 = vadd.f32 %v2460_v1, %v2420_v57 }
 0x118   : > { %v3242_v25 = vpop.f32.mrf.mxu1 }
 0x119   : > { %3329 = vst [vmem:[#allocation6_spill] sm:$0xff] %v3242_v25 }
 0x11a   : > { %v3244_v26 = vpop.f32.mrf.mxu1  ;;  %v2477_v27 = vpop.f32.mrf.mxu0 }
 0x11b   : > { %3330 = vst [vmem:[#allocation7_spill] sm:$0xff] %v3244_v26  ;;  %v2402_v26 = vadd.f32 %v2401_v62, %v3228_v59 }
 0x11c   : > { %v3246_v28 = vpop.f32.mrf.mxu1  ;;  %v2478_v29 = vpop.f32.mrf.mxu0 }
 0x11d   : > { %3331 = vst [vmem:[#allocation8_spill] sm:$0xff] %v3246_v28  ;;  %v2457_v28 = vadd.f32 %v2456_v17, %v2455_v16  ;;  %v2479_v25 = vadd.f32 %v2478_v29, %v2477_v27 }
 0x11e   : > { %v2523_v30 = vpop.f32.mrf.mxu1  ;;  %v2480_v31 = vpop.f32.mrf.mxu0  ;;  %v3338_v19 = vld [vmem:[#allocation5_spill] sm:$0xff] }
 0x120   : > { %v2524_v32 = vpop.f32.mrf.mxu1  ;;  %v2481_v33 = vpop.f32.mrf.mxu0  ;;  %v3339_v20 = vld [vmem:[#allocation6_spill] sm:$0xff] }
 0x121   : > { %v2525_v4 = vadd.f32 %v2524_v32, %v2523_v30  ;;  %v2519_v22 = vadd.f32 %v3339_v20, %v3338_v19 }
 0x122   : > { %v2526_v35 = vpop.f32.mrf.mxu1 }
 0x123   : > { %v2483_v34 = vpop.f32.mrf.mxu0 }
 0x124   : > { %v2527_v21 = vpop.f32.mrf.mxu1 }
 0x125   : > { %v2484_v36 = vpop.f32.mrf.mxu0  ;;  %v2528_v12 = vadd.f32 %v2527_v21, %v2526_v35 }
 0x127   : > { %v2486_v37 = vpop.f32.mrf.mxu0 }
 0x128   : > { %v3248_v41 = vpop.f32.mrf.mxu1 }
 0x129   : > { %v2487_v38 = vpop.f32.mrf.mxu0  ;;  %3332 = vst [vmem:[#allocation9_spill] sm:$0xff] %v3248_v41  ;;  %v2417_v41 = vadd.f32 %v2416_v18, %v2415_v15  ;;  %v2482_v15 = vadd.f32 %v2481_v33, %v2480_v31  ;;  %v1743_v18 = vadd.f32 %v2451_v56, %v2411_v55 }
 0x12a   : > { %v3250_v43 = vpop.f32.mrf.mxu1  ;;  %v2488_v62 = vadd.f32 %v2487_v38, %v2486_v37 }
 0x12b   : > { %3333 = vst [vmem:[#allocation10_spill] sm:$0xff] %v3250_v43  ;;  %v2485_v43 = vadd.f32 %v2484_v36, %v2483_v34  ;;  %v1751_v0 = vadd.f32 %v2457_v28, %v2417_v41  ;;  %v3340_v34 = vld [vmem:[#allocation7_spill] sm:$0xff] }
 0x12c   : > { %v3252_v45 = vpop.f32.mrf.mxu1 }
 0x12d   : > { %v2489_v40 = vpop.f32.mrf.mxu0  ;;  %3334 = vst [vmem:[#allocation11_spill] sm:$0xff] %v3252_v45  ;;  %v2442_v45 = vadd.f32 %v2441_v63, %v3230_v61  ;;  %v1792_v63 = vadd.f32 %v2479_v25, %v1727_v52  ;;  %v1803_v25 = vadd.f32 %v2488_v62, %v1738_v3 }
 0x12e   : > { %v3254_v46 = vpop.f32.mrf.mxu1 }
 0x12f   : > { %v2490_v42 = vpop.f32.mrf.mxu0  ;;  %3335 = vst [vmem:[#allocation12_spill] sm:$0xff] %v3254_v46  ;;  %v1735_v46 = vadd.f32 %v2445_v50, %v2405_v49  ;;  %v1730_v61 = vadd.f32 %v2442_v45, %v2402_v26  ;;  %v1857_v13 = vadd.f32 %v2519_v22, %v1792_v63 }
 0x130   : > { %v2491_v16 = vadd.f32 %v2490_v42, %v2489_v40  ;;  %v3342_v37 = vld [vmem:[#allocation9_spill] sm:$0xff]  ;;  %v1746_v40 = vadd.f32 %v2454_v8, %v2414_v6 }
 0x131   : > { %v2492_v44 = vpop.f32.mrf.mxu0  ;;  %v1800_v59 = vadd.f32 %v2485_v43, %v1735_v46  ;;  %v1795_v28 = vadd.f32 %v2482_v15, %v1730_v61  ;;  %v1868_v43 = vadd.f32 %v2528_v12, %v1803_v25 }
 0x132   : > { %v2535_v48 = vpop.f32.mrf.mxu1  ;;  %v1808_v14 = vadd.f32 %v2491_v16, %v1743_v18  ;;  %v3343_v35 = vld [vmem:[#allocation10_spill] sm:$0xff] }
 0x133   : > { %v2493_v24 = vpop.f32.mrf.mxu0  ;;  %v1865_v27 = vadd.f32 %v2525_v4, %v1800_v59  ;;  %v2531_v21 = vadd.f32 %v3343_v35, %v3342_v37  ;;  %v2761_v59 = vmov (%p1960_p5), 0.0  }
 0x134   : > { %v2536_v10 = vpop.f32.mrf.mxu1  ;;  %v2494_v30 = vadd.f32 %v2493_v24, %v2492_v44  ;;  %v3344_v53 = vld [vmem:[#allocation11_spill] sm:$0xff]  ;;  %1966 = vst [vmem:[%s3322_s3] sm:$0x1] (%p1960_p5), %v2761_v59  ;;  %1967 = vst [vmem:[%s3323_s4] sm:$0x1] (%p1960_p5), %v2761_v59 }
 0x135   : > { %v2537_v26 = vadd.f32 %v2536_v10, %v2535_v48  ;;  %v3341_v10 = vld [vmem:[#allocation8_spill] sm:$0xff]  ;;  %v1873_v44 = vadd.f32 %v2531_v21, %v1808_v14 }
 0x136   : > { %v2538_v2 = vpop.f32.mrf.mxu1  ;;  %v2522_v36 = vadd.f32 %v3341_v10, %v3340_v34  ;;  %v1811_v46 = vadd.f32 %v2494_v30, %v1746_v40 }
 0x137   : > { %v2495_v39 = vpop.f32.mrf.mxu0 }
 0x138   : > { %v2539_v29 = vpop.f32.mrf.mxu1 }
 0x139   : > { %v2496_v47 = vpop.f32.mrf.mxu0  ;;  %v2540_v41 = vadd.f32 %v2539_v29, %v2538_v2 }
 0x13a   : > { %v2497_v60 = vadd.f32 %v2496_v47, %v2495_v39  ;;  %v1860_v39 = vadd.f32 %v2522_v36, %v1795_v28 }
 0x13b   : > { %v2498_v54 = vpop.f32.mrf.mxu0 }
 0x13c   : > { %v1816_v5 = vadd.f32 %v2497_v60, %v1751_v0 }
 0x13d   : > { %v2499_v58 = vpop.f32.mrf.mxu0 }
 0x13e   : > { %v2500_v17 = vadd.f32 %v2499_v58, %v2498_v54  ;;  %v1881_v33 = vadd.f32 %v2537_v26, %v1816_v5  ;;  %v3345_v54 = vld [vmem:[#allocation12_spill] sm:$0xff] }
 0x13f   : > { %v2534_v60 = vadd.f32 %v3345_v54, %v3344_v53 }
 0x140   : > { %v1819_v31 = vadd.f32 %v2500_v17, %v1754_v23 }
 0x141   : > { %v1876_v58 = vadd.f32 %v2534_v60, %v1811_v46 }
 0x142   : > { %v1884_v49 = vadd.f32 %v2540_v41, %v1819_v31 }
 0x148   : > { %v2571_v11 = vpop.f32.mrf.mxu0 }
 0x149   : > { %v1930_v32 = vadd.f32 %v2571_v11, %v1865_v27 }
 0x14a   : > { %v1921_v38 = vpop.f32.mrf.mxu0 }
 0x14b   : > { %1954 = vst [vmem:[%s3274_s21 + $0x10] sm:$0xff] %v1930_v32  ;;  %v1922_v42 = vadd.f32 %v1921_v38, %v1857_v13 }
 0x14c   : > { %v2575_v45 = vpop.f32.mrf.mxu1  ;;  %v2572_v24 = vpop.f32.mrf.mxu0 }
 0x14d   : > { %v1946_v47 = vadd.f32 %v2575_v45, %v1881_v33  ;;  %1952 = vst [vmem:[%s3274_s21] sm:$0xff] %v1922_v42  ;;  %v1933_v48 = vadd.f32 %v2572_v24, %v1868_v43 }
 0x14e   : > { %v1937_v50 = vpop.f32.mrf.mxu1  ;;  %v1924_v51 = vpop.f32.mrf.mxu0 }
 0x14f   : > { %1958 = vst [vmem:[%s3274_s21 + $0x30] sm:$0xff] %v1946_v47  ;;  %v1938_v52 = vadd.f32 %v1937_v50, %v1873_v44  ;;  %1955 = vst [vmem:[%s3274_s21 + $0x18] sm:$0xff] %v1933_v48  ;;  %v1925_v55 = vadd.f32 %v1924_v51, %v1860_v39 }
 0x150   : > { %v2576_v56 = vpop.f32.mrf.mxu1 }
 0x151   : > { %1956 = vst [vmem:[%s3274_s21 + $0x20] sm:$0xff] %v1938_v52  ;;  %v1949_v57 = vadd.f32 %v2576_v56, %v1884_v49  ;;  %1953 = vst [vmem:[%s3274_s21 + $0x8] sm:$0xff] %v1925_v55  ;;  %1965 = sbr.rel (!%p1960_p5) target bundleno = 342 (0x156), region = 32 }
 0x152   : > { %v1940_v0 = vpop.f32.mrf.mxu1 }
 0x153   : > { %1959 = vst [vmem:[%s3274_s21 + $0x38] sm:$0xff] %v1949_v57  ;;  %v1941_v1 = vadd.f32 %v1940_v0, %v1876_v58 }
 0x155   : > { %1957 = vst [vmem:[%s3274_s21 + $0x28] sm:$0xff] %v1941_v1 }
 0x156 PF: > { %v1969_v62 = vadd.f32 %v1925_v55, %v1922_v42  ;;  %v1985_v61 = vmul.f32 %v1922_v42, %v1922_v42  ;;  %v1986_v63 = vmul.f32 %v1925_v55, %v1925_v55  ;;  %v1987_v15 = vmul.f32 %v1930_v32, %v1930_v32  ;;  %v1968_v33 = vld [vmem:[%s3322_s3] sm:$0x1] }
 0x157   : > { %v1988_v2 = vmul.f32 %v1933_v48, %v1933_v48  ;;  %v1989_v5 = vmul.f32 %v1938_v52, %v1938_v52  ;;  %v1990_v6 = vmul.f32 %v1941_v1, %v1941_v1  ;;  %v1991_v8 = vmul.f32 %v1946_v47, %v1946_v47  ;;  %v1984_v36 = vld [vmem:[%s3323_s4] sm:$0x1] }
 0x158   : > { %v1970_v16 = vadd.f32 %v1969_v62, %v1930_v32  ;;  %v1993_v3 = vadd.f32 %v1986_v63, %v1985_v61  ;;  %v1992_v22 = vmul.f32 %v1949_v57, %v1949_v57 }
 0x15a   : > { %v1971_v4 = vadd.f32 %v1970_v16, %v1933_v48  ;;  %v1994_v17 = vadd.f32 %v1993_v3, %v1987_v15 }
 0x15c   : > { %v1972_v18 = vadd.f32 %v1971_v4, %v1938_v52  ;;  %v1995_v7 = vadd.f32 %v1994_v17, %v1988_v2 }
 0x15e   : > { %v1973_v9 = vadd.f32 %v1972_v18, %v1941_v1  ;;  %v1996_v19 = vadd.f32 %v1995_v7, %v1989_v5 }
 0x160   : > { %v1974_v20 = vadd.f32 %v1973_v9, %v1946_v47  ;;  %v1997_v23 = vadd.f32 %v1996_v19, %v1990_v6 }
 0x162   : > { %v1975_v25 = vadd.f32 %v1974_v20, %v1949_v57  ;;  %v1998_v26 = vadd.f32 %v1997_v23, %v1991_v8 }
 0x164   : > { %v1976_v27 = vrot.slane %v1975_v25, 4  ;;  %v1999_v28 = vadd.f32 %v1998_v26, %v1992_v22 }
 0x166   : > { %v1977_v12 = vadd.f32 %v1976_v27, %v1975_v25  ;;  %v2000_v14 = vrot.slane %v1999_v28, 4 }
 0x168   : > { %v1978_v29 = vrot.slane %v1977_v12, 2  ;;  %v2001_v11 = vadd.f32 %v2000_v14, %v1999_v28 }
 0x16a   : > { %v1979_v13 = vadd.f32 %v1978_v29, %v1977_v12  ;;  %v2002_v30 = vrot.slane %v2001_v11, 2 }
 0x16c   : > { %v1980_v31 = vrot.slane %v1979_v13, 1  ;;  %v2003_v32 = vadd.f32 %v2002_v30, %v2001_v11 }
 0x16e   : > { %v1981_v34 = vadd.f32 %v1980_v31, %v1979_v13  ;;  %v2004_v10 = vrot.slane %v2003_v32, 1 }
 0x170   : > { %v1982_v37 = vadd.f32 %v1981_v34, %v1968_v33  ;;  %v2005_v35 = vadd.f32 %v2004_v10, %v2003_v32 }
 0x172   : > { %1983 = vst [vmem:[%s3322_s3] sm:$0x1] %v1982_v37  ;;  %v2006_v21 = vadd.f32 %v2005_v35, %v1984_v36 }
 0x174   : > { %2007 = vst [vmem:[%s3323_s4] sm:$0x1] %v2006_v21 }
 0x175 PF: > { %s15_s17 = sadd.s32 1, %s2759_s17   ;;  %s3346_s15 = smov %s2755_s16 }
 0x176   : > { %p12_p7 = scmp.ge.s32.totalorder %s15_s17, 4   ;;  %s3347_s16 = smov %s3349_s18 }
 0x178   :  { %14 = sbr.rel (!%p12_p7) target bundleno = 2 (0x2), region = 95 }

// kernel: basic_block_forward.11
= control target key start
LH: loop header
LB: loop body
LE: loop exit
PB: predicated region body
PF: predicated region fallthrough
CT: control target
= control target key end

     0   :  { %s360_s0 = inlined_call_operand.vmem [shape: f32[128,128], index: 0, kind: input, shape index: {}]   ;;  %s361_s1 = inlined_call_operand.vmem [shape: f32[1,128], index: 1, kind: input, shape index: {}]   ;;  %s362_s2 = inlined_call_operand.vmem [shape: f32[1,128], index: 2, kind: input, shape index: {}]   ;;  %s363_s3 = inlined_call_operand.vmem [shape: f32[128,128], index: 3, kind: input, shape index: {}]   ;;  %s364_s4 = inlined_call_operand.vmem [shape: f32[128,128], index: 4, kind: output, shape index: {}]  }
   0x1   :  { %v17_v0 = vld [vmem:[%s360_s0] sm:$0xff]  ;;  %v18_v4 = vld [vmem:[%s360_s0 + $0x8] sm:$0xff]  ;;  %v19_v7 = vld [vmem:[%s360_s0 + $0x10] sm:$0xff] }
   0x2   :  { %v180_v1 = vld [vmem:[%s361_s1] ss:$0 sm:$0xff]  ;;  %v20_v8 = vld [vmem:[%s360_s0 + $0x18] sm:$0xff]  ;;  %v80_v10 = vld [vmem:[%s363_s3 + $0x8] sm:$0xff] }
   0x3   :  { %v185_v2 = vld [vmem:[%s362_s2] ss:$0 sm:$0xff]  ;;  %v40_v3 = vmul.f32 %v180_v1, %v17_v0  ;;  %v41_v6 = vmul.f32 %v180_v1, %v18_v4  ;;  %v42_v11 = vmul.f32 %v180_v1, %v19_v7  ;;  %v81_v12 = vld [vmem:[%s363_s3 + $0x10] sm:$0xff]  ;;  %v43_v13 = vmul.f32 %v180_v1, %v20_v8  ;;  %v82_v16 = vld [vmem:[%s363_s3 + $0x18] sm:$0xff] }
   0x4   :  { %v79_v5 = vld [vmem:[%s363_s3] sm:$0xff]  ;;  %v22_v18 = vld [vmem:[%s360_s0 + $0x28] sm:$0xff]  ;;  %v23_v19 = vld [vmem:[%s360_s0 + $0x30] sm:$0xff] }
   0x5   :  { %v63_v9 = vadd.f32 %v185_v2, %v40_v3  ;;  %v21_v14 = vld [vmem:[%s360_s0 + $0x20] sm:$0xff]  ;;  %v64_v15 = vadd.f32 %v185_v2, %v41_v6  ;;  %v65_v21 = vadd.f32 %v185_v2, %v42_v11  ;;  %v66_v22 = vadd.f32 %v185_v2, %v43_v13  ;;  %v24_v25 = vld [vmem:[%s360_s0 + $0x38] sm:$0xff]  ;;  %v84_v28 = vld [vmem:[%s363_s3 + $0x28] sm:$0xff] }
   0x6   :  { %v44_v17 = vmul.f32 %v180_v1, %v21_v14  ;;  %v83_v23 = vld [vmem:[%s363_s3 + $0x20] sm:$0xff]  ;;  %v45_v24 = vmul.f32 %v180_v1, %v22_v18  ;;  %v46_v29 = vmul.f32 %v180_v1, %v23_v19  ;;  %v47_v30 = vmul.f32 %v180_v1, %v24_v25  ;;  %v85_v36 = vld [vmem:[%s363_s3 + $0x30] sm:$0xff]  ;;  %v86_v37 = vld [vmem:[%s363_s3 + $0x38] sm:$0xff] }
   0x7   :  { %v95_v20 = vadd.f32 %v79_v5, %v63_v9  ;;  %v96_v26 = vadd.f32 %v80_v10, %v64_v15  ;;  %v25_v31 = vld [vmem:[%s360_s0 + $0x40] sm:$0xff]  ;;  %v97_v33 = vadd.f32 %v81_v12, %v65_v21  ;;  %v98_v34 = vadd.f32 %v82_v16, %v66_v22  ;;  %v26_v38 = vld [vmem:[%s360_s0 + $0x48] sm:$0xff]  ;;  %v27_v43 = vld [vmem:[%s360_s0 + $0x50] sm:$0xff] }
   0x8   :  { %v67_v27 = vadd.f32 %v185_v2, %v44_v17  ;;  %v68_v35 = vadd.f32 %v185_v2, %v45_v24  ;;  %v69_v41 = vadd.f32 %v185_v2, %v46_v29  ;;  %v70_v42 = vadd.f32 %v185_v2, %v47_v30  ;;  %v28_v44 = vld [vmem:[%s360_s0 + $0x58] sm:$0xff]  ;;  %v29_v49 = vld [vmem:[%s360_s0 + $0x60] sm:$0xff]  ;;  %v30_v55 = vld [vmem:[%s360_s0 + $0x68] sm:$0xff] }
   0x9   :  { %v111_v32 = vmax.f32 %v95_v20, 0.0  ;;  %v112_v39 = vmax.f32 %v96_v26, 0.0  ;;  %v113_v45 = vmax.f32 %v97_v33, 0.0  ;;  %v114_v46 = vmax.f32 %v98_v34, 0.0  ;;  %v87_v53 = vld [vmem:[%s363_s3 + $0x40] sm:$0xff]  ;;  %v88_v58 = vld [vmem:[%s363_s3 + $0x48] sm:$0xff] }
   0xa   :  { %v99_v40 = vadd.f32 %v83_v23, %v67_v27  ;;  %v100_v47 = vadd.f32 %v84_v28, %v68_v35  ;;  %v48_v48 = vmul.f32 %v180_v1, %v25_v31  ;;  %v101_v51 = vadd.f32 %v85_v36, %v69_v41  ;;  %v31_v61 = vld [vmem:[%s360_s0 + $0x70] sm:$0xff]  ;;  %v32_v62 = vld [vmem:[%s360_s0 + $0x78] sm:$0xff]  ;;  %v91_v10 = vld [vmem:[%s363_s3 + $0x60] sm:$0xff] }
   0xb   :  { %127 = vst [vmem:[%s364_s4] sm:$0xff] %v111_v32  ;;  %128 = vst [vmem:[%s364_s4 + $0x8] sm:$0xff] %v112_v39  ;;  %v102_v52 = vadd.f32 %v86_v37, %v70_v42  ;;  %v49_v54 = vmul.f32 %v180_v1, %v26_v38  ;;  %v50_v59 = vmul.f32 %v180_v1, %v27_v43  ;;  %v89_v4 = vld [vmem:[%s363_s3 + $0x50] sm:$0xff]  ;;  %v90_v5 = vld [vmem:[%s363_s3 + $0x58] sm:$0xff] }
   0xc   :  { %v115_v50 = vmax.f32 %v99_v40, 0.0  ;;  %129 = vst [vmem:[%s364_s4 + $0x10] sm:$0xff] %v113_v45  ;;  %130 = vst [vmem:[%s364_s4 + $0x18] sm:$0xff] %v114_v46  ;;  %v116_v56 = vmax.f32 %v100_v47, 0.0  ;;  %v71_v57 = vadd.f32 %v185_v2, %v48_v48  ;;  %v51_v60 = vmul.f32 %v180_v1, %v28_v44  ;;  %v92_v14 = vld [vmem:[%s363_s3 + $0x68] sm:$0xff]  ;;  %v93_v21 = vld [vmem:[%s363_s3 + $0x70] sm:$0xff] }
   0xd   :  { %v117_v63 = vmax.f32 %v101_v51, 0.0  ;;  %v118_v0 = vmax.f32 %v102_v52, 0.0  ;;  %v72_v3 = vadd.f32 %v185_v2, %v49_v54  ;;  %v52_v6 = vmul.f32 %v180_v1, %v29_v49  ;;  %v94_v22 = vld [vmem:[%s363_s3 + $0x78] sm:$0xff] }
   0xe   :  { %131 = vst [vmem:[%s364_s4 + $0x20] sm:$0xff] %v115_v50  ;;  %132 = vst [vmem:[%s364_s4 + $0x28] sm:$0xff] %v116_v56  ;;  %v103_v7 = vadd.f32 %v87_v53, %v71_v57  ;;  %v73_v8 = vadd.f32 %v185_v2, %v50_v59  ;;  %v74_v9 = vadd.f32 %v185_v2, %v51_v60 }
   0xf   :  { %v53_v11 = vmul.f32 %v180_v1, %v30_v55  ;;  %133 = vst [vmem:[%s364_s4 + $0x30] sm:$0xff] %v117_v63  ;;  %134 = vst [vmem:[%s364_s4 + $0x38] sm:$0xff] %v118_v0  ;;  %v104_v12 = vadd.f32 %v88_v58, %v72_v3  ;;  %v75_v13 = vadd.f32 %v185_v2, %v52_v6 }
  0x10   :  { %v54_v15 = vmul.f32 %v180_v1, %v31_v61  ;;  %v55_v16 = vmul.f32 %v180_v1, %v32_v62  ;;  %v119_v17 = vmax.f32 %v103_v7, 0.0  ;;  %v105_v18 = vadd.f32 %v89_v4, %v73_v8 }
  0x11   :  { %v106_v19 = vadd.f32 %v90_v5, %v74_v9  ;;  %v76_v20 = vadd.f32 %v185_v2, %v53_v11  ;;  %v120_v23 = vmax.f32 %v104_v12, 0.0  ;;  %v107_v24 = vadd.f32 %v91_v10, %v75_v13 }
  0x12   :  { %v77_v25 = vadd.f32 %v185_v2, %v54_v15  ;;  %v78_v26 = vadd.f32 %v185_v2, %v55_v16  ;;  %135 = vst [vmem:[%s364_s4 + $0x40] sm:$0xff] %v119_v17  ;;  %v121_v1 = vmax.f32 %v105_v18, 0.0 }
  0x13   :  { %v122_v27 = vmax.f32 %v106_v19, 0.0  ;;  %v108_v28 = vadd.f32 %v92_v14, %v76_v20  ;;  %136 = vst [vmem:[%s364_s4 + $0x48] sm:$0xff] %v120_v23  ;;  %v123_v29 = vmax.f32 %v107_v24, 0.0 }
  0x14   :  { %v109_v30 = vadd.f32 %v93_v21, %v77_v25  ;;  %v110_v31 = vadd.f32 %v94_v22, %v78_v26  ;;  %137 = vst [vmem:[%s364_s4 + $0x50] sm:$0xff] %v121_v1 }
  0x15   :  { %138 = vst [vmem:[%s364_s4 + $0x58] sm:$0xff] %v122_v27  ;;  %v124_v2 = vmax.f32 %v108_v28, 0.0  ;;  %139 = vst [vmem:[%s364_s4 + $0x60] sm:$0xff] %v123_v29 }
  0x16   :  { %v125_v32 = vmax.f32 %v109_v30, 0.0  ;;  %v126_v33 = vmax.f32 %v110_v31, 0.0 }
  0x17   :  { %140 = vst [vmem:[%s364_s4 + $0x68] sm:$0xff] %v124_v2 }
  0x18   :  { %141 = vst [vmem:[%s364_s4 + $0x70] sm:$0xff] %v125_v32  ;;  %142 = vst [vmem:[%s364_s4 + $0x78] sm:$0xff] %v126_v33 }

// kernel: basic_block_forward.8
= control target key start
LH: loop header
LB: loop body
LE: loop exit
PB: predicated region body
PF: predicated region fallthrough
CT: control target
= control target key end

     0   :  { %s2987_s15 = smov 0   ;;  %s2989_s16 = smov 0   ;;  %s3583_s0 = inlined_call_operand.vmem [shape: bf16[2,10,10,128], index: 0, kind: input, shape index: {}]   ;;  %s3584_s1 = inlined_call_operand.vmem [shape: bf16[1152,128], index: 1, kind: input, shape index: {}]   ;;  %s3585_s2 = inlined_call_operand.vmem [shape: f32[2,64,128], index: 2, kind: output, shape index: {0}]   ;;  %s3586_s3 = inlined_call_operand.vmem [shape: f32[1,128], index: 3, kind: output, shape index: {1}]   ;;  %s3587_s4 = inlined_call_operand.vmem [shape: f32[1,128], index: 4, kind: output, shape index: {2}]  }
   0x1   :  { %s2991_s17 = smov 0  }
   0x2 LB: > { %s30_s18 = sadd.s32 1, %s2955_s16  ;;  %p2358_p0 = scmp.ge.s32.totalorder %s2959_s17, 1  ;;  %s2959_s17 = sphi %s2991_s17, %s15_s17   ;;  %s2955_s16 = sphi %s2989_s16, %s3611_s16   ;;  %s2951_s15 = sphi %s2987_s15, %s3610_s15  }
   0x3   : > { %p32_p1 = scmp.ge.s32.totalorder %s30_s18, 2  ;;  %p199_p2 = scmp.lt.s32.totalorder %s2959_s17, 3 }
   0x5   : > { %s3613_s18 = smov (%p32_p1, %s30_s18), 0  ;;  %p200_p3 = pnand %p2358_p0, %p199_p2 }
   0x7   : > { %203 = sbr.rel (%p200_p3) target bundleno = 386 (0x182), region = 28 }
   0xc   : > { %v2819_v0 = vld [vmem:[%s3584_s1 + $0x78] sm:$0xff]   ;;  %v2823_v4 = vld [vmem:[%s3584_s1 + $0x70] sm:$0xff]   ;;  %v2827_v8 = vld [vmem:[%s3584_s1 + $0x68] sm:$0xff]   ;;  %p242_p4 = scmp.lt.s32.totalorder %s2951_s15, 1  ;;  %vm470_vm0 = vcmask 1042432   ;;  %vm471_vm1 = vcmask 1046532  }
   0xd   : > { %v2820_v1 = vld [vmem:[%s3584_s1 + $0xf8] sm:$0xff]   ;;  %2581 = vmatprep.subr.bf16.mxu0 %v2819_v0  ;;  %v2824_v5 = vld [vmem:[%s3584_s1 + $0xf0] sm:$0xff]   ;;  %v2828_v9 = vld [vmem:[%s3584_s1 + $0xe8] sm:$0xff]   ;;  %vm307_vm2 = vsmask.f32 3328  ;;  %p2142_p5 = scmp.eq.s32.totalorder %s2951_s15, 0 }
   0xe   : > { %v2821_v2 = vld [vmem:[%s3584_s1 + $0x38] sm:$0xff]   ;;  %2621 = vmatprep.subr.bf16.mxu1 %v2820_v1  ;;  %v2825_v6 = vld [vmem:[%s3584_s1 + $0x30] sm:$0xff]   ;;  %v2829_v10 = vld [vmem:[%s3584_s1 + $0x28] sm:$0xff]   ;;  %s3075_s19 = scalar_select %p242_p4, %s2951_s15, 1  ;;  %vm308_vm3 = vsmask.f32 7440 }
   0xf   : > { %v2822_v3 = vld [vmem:[%s3584_s1 + $0xb8] sm:$0xff]   ;;  %2582 = vmatpush3.bf16.msra.mxu0 %v2821_v2  ;;  %v2826_v7 = vld [vmem:[%s3584_s1 + $0xb0] sm:$0xff]   ;;  %v2830_v11 = vld [vmem:[%s3584_s1 + $0xa8] sm:$0xff]  }
  0x10   : > { %2622 = vmatpush3.bf16.msra.mxu1 %v2822_v3  ;;  %2583 = vmatprep.subr.bf16.mxu0 %v2823_v4  ;;  %v2831_v12 = vld [vmem:[%s3584_s1 + $0x60] sm:$0xff]   ;;  %v2835_v16 = vld [vmem:[%s3584_s1 + $0x58] sm:$0xff]   ;;  %v2839_v20 = vld [vmem:[%s3584_s1 + $0x50] sm:$0xff]   ;;  %s2793_s28 = smul.u32 80, %s3075_s19 }
  0x11   : > { %2623 = vmatprep.subr.bf16.mxu1 %v2824_v5  ;;  %v2832_v13 = vld [vmem:[%s3584_s1 + $0xe0] sm:$0xff]   ;;  %v2836_v17 = vld [vmem:[%s3584_s1 + $0xd8] sm:$0xff]   ;;  %v2840_v21 = vld [vmem:[%s3584_s1 + $0xd0] sm:$0xff]  }
  0x12   : > { %v2833_v14 = vld [vmem:[%s3584_s1 + $0x20] sm:$0xff]   ;;  %v2837_v18 = vld [vmem:[%s3584_s1 + $0x18] sm:$0xff]   ;;  %v2841_v22 = vld [vmem:[%s3584_s1 + $0x10] sm:$0xff]   ;;  %s3105_s13 = scalar_lea.vmem %s3583_s0, %s2793_s28 }
  0x13   : > { %2584 = vmatpush3.bf16.msra.mxu0 %v2825_v6  ;;  %v2834_v15 = vld [vmem:[%s3584_s1 + $0xa0] sm:$0xff]   ;;  %v2838_v19 = vld [vmem:[%s3584_s1 + $0x98] sm:$0xff]   ;;  %v2842_v23 = vld [vmem:[%s3584_s1 + $0x90] sm:$0xff]  }
  0x14   : > { %2624 = vmatpush3.bf16.msra.mxu1 %v2826_v7  ;;  %2585 = vmatprep.subr.bf16.mxu0 %v2827_v8  ;;  %v2843_v24 = vld [vmem:[%s3584_s1 + $0x48] sm:$0xff]   ;;  %v2847_v28 = vld [vmem:[%s3584_s1 + $0x40] sm:$0xff]   ;;  %vm3125_vm4 = vmor %vm470_vm0, %vm471_vm1 }
  0x15   : > { %2625 = vmatprep.subr.bf16.mxu1 %v2828_v9  ;;  %v2844_v25 = vld [vmem:[%s3584_s1 + $0xc8] sm:$0xff]   ;;  %v2848_v29 = vld [vmem:[%s3584_s1 + $0xc0] sm:$0xff]   ;;  %vm3131_vm5 = vmor %vm307_vm2, %vm308_vm3 }
  0x16   : > { %v2845_v26 = vld [vmem:[%s3584_s1 + $0x8] sm:$0xff]   ;;  %v2849_v30 = vld [vmem:[%s3584_s1] sm:$0xff]   ;;  %v2857_v61 = vld [vmem:[%s3584_s1 + $0x178] sm:$0xff]  }
  0x17   : > { %2586 = vmatpush3.bf16.msra.mxu0 %v2829_v10  ;;  %v2846_v27 = vld [vmem:[%s3584_s1 + $0x88] sm:$0xff]   ;;  %v2850_v31 = vld [vmem:[%s3584_s1 + $0x80] sm:$0xff]   ;;  %v2371_v0 = vld [vmem:[%s3105_s13 + $0x10] sm:$0xf] }
  0x18   : > { %2626 = vmatpush3.bf16.msra.mxu1 %v2830_v11  ;;  %2587 = vmatprep.subr.bf16.mxu0 %v2831_v12  ;;  %v275_v32 = vld [vmem:[%s3105_s13] sm:$0xf]  ;;  %v276_v33 = vld [vmem:[%s3105_s13 + $0x8] sm:$0xf]  ;;  %v292_v35 = vld [vmem:[%s3105_s13 + $0x4] sm:$0x1] }
  0x19   : > { %2627 = vmatprep.subr.bf16.mxu1 %v2832_v13  ;;  %v291_v34 = vld [vmem:[%s3105_s13] sm:$0xf]  ;;  %283 = vst [vmem:[#allocation2] sm:$0xf] %v275_v32  ;;  %284 = vst [vmem:[#allocation2 + $0x24] sm:$0xf] %v276_v33 }
  0x1a   : > { %v293_v36 = vld [vmem:[%s3105_s13 + $0x8] sm:$0xf]  ;;  %v294_v37 = vld [vmem:[%s3105_s13 + $0xc] sm:$0x1]  ;;  %v311_v38 = vshrl.u32 %v291_v34, 16  ;;  %v314_v39 = vshll.u32 %v291_v34, 16 }
  0x1b   : > { %2588 = vmatpush3.bf16.msra.mxu0 %v2833_v14  ;;  %v320_v40 = vshll.u32 %v292_v35, 16  ;;  %v325_v41 = vshrl.u32 %v293_v36, 16  ;;  %v328_v42 = vshll.u32 %v293_v36, 16  ;;  %v334_v43 = vshll.u32 %v294_v37, 16  ;;  %v438_v44 = vld [vmem:[%s3105_s13] sm:$0xe] }
  0x1c   : > { %2628 = vmatpush3.bf16.msra.mxu1 %v2834_v15  ;;  %2589 = vmatprep.subr.bf16.mxu0 %v2835_v16  ;;  %v313_v45 = vrot.slane %v311_v38, 4  ;;  %v316_v46 = vrot.slane %v314_v39, 5  ;;  %v439_v47 = vld [vmem:[%s3105_s13 + $0x4] sm:$0x1]  ;;  %v440_v48 = vld [vmem:[%s3105_s13 + $0x8] sm:$0xe] }
  0x1d   : > { %2629 = vmatprep.subr.bf16.mxu1 %v2836_v17  ;;  %v322_v49 = vrot.slane %v320_v40, 5  ;;  %v327_v50 = vrot.slane %v325_v41, 4  ;;  %v330_v51 = vrot.slane %v328_v42, 5  ;;  %v336_v52 = vrot.slane %v334_v43, 5  ;;  %v441_v53 = vld [vmem:[%s3105_s13 + $0xc] sm:$0x1] }
  0x1e   : > { %v317_v56 = vor.u32 %v316_v46, %v313_v45  ;;  %v2362_v57 = vrot.slane %v438_v44, 9  ;;  %v475_v58 = vrot.slane %v439_v47, 5  ;;  %v2363_v59 = vrot.slane %v440_v48, 9  ;;  %v2370_v60 = vld [vmem:[%s3105_s13 + $0x8] sm:$0xf]  ;;  %v2858_v1 = vld [vmem:[%s3584_s1 + $0x1f8] sm:$0xff]  }
  0x1f   : > { %2590 = vmatpush3.bf16.msra.mxu0 %v2837_v18  ;;  %v331_v62 = vor.u32 %v330_v51, %v327_v50  ;;  %v479_v63 = vrot.slane %v441_v53, 5  ;;  %533 = vst [vmem:[#allocation2 + $0xc] sm:$0xf] %v2370_v60  ;;  %534 = vst [vmem:[#allocation2 + $0x30] sm:$0xf] %v2371_v0  ;;  %v2860_v8 = vld [vmem:[%s3584_s1 + $0x1b8] sm:$0xff]  }
  0x20   : > { %2630 = vmatpush3.bf16.msra.mxu1 %v2838_v19  ;;  %2591 = vmatprep.subr.bf16.mxu0 %v2839_v20  ;;  %v318_v2 = vrot.slane %v317_v56, 4  ;;  %v476_v3 = vsel %vm3125_vm4, %v2362_v57, %v475_v58  ;;  %v277_v9 = vld [vmem:[%s3105_s13 + $0x10] sm:$0xf]  ;;  %v278_v10 = vld [vmem:[%s3105_s13 + $0x18] sm:$0xf]  ;;  %v2870_v48 = vld [vmem:[%s3584_s1 + $0x168] sm:$0xff]  }
  0x21   : > { %2631 = vmatprep.subr.bf16.mxu1 %v2840_v21  ;;  %v332_v4 = vrot.slane %v331_v62, 4  ;;  %v480_v5 = vsel %vm3125_vm4, %v2363_v59, %v479_v63  ;;  %513 = vst [vmem:[#allocation2 + $0x8] sm:$0xf] %v476_v3  ;;  %v295_v11 = vld [vmem:[%s3105_s13 + $0x10] sm:$0xf]  ;;  %v2859_v18 = vld [vmem:[%s3584_s1 + $0x138] sm:$0xff]  }
  0x22   : > { %v323_v6 = vsel %vm3131_vm5, %v318_v2, %v322_v49  ;;  %514 = vst [vmem:[#allocation2 + $0x2c] sm:$0xf] %v480_v5  ;;  %v2862_v12 = vld [vmem:[%s3584_s1 + $0x1f0] sm:$0xff]   ;;  %285 = vst [vmem:[#allocation2 + $0x48] sm:$0xf] %v277_v9  ;;  %v339_v15 = vshrl.u32 %v295_v11, 16 }
  0x23   : > { %2592 = vmatpush3.bf16.msra.mxu0 %v2841_v22  ;;  %v337_v7 = vsel %vm3131_vm5, %v332_v4, %v336_v52  ;;  %430 = vst [vmem:[#allocation2 + $0x4] sm:$0xf] %v323_v6  ;;  %286 = vst [vmem:[#allocation2 + $0x6c] sm:$0xf] %v278_v10  ;;  %v296_v13 = vld [vmem:[%s3105_s13 + $0x14] sm:$0x1] }
  0x24   : > { %2632 = vmatpush3.bf16.msra.mxu1 %v2842_v23  ;;  %2593 = vmatprep.subr.bf16.mxu0 %v2843_v24  ;;  %431 = vst [vmem:[#allocation2 + $0x28] sm:$0xf] %v337_v7  ;;  %v297_v14 = vld [vmem:[%s3105_s13 + $0x18] sm:$0xf]  ;;  %v342_v19 = vshll.u32 %v295_v11, 16  ;;  %v2861_v20 = vld [vmem:[%s3584_s1 + $0x170] sm:$0xff]  }
  0x25   : > { %2633 = vmatprep.subr.bf16.mxu1 %v2844_v25  ;;  %v298_v21 = vld [vmem:[%s3105_s13 + $0x1c] sm:$0x1]  ;;  %v341_v22 = vrot.slane %v339_v15, 4  ;;  %v348_v23 = vshll.u32 %v296_v13, 16  ;;  %v353_v24 = vshrl.u32 %v297_v14, 16  ;;  %v2863_v34 = vld [vmem:[%s3584_s1 + $0x130] sm:$0xff]  }
  0x26   : > { %v2856_v17 = vld [vmem:[#allocation2 + $0xc] ss:$36 sps:$4 sm:$0xff]   ;;  %v2851_v25 = vld [vmem:[#allocation2] ss:$36 sps:$4 sm:$0xff]   ;;  %v362_v32 = vshll.u32 %v298_v21, 16 }
  0x27   : > { %2594 = vmatpush3.bf16.msra.mxu0 %v2845_v26  ;;  %1906 = vmatprep.mubr.bf16.mxu1 %v2856_v17  ;;  %v442_v33 = vld [vmem:[%s3105_s13 + $0x10] sm:$0xe]  ;;  %v443_v36 = vld [vmem:[%s3105_s13 + $0x14] sm:$0x1]  ;;  %v444_v37 = vld [vmem:[%s3105_s13 + $0x18] sm:$0xe] }
  0x28   : > { %2634 = vmatpush3.bf16.msra.mxu1 %v2846_v27  ;;  %2595 = vmatprep.subr.bf16.mxu0 %v2847_v28  ;;  %v2864_v27 = vld [vmem:[%s3584_s1 + $0x1b0] sm:$0xff]   ;;  %v344_v28 = vrot.slane %v342_v19, 5  ;;  %v445_v38 = vld [vmem:[%s3105_s13 + $0x1c] sm:$0x1]  ;;  %v364_v40 = vrot.slane %v362_v32, 5  ;;  %v2364_v41 = vrot.slane %v442_v33, 9 }
  0x29   : > { %2635 = vmatprep.subr.bf16.mxu1 %v2848_v29  ;;  %v2854_v16 = vld [vmem:[#allocation2 + $0x8] ss:$36 sps:$4 sm:$0xff]   ;;  %v350_v29 = vrot.slane %v348_v23, 5  ;;  %v483_v42 = vrot.slane %v443_v36, 5  ;;  %v2372_v43 = vld [vmem:[%s3105_s13 + $0x18] sm:$0xf] }
  0x2a   : > { %v345_v35 = vor.u32 %v344_v28, %v341_v22  ;;  %v2365_v45 = vrot.slane %v444_v37, 9  ;;  %v487_v46 = vrot.slane %v445_v38, 5  ;;  %v2373_v47 = vld [vmem:[%s3105_s13 + $0x20] sm:$0xf]  ;;  %535 = vst [vmem:[#allocation2 + $0x54] sm:$0xf] %v2372_v43 }
  0x2b   : > { %2596 = vmatpush3.bf16.msra.mxu0 %v2849_v30  ;;  %v2853_v26 = vld [vmem:[#allocation2 + $0x4] ss:$36 sps:$4 sm:$0xff]   ;;  %v355_v30 = vrot.slane %v353_v24, 4  ;;  %v484_v50 = vsel %vm3125_vm4, %v2364_v41, %v483_v42  ;;  %536 = vst [vmem:[#allocation2 + $0x78] sm:$0xf] %v2373_v47  ;;  %v2883_v19 = vld [vmem:[%s3584_s1 + $0x158] sm:$0xff]  }
  0x2c   : > { %2636 = vmatpush3.bf16.msra.mxu1 %v2850_v31  ;;  %2661 = vmatprep.subr.bf16.mxu0 %v2857_v61  ;;  %v356_v31 = vshll.u32 %v297_v14, 16  ;;  %v346_v44 = vrot.slane %v345_v35, 4  ;;  %v488_v52 = vsel %vm3125_vm4, %v2365_v45, %v487_v46  ;;  %515 = vst [vmem:[#allocation2 + $0x50] sm:$0xf] %v484_v50  ;;  %v2871_v53 = vld [vmem:[%s3584_s1 + $0x1e8] sm:$0xff]   ;;  %v2874_v60 = vld [vmem:[%s3584_s1 + $0x160] sm:$0xff]  }
  0x2d   : > { %2701 = vmatprep.subr.bf16.mxu1 %v2858_v1  ;;  %1841 = vmatprep.mubr.bf16.mxu0 %v2853_v26  ;;  %516 = vst [vmem:[#allocation2 + $0x74] sm:$0xf] %v488_v52  ;;  %v2872_v57 = vld [vmem:[%s3584_s1 + $0x128] sm:$0xff]   ;;  %v2875_v61 = vld [vmem:[%s3584_s1 + $0x1e0] sm:$0xff]   ;;  %v2375_v37 = vld [vmem:[%s3105_s13 + $0x30] sm:$0xf] }
  0x2e   : > { %1842 = vmatmul.mubr.bf16.vlgmr.msra.gmra.mxu0 %v2851_v25  ;;  %v358_v39 = vrot.slane %v356_v31, 5  ;;  %v351_v51 = vsel %vm3131_vm5, %v346_v44, %v350_v29  ;;  %v2873_v58 = vld [vmem:[%s3584_s1 + $0x1a8] sm:$0xff]   ;;  %v2876_v62 = vld [vmem:[%s3584_s1 + $0x120] sm:$0xff]   ;;  %v2884_v38 = vld [vmem:[%s3584_s1 + $0x1d8] sm:$0xff]   ;;  %538 = vst [vmem:[#allocation2 + $0xc0] sm:$0xf] %v2375_v37 }
  0x2f   : > { %1907 = vmatmul.mubr.bf16.vlgmr.msra.gmra.mxu1 %v2854_v16  ;;  %2662 = vmatpush3.bf16.msra.mxu0 %v2859_v18  ;;  %432 = vst [vmem:[#allocation2 + $0x4c] sm:$0xf] %v351_v51  ;;  %v2877_v63 = vld [vmem:[%s3584_s1 + $0x1a0] sm:$0xff]   ;;  %v280_v1 = vld [vmem:[%s3105_s13 + $0x28] sm:$0xf]  ;;  %v2885_v43 = vld [vmem:[%s3584_s1 + $0x118] sm:$0xff]  }
  0x30   : > { %2702 = vmatpush3.bf16.msra.mxu1 %v2860_v8  ;;  %2663 = vmatprep.subr.bf16.mxu0 %v2861_v20  ;;  %v359_v49 = vor.u32 %v358_v39, %v355_v30  ;;  %v279_v0 = vld [vmem:[%s3105_s13 + $0x20] sm:$0xf]  ;;  %288 = vst [vmem:[#allocation2 + $0xb4] sm:$0xf] %v280_v1  ;;  %v300_v8 = vld [vmem:[%s3105_s13 + $0x24] sm:$0x1] }
  0x31   : > { %2703 = vmatprep.subr.bf16.mxu1 %v2862_v12  ;;  %287 = vst [vmem:[#allocation2 + $0x90] sm:$0xf] %v279_v0  ;;  %v299_v2 = vld [vmem:[%s3105_s13 + $0x20] sm:$0xf]  ;;  %v301_v9 = vld [vmem:[%s3105_s13 + $0x28] sm:$0xf] }
  0x32   : > { %v360_v56 = vrot.slane %v359_v49, 4  ;;  %v2867_v4 = vld [vmem:[#allocation2 + $0x54] ss:$36 sps:$4 sm:$0xff]   ;;  %v367_v5 = vshrl.u32 %v299_v2, 16  ;;  %v370_v6 = vshll.u32 %v299_v2, 16  ;;  %v376_v13 = vshll.u32 %v300_v8, 16 }
  0x33   : > { %2664 = vmatpush3.bf16.msra.mxu0 %v2863_v34  ;;  %1914 = vmatprep.mubr.bf16.mxu1 %v2867_v4  ;;  %v302_v10 = vld [vmem:[%s3105_s13 + $0x2c] sm:$0x1]  ;;  %v381_v14 = vshrl.u32 %v301_v9, 16  ;;  %v384_v17 = vshll.u32 %v301_v9, 16  ;;  %v446_v24 = vld [vmem:[%s3105_s13 + $0x20] sm:$0xe] }
  0x34   : > { %2704 = vmatpush3.bf16.msra.mxu1 %v2864_v27  ;;  %v365_v59 = vsel %vm3131_vm5, %v360_v56, %v364_v40  ;;  %2665 = vmatprep.subr.bf16.mxu0 %v2870_v48  ;;  %v2869_v7 = vld [vmem:[#allocation2 + $0x50] ss:$36 sps:$4 sm:$0xff]   ;;  %v369_v11 = vrot.slane %v367_v5, 4  ;;  %v372_v12 = vrot.slane %v370_v6, 5  ;;  %v390_v18 = vshll.u32 %v302_v10, 16  ;;  %v2886_v44 = vld [vmem:[%s3584_s1 + $0x198] sm:$0xff]  }
  0x35   : > { %2705 = vmatprep.subr.bf16.mxu1 %v2871_v53  ;;  %433 = vst [vmem:[#allocation2 + $0x70] sm:$0xf] %v365_v59  ;;  %v378_v22 = vrot.slane %v376_v13, 5  ;;  %v383_v23 = vrot.slane %v381_v14, 4  ;;  %v447_v25 = vld [vmem:[%s3105_s13 + $0x24] sm:$0x1] }
  0x36   : > { %v1019_v3 = vld [vmem:[#allocation2 + $0x48] sm:$0xff]  ;;  %v373_v21 = vor.u32 %v372_v12, %v369_v11  ;;  %v386_v26 = vrot.slane %v384_v17, 5  ;;  %v392_v27 = vrot.slane %v390_v18, 5  ;;  %v2366_v31 = vrot.slane %v446_v24, 9  ;;  %v2887_v46 = vld [vmem:[%s3584_s1 + $0x150] sm:$0xff]   ;;  %v2903_v37 = vld [vmem:[%s3584_s1 + $0x180] sm:$0xff]  }
  0x37   : > { %2666 = vmatpush3.bf16.msra.mxu0 %v2872_v57  ;;  %1915 = vmatmul.mubr.bf16.gmra.mxu1 %v2869_v7  ;;  %v448_v28 = vld [vmem:[%s3105_s13 + $0x28] sm:$0xe]  ;;  %v449_v29 = vld [vmem:[%s3105_s13 + $0x2c] sm:$0x1]  ;;  %v491_v32 = vrot.slane %v447_v25, 5  ;;  %v2888_v47 = vld [vmem:[%s3584_s1 + $0x1d0] sm:$0xff]  }
  0x38   : > { %2706 = vmatpush3.bf16.msra.mxu1 %v2873_v58  ;;  %2667 = vmatprep.subr.bf16.mxu0 %v2874_v60  ;;  %v374_v30 = vrot.slane %v373_v21, 4  ;;  %v2367_v33 = vrot.slane %v448_v28, 9  ;;  %v2374_v34 = vld [vmem:[%s3105_s13 + $0x28] sm:$0xf]  ;;  %v387_v35 = vor.u32 %v386_v26, %v383_v23  ;;  %v495_v36 = vrot.slane %v449_v29, 5  ;;  %v2889_v48 = vld [vmem:[%s3584_s1 + $0x110] sm:$0xff]  }
  0x39   : > { %2707 = vmatprep.subr.bf16.mxu1 %v2875_v61  ;;  %537 = vst [vmem:[#allocation2 + $0x9c] sm:$0xf] %v2374_v34  ;;  %v492_v40 = vsel %vm3125_vm4, %v2366_v31, %v491_v32  ;;  %v2890_v49 = vld [vmem:[%s3584_s1 + $0x190] sm:$0xff]   ;;  %v282_v51 = vld [vmem:[%s3105_s13 + $0x38] sm:$0xf]  ;;  %v2896_v12 = vld [vmem:[%s3584_s1 + $0x148] sm:$0xff]  }
  0x3a   : > { %v379_v39 = vsel %vm3131_vm5, %v374_v30, %v378_v22  ;;  %v388_v41 = vrot.slane %v387_v35, 4  ;;  %v496_v42 = vsel %vm3125_vm4, %v2367_v33, %v495_v36  ;;  %517 = vst [vmem:[#allocation2 + $0x98] sm:$0xf] %v492_v40  ;;  %v281_v50 = vld [vmem:[%s3105_s13 + $0x30] sm:$0xf]  ;;  %v2897_v30 = vld [vmem:[%s3584_s1 + $0x1c8] sm:$0xff]  }
  0x3b   : > { %2668 = vmatpush3.bf16.msra.mxu0 %v2876_v62  ;;  %434 = vst [vmem:[#allocation2 + $0x94] sm:$0xf] %v379_v39  ;;  %518 = vst [vmem:[#allocation2 + $0xbc] sm:$0xf] %v496_v42  ;;  %v303_v52 = vld [vmem:[%s3105_s13 + $0x30] sm:$0xf] }
  0x3c   : > { %2708 = vmatpush3.bf16.msra.mxu1 %v2877_v63  ;;  %v1024_v15 = vld [vmem:[#allocation2 + $0x6c] sm:$0xff]  ;;  %2669 = vmatprep.subr.bf16.mxu0 %v2883_v19  ;;  %v393_v45 = vsel %vm3131_vm5, %v388_v41, %v392_v27  ;;  %289 = vst [vmem:[#allocation2 + $0xd8] sm:$0xf] %v281_v50  ;;  %290 = vst [vmem:[#allocation2 + $0xfc] sm:$0xf] %v282_v51  ;;  %v395_v57 = vshrl.u32 %v303_v52, 16 }
  0x3d   : > { %v2865_v16 = vld [vmem:[#allocation2 + $0x4c] ss:$36 sps:$4 sm:$0xff]   ;;  %v2475_v20 = vcombine.low %v1019_v3, %v1024_v15  ;;  %2709 = vmatprep.subr.bf16.mxu1 %v2884_v38  ;;  %435 = vst [vmem:[#allocation2 + $0xb8] sm:$0xf] %v393_v45  ;;  %v304_v56 = vld [vmem:[%s3105_s13 + $0x34] sm:$0x1] }
  0x3e   : > { %1849 = vmatprep.mubr.bf16.mxu0 %v2865_v16  ;;  %v398_v58 = vshll.u32 %v303_v52, 16  ;;  %v404_v61 = vshll.u32 %v304_v56, 16  ;;  %v305_v62 = vld [vmem:[%s3105_s13 + $0x38] sm:$0xf]  ;;  %v306_v63 = vld [vmem:[%s3105_s13 + $0x3c] sm:$0x1] }
  0x3f   : > { %1850 = vmatmul.mubr.bf16.gmra.mxu0 %v2475_v20  ;;  %v397_v0 = vrot.slane %v395_v57, 4  ;;  %v409_v5 = vshrl.u32 %v305_v62, 16  ;;  %v412_v6 = vshll.u32 %v305_v62, 16  ;;  %v418_v9 = vshll.u32 %v306_v63, 16  ;;  %v450_v10 = vld [vmem:[%s3105_s13 + $0x30] sm:$0xe] }
  0x40   : > { %2670 = vmatpush3.bf16.msra.mxu0 %v2885_v43  ;;  %2710 = vmatpush3.bf16.msra.mxu1 %v2886_v44  ;;  %v2880_v59 = vld [vmem:[#allocation2 + $0x9c] ss:$36 sps:$4 sm:$0xff]   ;;  %v400_v1 = vrot.slane %v398_v58, 5  ;;  %v406_v4 = vrot.slane %v404_v61, 5  ;;  %v451_v11 = vld [vmem:[%s3105_s13 + $0x34] sm:$0x1] }
  0x41   : > { %2671 = vmatprep.subr.bf16.mxu0 %v2887_v46  ;;  %2711 = vmatprep.subr.bf16.mxu1 %v2888_v47  ;;  %v411_v13 = vrot.slane %v409_v5, 4  ;;  %v414_v14 = vrot.slane %v412_v6, 5  ;;  %v452_v15 = vld [vmem:[%s3105_s13 + $0x38] sm:$0xe]  ;;  %v453_v16 = vld [vmem:[%s3105_s13 + $0x3c] sm:$0x1] }
  0x42   : > { %v1029_v53 = vld [vmem:[#allocation2 + $0x90] sm:$0xff]  ;;  %v2882_v60 = vld [vmem:[#allocation2 + $0x98] ss:$36 sps:$4 sm:$0xff]   ;;  %1922 = vmatprep.mubr.bf16.mxu1 %v2880_v59  ;;  %v401_v8 = vor.u32 %v400_v1, %v397_v0  ;;  %v420_v18 = vrot.slane %v418_v9, 5  ;;  %v2368_v19 = vrot.slane %v450_v10, 9  ;;  %v499_v20 = vrot.slane %v451_v11, 5 }
  0x43   : > { %1923 = vmatmul.mubr.bf16.gmra.mxu1 %v2882_v60  ;;  %v2376_v21 = vld [vmem:[%s3105_s13 + $0x38] sm:$0xf]  ;;  %v415_v22 = vor.u32 %v414_v14, %v411_v13  ;;  %v2369_v23 = vrot.slane %v452_v15, 9  ;;  %v503_v24 = vrot.slane %v453_v16, 5  ;;  %v2377_v25 = vld [vmem:[%s3105_s13 + $0x40] sm:$0xf] }
  0x44   : > { %2672 = vmatpush3.bf16.msra.mxu0 %v2889_v48  ;;  %2712 = vmatpush3.bf16.msra.mxu1 %v2890_v49  ;;  %v1034_v2 = vld [vmem:[#allocation2 + $0xb4] sm:$0xff]  ;;  %v402_v17 = vrot.slane %v401_v8, 4  ;;  %539 = vst [vmem:[#allocation2 + $0xe4] sm:$0xf] %v2376_v21  ;;  %v500_v27 = vsel %vm3125_vm4, %v2368_v19, %v499_v20  ;;  %540 = vst [vmem:[#allocation2 + $0x108] sm:$0xf] %v2377_v25 }
  0x45   : > { %v2878_v3 = vld [vmem:[#allocation2 + $0x94] ss:$36 sps:$4 sm:$0xff]   ;;  %v2484_v7 = vcombine.low %v1029_v53, %v1034_v2  ;;  %2673 = vmatprep.subr.bf16.mxu0 %v2896_v12  ;;  %v416_v28 = vrot.slane %v415_v22, 4  ;;  %v504_v29 = vsel %vm3125_vm4, %v2369_v23, %v503_v24  ;;  %519 = vst [vmem:[#allocation2 + $0xe0] sm:$0xf] %v500_v27  ;;  %v2898_v31 = vld [vmem:[%s3584_s1 + $0x108] sm:$0xff]   ;;  %2713 = vmatprep.subr.bf16.mxu1 %v2897_v30 }
  0x46   : > { %1857 = vmatprep.mubr.bf16.mxu0 %v2878_v3  ;;  %v407_v26 = vsel %vm3131_vm5, %v402_v17, %v406_v4  ;;  %520 = vst [vmem:[#allocation2 + $0x104] sm:$0xf] %v504_v29  ;;  %v2899_v33 = vld [vmem:[%s3584_s1 + $0x188] sm:$0xff]   ;;  %v2900_v34 = vld [vmem:[%s3584_s1 + $0x140] sm:$0xff]   ;;  %v2380_v41 = vld [vmem:[%s3105_s13 + $0x10] sm:$0xf] }
  0x47   : > { %1858 = vmatmul.mubr.bf16.gmra.mxu0 %v2484_v7  ;;  %436 = vst [vmem:[#allocation2 + $0xdc] sm:$0xf] %v407_v26  ;;  %v421_v32 = vsel %vm3131_vm5, %v416_v28, %v420_v18  ;;  %v2901_v35 = vld [vmem:[%s3584_s1 + $0x1c0] sm:$0xff]   ;;  %v2378_v38 = vld [vmem:[%s3105_s13 + $0x8] sm:$0xf]  ;;  %v572_v50 = vshrl.u32 %v2380_v41, 16 }
  0x48   : > { %437 = vst [vmem:[#allocation2 + $0x100] sm:$0xf] %v421_v32  ;;  %2674 = vmatpush3.bf16.msra.mxu0 %v2898_v31  ;;  %2714 = vmatpush3.bf16.msra.mxu1 %v2899_v33  ;;  %v2902_v36 = vld [vmem:[%s3584_s1 + $0x100] sm:$0xff]   ;;  %v2379_v39 = vld [vmem:[%s3105_s13 + $0xc] sm:$0x1]  ;;  %v558_v42 = vshrl.u32 %v2378_v38, 16 }
  0x49   : > { %2675 = vmatprep.subr.bf16.mxu0 %v2900_v34  ;;  %2715 = vmatprep.subr.bf16.mxu1 %v2901_v35  ;;  %v561_v43 = vshll.u32 %v2378_v38, 16  ;;  %v567_v46 = vshll.u32 %v2379_v39, 16  ;;  %v2381_v47 = vld [vmem:[%s3105_s13 + $0x14] sm:$0x1]  ;;  %v575_v51 = vshll.u32 %v2380_v41, 16  ;;  %v3308_v58 = vld [vmem:[%s3584_s1 + $0x238] sm:$0xff]  }
  0x4a   : > { %v560_v48 = vrot.slane %v558_v42, 4  ;;  %v581_v57 = vshll.u32 %v2381_v47, 16  ;;  %v574_v61 = vrot.slane %v572_v50, 4  ;;  %v2394_v63 = vld [vmem:[%s3105_s13 + $0x8] sm:$0xe] }
  0x4b   : > { %v2893_v44 = vld [vmem:[#allocation2 + $0xe4] ss:$36 sps:$4 sm:$0xff]   ;;  %v563_v49 = vrot.slane %v561_v43, 5  ;;  %v569_v56 = vrot.slane %v567_v46, 5  ;;  %v577_v62 = vrot.slane %v575_v51, 5  ;;  %v2410_v4 = vrot.slane %v2394_v63, 9 }
  0x4c   : > { %2676 = vmatpush3.bf16.msra.mxu0 %v2902_v36  ;;  %2716 = vmatpush3.bf16.msra.mxu1 %v2903_v37  ;;  %v2395_v0 = vld [vmem:[%s3105_s13 + $0xc] sm:$0x1]  ;;  %v583_v1 = vrot.slane %v581_v57, 5  ;;  %v2396_v2 = vld [vmem:[%s3105_s13 + $0x10] sm:$0xe] }
  0x4d   : > { %v2895_v45 = vld [vmem:[#allocation2 + $0xe0] ss:$36 sps:$4 sm:$0xff]   ;;  %1930 = vmatprep.mubr.bf16.mxu1 %v2893_v44  ;;  %v564_v60 = vor.u32 %v563_v49, %v560_v48  ;;  %v2397_v3 = vld [vmem:[%s3105_s13 + $0x14] sm:$0x1]  ;;  %2753 = vmatprep.subr.bf16.mxu0 %v3308_v58  ;;  %v578_v6 = vor.u32 %v577_v62, %v574_v61  ;;  %v719_v7 = vrot.slane %v2395_v0, 5  ;;  %v2411_v8 = vrot.slane %v2396_v2, 9 }
  0x4e   : > { %v1039_v40 = vld [vmem:[#allocation2 + $0xd8] sm:$0xff]  ;;  %1931 = vmatmul.mubr.bf16.gmra.mxu1 %v2895_v45  ;;  %v2418_v9 = vld [vmem:[%s3105_s13 + $0x10] sm:$0xf]  ;;  %2777 = vmatprep.subr.bf16.mxu1 %v3308_v58  ;;  %v723_v10 = vrot.slane %v2397_v3, 5  ;;  %v2427_v16 = vld [vmem:[%s3105_s13 + $0x14] sm:$0x1] }
  0x4f   : > { %v1044_v52 = vld [vmem:[#allocation2 + $0xfc] sm:$0xff]  ;;  %v565_v5 = vrot.slane %v564_v60, 4  ;;  %v2419_v11 = vld [vmem:[%s3105_s13 + $0x18] sm:$0xf]  ;;  %777 = vst [vmem:[#allocation2 + $0x18] sm:$0xf] %v2418_v9  ;;  %v720_v15 = vsel %vm3125_vm4, %v2410_v4, %v719_v7 }
  0x50   : > { %v2891_v53 = vld [vmem:[#allocation2 + $0xdc] ss:$36 sps:$4 sm:$0xff]   ;;  %v2493_v59 = vcombine.low %v1039_v40, %v1044_v52  ;;  %v2426_v12 = vld [vmem:[%s3105_s13 + $0x10] sm:$0xf]  ;;  %v579_v14 = vrot.slane %v578_v6, 4  ;;  %v724_v19 = vsel %vm3125_vm4, %v2411_v8, %v723_v10  ;;  %v811_v22 = vshll.u32 %v2427_v16, 16 }
  0x51   : > { %1865 = vmatprep.mubr.bf16.mxu0 %v2891_v53  ;;  %v570_v13 = vsel %vm3131_vm5, %v565_v5, %v569_v56  ;;  %778 = vst [vmem:[#allocation2 + $0x3c] sm:$0xf] %v2419_v11  ;;  %v2428_v17 = vld [vmem:[%s3105_s13 + $0x18] sm:$0xf]  ;;  %v802_v18 = vshrl.u32 %v2426_v12, 16  ;;  %v805_v21 = vshll.u32 %v2426_v12, 16 }
  0x52   : > { %1866 = vmatmul.mubr.bf16.gmra.mxu0 %v2493_v59  ;;  %677 = vst [vmem:[#allocation2 + $0x10] sm:$0xf] %v570_v13  ;;  %757 = vst [vmem:[#allocation2 + $0x14] sm:$0xf] %v720_v15  ;;  %v2429_v20 = vld [vmem:[%s3105_s13 + $0x1c] sm:$0x1]  ;;  %v584_v24 = vsel %vm3131_vm5, %v579_v14, %v583_v1 }
  0x53   : > { %v816_v23 = vshrl.u32 %v2428_v17, 16  ;;  %758 = vst [vmem:[#allocation2 + $0x38] sm:$0xf] %v724_v19  ;;  %v804_v25 = vrot.slane %v802_v18, 4  ;;  %v819_v26 = vshll.u32 %v2428_v17, 16  ;;  %v825_v27 = vshll.u32 %v2429_v20, 16 }
  0x54   : > { %678 = vst [vmem:[#allocation2 + $0x34] sm:$0xf] %v584_v24  ;;  %v807_v28 = vrot.slane %v805_v21, 5  ;;  %v813_v29 = vrot.slane %v811_v22, 5  ;;  %v2382_v34 = vld [vmem:[%s3105_s13 + $0x18] sm:$0xf] }
  0x55   : > { %v818_v30 = vrot.slane %v816_v23, 4  ;;  %v821_v31 = vrot.slane %v819_v26, 5  ;;  %v827_v32 = vrot.slane %v825_v27, 5  ;;  %v2383_v35 = vld [vmem:[%s3105_s13 + $0x1c] sm:$0x1]  ;;  %v586_v39 = vshrl.u32 %v2382_v34, 16 }
  0x56   : > { %v808_v33 = vor.u32 %v807_v28, %v804_v25  ;;  %v2384_v36 = vld [vmem:[%s3105_s13 + $0x20] sm:$0xf]  ;;  %v2385_v38 = vld [vmem:[%s3105_s13 + $0x24] sm:$0x1]  ;;  %v589_v40 = vshll.u32 %v2382_v34, 16  ;;  %v595_v41 = vshll.u32 %v2383_v35, 16 }
  0x57   : > { %v822_v37 = vor.u32 %v821_v31, %v818_v30  ;;  %v600_v43 = vshrl.u32 %v2384_v36, 16  ;;  %v603_v44 = vshll.u32 %v2384_v36, 16  ;;  %v609_v45 = vshll.u32 %v2385_v38, 16  ;;  %v2398_v46 = vld [vmem:[%s3105_s13 + $0x18] sm:$0xe]  ;;  %v3340_v51 = vld [vmem:[%s3584_s1 + $0x230] sm:$0xff]  }
  0x58   : > { %v809_v42 = vrot.slane %v808_v33, 4  ;;  %v588_v48 = vrot.slane %v586_v39, 4  ;;  %v591_v49 = vrot.slane %v589_v40, 5  ;;  %v597_v52 = vrot.slane %v595_v41, 5  ;;  %v2399_v57 = vld [vmem:[%s3105_s13 + $0x1c] sm:$0x1] }
  0x59   : > { %v823_v47 = vrot.slane %v822_v37, 4  ;;  %v602_v53 = vrot.slane %v600_v43, 4  ;;  %v605_v56 = vrot.slane %v603_v44, 5  ;;  %v2412_v63 = vrot.slane %v2398_v46, 9  ;;  %v2400_v2 = vld [vmem:[%s3105_s13 + $0x20] sm:$0xe] }
  0x5a   : > { %v814_v50 = vsel %vm3131_vm5, %v809_v42, %v813_v29  ;;  %v2906_v60 = vld [vmem:[#allocation2 + $0x14] ss:$36 sps:$4 sm:$0xff]   ;;  %v592_v62 = vor.u32 %v591_v49, %v588_v48  ;;  %v611_v1 = vrot.slane %v609_v45, 5  ;;  %v2401_v3 = vld [vmem:[%s3105_s13 + $0x24] sm:$0x1]  ;;  %v727_v4 = vrot.slane %v2399_v57, 5 }
  0x5b   : > { %v2904_v59 = vld [vmem:[#allocation2 + $0x10] ss:$36 sps:$4 sm:$0xff]   ;;  %v828_v61 = vsel %vm3131_vm5, %v823_v47, %v827_v32  ;;  %921 = vst [vmem:[#allocation2 + $0x1c] sm:$0xf] %v814_v50  ;;  %v606_v0 = vor.u32 %v605_v56, %v602_v53  ;;  %1971 = vmatprep.mubr.bf16.mxu0 %v2906_v60  ;;  %v2413_v6 = vrot.slane %v2400_v2, 9  ;;  %v731_v7 = vrot.slane %v2401_v3, 5 }
  0x5c   : > { %922 = vst [vmem:[#allocation2 + $0x40] sm:$0xf] %v828_v61  ;;  %v593_v5 = vrot.slane %v592_v62, 4  ;;  %v2420_v8 = vld [vmem:[%s3105_s13 + $0x20] sm:$0xf]  ;;  %1972 = vmatmul.mubr.bf16.vlgmr.msra.gmra.mxu0 %v2904_v59  ;;  %v728_v10 = vsel %vm3125_vm4, %v2412_v63, %v727_v4  ;;  %v3366_v22 = vld [vmem:[%s3584_s1 + $0x228] sm:$0xff]  }
  0x5d   : > { %v607_v9 = vrot.slane %v606_v0, 4  ;;  %v2421_v11 = vld [vmem:[%s3105_s13 + $0x28] sm:$0xf]  ;;  %779 = vst [vmem:[#allocation2 + $0x60] sm:$0xf] %v2420_v8  ;;  %2754 = vmatpush3.bf16.msra.mxu0 %v3308_v58  ;;  %v732_v14 = vsel %vm3125_vm4, %v2413_v6, %v731_v7  ;;  %v3371_v29 = vld [vmem:[%s3584_s1 + $0x220] sm:$0xff]  }
  0x5e   : > { %v2430_v12 = vld [vmem:[%s3105_s13 + $0x20] sm:$0xf]  ;;  %v598_v13 = vsel %vm3131_vm5, %v593_v5, %v597_v52  ;;  %759 = vst [vmem:[#allocation2 + $0x5c] sm:$0xf] %v728_v10  ;;  %780 = vst [vmem:[#allocation2 + $0x84] sm:$0xf] %v2421_v11  ;;  %2755 = vmatprep.subr.bf16.mxu0 %v3340_v51 }
  0x5f   : > { %v2431_v15 = vld [vmem:[%s3105_s13 + $0x24] sm:$0x1]  ;;  %v2432_v16 = vld [vmem:[%s3105_s13 + $0x28] sm:$0xf]  ;;  %v2433_v17 = vld [vmem:[%s3105_s13 + $0x2c] sm:$0x1]  ;;  %v612_v18 = vsel %vm3131_vm5, %v607_v9, %v611_v1 }
  0x60   : > { %679 = vst [vmem:[#allocation2 + $0x58] sm:$0xf] %v598_v13  ;;  %760 = vst [vmem:[#allocation2 + $0x80] sm:$0xf] %v732_v14  ;;  %v830_v19 = vshrl.u32 %v2430_v12, 16  ;;  %v833_v20 = vshll.u32 %v2430_v12, 16 }
  0x61   : > { %v839_v21 = vshll.u32 %v2431_v15, 16  ;;  %680 = vst [vmem:[#allocation2 + $0x7c] sm:$0xf] %v612_v18  ;;  %v844_v23 = vshrl.u32 %v2432_v16, 16  ;;  %v847_v24 = vshll.u32 %v2432_v16, 16  ;;  %v853_v25 = vshll.u32 %v2433_v17, 16  ;;  %2756 = vmatpush3.bf16.msra.mxu0 %v3340_v51 }
  0x62   : > { %v832_v26 = vrot.slane %v830_v19, 4  ;;  %v835_v27 = vrot.slane %v833_v20, 5  ;;  %v2907_v30 = vld [vmem:[#allocation2 + $0x18] ss:$36 sps:$4 sm:$0xff]   ;;  %2757 = vmatprep.subr.bf16.mxu0 %v3366_v22  ;;  %v2386_v36 = vld [vmem:[%s3105_s13 + $0x28] sm:$0xf] }
  0x63   : > { %v841_v28 = vrot.slane %v839_v21, 5  ;;  %v2909_v31 = vld [vmem:[#allocation2 + $0x1c] ss:$36 sps:$4 sm:$0xff]   ;;  %v846_v32 = vrot.slane %v844_v23, 4  ;;  %v849_v34 = vrot.slane %v847_v24, 5  ;;  %v855_v35 = vrot.slane %v853_v25, 5 }
  0x64   : > { %v836_v33 = vor.u32 %v835_v27, %v832_v26  ;;  %2036 = vmatprep.mubr.bf16.mxu1 %v2909_v31  ;;  %v2387_v37 = vld [vmem:[%s3105_s13 + $0x2c] sm:$0x1]  ;;  %v2388_v38 = vld [vmem:[%s3105_s13 + $0x30] sm:$0xf]  ;;  %v2389_v39 = vld [vmem:[%s3105_s13 + $0x34] sm:$0x1] }
  0x65   : > { %2037 = vmatmul.mubr.bf16.vlgmr.msra.gmra.mxu1 %v2907_v30  ;;  %v850_v41 = vor.u32 %v849_v34, %v846_v32  ;;  %v614_v42 = vshrl.u32 %v2386_v36, 16  ;;  %v617_v43 = vshll.u32 %v2386_v36, 16  ;;  %v2402_v44 = vld [vmem:[%s3105_s13 + $0x28] sm:$0xe]  ;;  %2758 = vmatpush3.bf16.msra.mxu0 %v3366_v22  ;;  %v623_v46 = vshll.u32 %v2387_v37, 16  ;;  %v3390_v0 = vld [vmem:[%s3584_s1 + $0x218] sm:$0xff]  }
  0x66   : > { %v837_v40 = vrot.slane %v836_v33, 4  ;;  %2785 = vmatpush3.bf16.msra.mxu1 %v3308_v58  ;;  %v628_v47 = vshrl.u32 %v2388_v38, 16  ;;  %v631_v48 = vshll.u32 %v2388_v38, 16  ;;  %v637_v49 = vshll.u32 %v2389_v39, 16  ;;  %2759 = vmatprep.subr.bf16.mxu0 %v3371_v29  ;;  %v2403_v63 = vld [vmem:[%s3105_s13 + $0x2c] sm:$0x1] }
  0x67   : > { %v1021_v45 = vld [vmem:[#allocation2 + $0x58] sm:$0xff]  ;;  %2778 = vmatprep.subr.bf16.mxu1 %v3340_v51  ;;  %v851_v56 = vrot.slane %v850_v41, 4  ;;  %v616_v58 = vrot.slane %v614_v42, 4  ;;  %v619_v57 = vrot.slane %v617_v43, 5  ;;  %v625_v60 = vrot.slane %v623_v46, 5 }
  0x68   : > { %v1026_v50 = vld [vmem:[#allocation2 + $0x7c] sm:$0xff]  ;;  %v842_v53 = vsel %vm3131_vm5, %v837_v40, %v841_v28  ;;  %v630_v61 = vrot.slane %v628_v47, 4  ;;  %v633_v62 = vrot.slane %v631_v48, 5  ;;  %v639_v3 = vrot.slane %v637_v49, 5  ;;  %v2404_v4 = vld [vmem:[%s3105_s13 + $0x30] sm:$0xe] }
  0x69   : > { %v2912_v52 = vld [vmem:[#allocation2 + $0x5c] ss:$36 sps:$4 sm:$0xff]   ;;  %923 = vst [vmem:[#allocation2 + $0x64] sm:$0xf] %v842_v53  ;;  %v2479_v59 = vcombine.low %v1021_v45, %v1026_v50  ;;  %v856_v1 = vsel %vm3131_vm5, %v851_v56, %v855_v35  ;;  %v620_v2 = vor.u32 %v619_v57, %v616_v58  ;;  %v2405_v5 = vld [vmem:[%s3105_s13 + $0x34] sm:$0x1]  ;;  %2760 = vmatpush3.bf16.msra.mxu0 %v3371_v29 }
  0x6a   : > { %1979 = vmatprep.mubr.bf16.mxu0 %v2912_v52  ;;  %v2414_v6 = vrot.slane %v2402_v44, 9  ;;  %2786 = vmatpush3.bf16.msra.mxu1 %v3340_v51  ;;  %924 = vst [vmem:[#allocation2 + $0x88] sm:$0xf] %v856_v1  ;;  %v634_v7 = vor.u32 %v633_v62, %v630_v61  ;;  %v735_v8 = vrot.slane %v2403_v63, 5  ;;  %v2415_v9 = vrot.slane %v2404_v4, 9  ;;  %v3405_v51 = vld [vmem:[%s3584_s1 + $0x210] sm:$0xff]  }
  0x6b   : > { %1980 = vmatmul.mubr.bf16.gmra.mxu0 %v2479_v59  ;;  %v739_v10 = vrot.slane %v2405_v5, 5  ;;  %v2422_v11 = vld [vmem:[%s3105_s13 + $0x30] sm:$0xf]  ;;  %2779 = vmatprep.subr.bf16.mxu1 %v3366_v22  ;;  %v621_v12 = vrot.slane %v620_v2, 4  ;;  %v2423_v13 = vld [vmem:[%s3105_s13 + $0x38] sm:$0xf] }
  0x6c   : > { %781 = vst [vmem:[#allocation2 + $0xa8] sm:$0xf] %v2422_v11  ;;  %v2434_v14 = vld [vmem:[%s3105_s13 + $0x30] sm:$0xf]  ;;  %v635_v15 = vrot.slane %v634_v7, 4  ;;  %v736_v16 = vsel %vm3125_vm4, %v2414_v6, %v735_v8  ;;  %2761 = vmatprep.subr.bf16.mxu0 %v3390_v0  ;;  %v3437_v49 = vld [vmem:[%s3584_s1 + $0x200] sm:$0xff]  }
  0x6d   : > { %v740_v17 = vsel %vm3125_vm4, %v2415_v9, %v739_v10  ;;  %782 = vst [vmem:[#allocation2 + $0xcc] sm:$0xf] %v2423_v13  ;;  %v2435_v18 = vld [vmem:[%s3105_s13 + $0x34] sm:$0x1]  ;;  %v2436_v19 = vld [vmem:[%s3105_s13 + $0x38] sm:$0xf]  ;;  %v626_v21 = vsel %vm3131_vm5, %v621_v12, %v625_v60  ;;  %2762 = vmatpush3.bf16.msra.mxu0 %v3390_v0 }
  0x6e   : > { %v858_v20 = vshrl.u32 %v2434_v14, 16  ;;  %761 = vst [vmem:[#allocation2 + $0xa4] sm:$0xf] %v736_v16  ;;  %762 = vst [vmem:[#allocation2 + $0xc8] sm:$0xf] %v740_v17  ;;  %v861_v24 = vshll.u32 %v2434_v14, 16  ;;  %2787 = vmatpush3.bf16.msra.mxu1 %v3366_v22  ;;  %v640_v27 = vsel %vm3131_vm5, %v635_v15, %v639_v3  ;;  %2763 = vmatprep.subr.bf16.mxu0 %v3405_v51 }
  0x6f   : > { %v2437_v23 = vld [vmem:[%s3105_s13 + $0x3c] sm:$0x1]  ;;  %v867_v25 = vshll.u32 %v2435_v18, 16  ;;  %v872_v26 = vshrl.u32 %v2436_v19, 16  ;;  %681 = vst [vmem:[#allocation2 + $0xa0] sm:$0xf] %v626_v21  ;;  %2780 = vmatprep.subr.bf16.mxu1 %v3371_v29 }
  0x70   : > { %v860_v28 = vrot.slane %v858_v20, 4  ;;  %v875_v30 = vshll.u32 %v2436_v19, 16  ;;  %v881_v31 = vshll.u32 %v2437_v23, 16  ;;  %682 = vst [vmem:[#allocation2 + $0xc4] sm:$0xf] %v640_v27  ;;  %v863_v32 = vrot.slane %v861_v24, 5 }
  0x71   : > { %v874_v33 = vrot.slane %v872_v26, 4  ;;  %v3425_v22 = vld [vmem:[%s3584_s1 + $0x208] sm:$0xff]   ;;  %v869_v34 = vrot.slane %v867_v25, 5  ;;  %v2916_v37 = vld [vmem:[#allocation2 + $0x60] ss:$36 sps:$4 sm:$0xff]   ;;  %2764 = vmatpush3.bf16.msra.mxu0 %v3405_v51 }
  0x72   : > { %v877_v35 = vrot.slane %v875_v30, 5  ;;  %v2914_v36 = vld [vmem:[#allocation2 + $0x64] ss:$36 sps:$4 sm:$0xff]   ;;  %v864_v38 = vor.u32 %v863_v32, %v860_v28  ;;  %v883_v39 = vrot.slane %v881_v31, 5  ;;  %2788 = vmatpush3.bf16.msra.mxu1 %v3371_v29  ;;  %v2390_v41 = vld [vmem:[%s3105_s13 + $0x38] sm:$0xf]  ;;  %2765 = vmatprep.subr.bf16.mxu0 %v3425_v22 }
  0x73   : > { %v2391_v42 = vld [vmem:[%s3105_s13 + $0x3c] sm:$0x1]  ;;  %v2392_v43 = vld [vmem:[%s3105_s13 + $0x40] sm:$0xf]  ;;  %2044 = vmatprep.mubr.bf16.mxu1 %v2914_v36  ;;  %2781 = vmatprep.subr.bf16.mxu1 %v3390_v0  ;;  %v2393_v45 = vld [vmem:[%s3105_s13 + $0x44] sm:$0x1] }
  0x74   : > { %v878_v40 = vor.u32 %v877_v35, %v874_v33  ;;  %v865_v44 = vrot.slane %v864_v38, 4  ;;  %v642_v46 = vshrl.u32 %v2390_v41, 16  ;;  %v645_v47 = vshll.u32 %v2390_v41, 16  ;;  %2045 = vmatmul.mubr.bf16.gmra.mxu1 %v2916_v37  ;;  %v2406_v56 = vld [vmem:[%s3105_s13 + $0x38] sm:$0xe] }
  0x75   : > { %v651_v48 = vshll.u32 %v2391_v42, 16  ;;  %v656_v50 = vshrl.u32 %v2392_v43, 16  ;;  %v659_v52 = vshll.u32 %v2392_v43, 16  ;;  %v665_v53 = vshll.u32 %v2393_v45, 16  ;;  %v2407_v62 = vld [vmem:[%s3105_s13 + $0x3c] sm:$0x1]  ;;  %2766 = vmatpush3.bf16.msra.mxu0 %v3425_v22 }
  0x76   : > { %v879_v29 = vrot.slane %v878_v40, 4  ;;  %v1031_v58 = vld [vmem:[#allocation2 + $0xa0] sm:$0xff]  ;;  %v870_v57 = vsel %vm3131_vm5, %v865_v44, %v869_v34  ;;  %v644_v59 = vrot.slane %v642_v46, 4  ;;  %v647_v60 = vrot.slane %v645_v47, 5  ;;  %2789 = vmatpush3.bf16.msra.mxu1 %v3390_v0  ;;  %v2425_v15 = vld [vmem:[%s3105_s13 + $0x48] sm:$0xf]  ;;  %2767 = vmatprep.subr.bf16.mxu0 %v3437_v49 }
  0x77   : > { %v653_v61 = vrot.slane %v651_v48, 5  ;;  %v1036_v63 = vld [vmem:[#allocation2 + $0xc4] sm:$0xff]  ;;  %925 = vst [vmem:[#allocation2 + $0xac] sm:$0xf] %v870_v57  ;;  %v658_v3 = vrot.slane %v656_v50, 4  ;;  %v661_v4 = vrot.slane %v659_v52, 5  ;;  %2782 = vmatprep.subr.bf16.mxu1 %v3405_v51 }
  0x78   : > { %v2919_v1 = vld [vmem:[#allocation2 + $0xa4] ss:$36 sps:$4 sm:$0xff]   ;;  %v884_v2 = vsel %vm3131_vm5, %v879_v29, %v883_v39  ;;  %v667_v5 = vrot.slane %v665_v53, 5  ;;  %v2488_v6 = vcombine.low %v1031_v58, %v1036_v63  ;;  %v648_v7 = vor.u32 %v647_v60, %v644_v59  ;;  %v2408_v8 = vld [vmem:[%s3105_s13 + $0x40] sm:$0xe] }
  0x79   : > { %926 = vst [vmem:[#allocation2 + $0xd0] sm:$0xf] %v884_v2  ;;  %v2409_v9 = vld [vmem:[%s3105_s13 + $0x44] sm:$0x1]  ;;  %v2416_v10 = vrot.slane %v2406_v56, 9  ;;  %v743_v11 = vrot.slane %v2407_v62, 5  ;;  %1987 = vmatprep.mubr.bf16.mxu0 %v2919_v1  ;;  %v662_v12 = vor.u32 %v661_v4, %v658_v3  ;;  %2768 = vmatpush3.bf16.msra.mxu0 %v3437_v49 }
  0x7a   : > { %v2417_v13 = vrot.slane %v2408_v8, 9  ;;  %v747_v0 = vrot.slane %v2409_v9, 5  ;;  %v2424_v14 = vld [vmem:[%s3105_s13 + $0x40] sm:$0xf]  ;;  %1988 = vmatmul.mubr.bf16.gmra.mxu0 %v2488_v6  ;;  %v649_v16 = vrot.slane %v648_v7, 4  ;;  %2790 = vmatpush3.bf16.msra.mxu1 %v3405_v51 }
  0x7b   : > { %v744_v17 = vsel %vm3125_vm4, %v2416_v10, %v743_v11  ;;  %783 = vst [vmem:[#allocation2 + $0xf0] sm:$0xf] %v2424_v14  ;;  %784 = vst [vmem:[#allocation2 + $0x114] sm:$0xf] %v2425_v15  ;;  %v2438_v18 = vld [vmem:[%s3105_s13 + $0x40] sm:$0xf]  ;;  %2783 = vmatprep.subr.bf16.mxu1 %v3425_v22 }
  0x7c   : > { %v2439_v19 = vld [vmem:[%s3105_s13 + $0x44] sm:$0x1]  ;;  %v663_v20 = vrot.slane %v662_v12, 4  ;;  %v748_v21 = vsel %vm3125_vm4, %v2417_v13, %v747_v0  ;;  %763 = vst [vmem:[#allocation2 + $0xec] sm:$0xf] %v744_v17  ;;  %v886_v25 = vshrl.u32 %v2438_v18, 16  ;;  %v654_v26 = vsel %vm3131_vm5, %v649_v16, %v653_v61 }
  0x7d   : > { %v2440_v23 = vld [vmem:[%s3105_s13 + $0x48] sm:$0xf]  ;;  %v2441_v24 = vld [vmem:[%s3105_s13 + $0x4c] sm:$0x1]  ;;  %764 = vst [vmem:[#allocation2 + $0x110] sm:$0xf] %v748_v21 }
  0x7e   : > { %v889_v27 = vshll.u32 %v2438_v18, 16  ;;  %v895_v28 = vshll.u32 %v2439_v19, 16  ;;  %v900_v30 = vshrl.u32 %v2440_v23, 16  ;;  %v668_v51 = vsel %vm3131_vm5, %v663_v20, %v667_v5  ;;  %683 = vst [vmem:[#allocation2 + $0xe8] sm:$0xf] %v654_v26  ;;  %2791 = vmatpush3.bf16.msra.mxu1 %v3425_v22 }
  0x7f   : > { %v888_v31 = vrot.slane %v886_v25, 4  ;;  %v903_v32 = vshll.u32 %v2440_v23, 16  ;;  %v909_v33 = vshll.u32 %v2441_v24, 16  ;;  %684 = vst [vmem:[#allocation2 + $0x10c] sm:$0xf] %v668_v51  ;;  %2784 = vmatprep.subr.bf16.mxu1 %v3437_v49 }
  0x80   : > { %v891_v34 = vrot.slane %v889_v27, 5  ;;  %v902_v35 = vrot.slane %v900_v30, 4  ;;  %v2921_v36 = vld [vmem:[#allocation2 + $0xac] ss:$36 sps:$4 sm:$0xff]   ;;  %v897_v40 = vrot.slane %v895_v28, 5 }
  0x81   : > { %v2923_v37 = vld [vmem:[#allocation2 + $0xa8] ss:$36 sps:$4 sm:$0xff]   ;;  %v905_v38 = vrot.slane %v903_v32, 5  ;;  %v911_v41 = vrot.slane %v909_v33, 5  ;;  %v2442_v42 = vld [vmem:[%s3105_s13 + $0x10] sm:$0xe]  ;;  %2052 = vmatprep.mubr.bf16.mxu1 %v2921_v36 }
  0x82   : > { %v892_v39 = vor.u32 %v891_v34, %v888_v31  ;;  %v2443_v44 = vld [vmem:[%s3105_s13 + $0x14] sm:$0x1]  ;;  %v2444_v45 = vld [vmem:[%s3105_s13 + $0x18] sm:$0xe]  ;;  %v2445_v46 = vld [vmem:[%s3105_s13 + $0x1c] sm:$0x1]  ;;  %2053 = vmatmul.mubr.bf16.gmra.mxu1 %v2923_v37 }
  0x83   : > { %v906_v43 = vor.u32 %v905_v38, %v902_v35  ;;  %v2458_v48 = vrot.slane %v2442_v42, 9  ;;  %v963_v29 = vrot.slane %v2443_v44, 5  ;;  %v2459_v22 = vrot.slane %v2444_v45, 9  ;;  %v2450_v50 = vld [vmem:[%s3105_s13 + $0x30] sm:$0xe]  ;;  %2792 = vmatpush3.bf16.msra.mxu1 %v3437_v49 }
  0x84   : > { %v893_v47 = vrot.slane %v892_v39, 4  ;;  %v967_v53 = vrot.slane %v2445_v46, 5  ;;  %v2451_v56 = vld [vmem:[%s3105_s13 + $0x34] sm:$0x1]  ;;  %v2452_v58 = vld [vmem:[%s3105_s13 + $0x38] sm:$0xe] }
  0x85   : > { %v907_v52 = vrot.slane %v906_v43, 4  ;;  %v1041_v57 = vld [vmem:[#allocation2 + $0xe8] sm:$0xff]  ;;  %v964_v60 = vsel %vm3125_vm4, %v2458_v48, %v963_v29  ;;  %v2453_v61 = vld [vmem:[%s3105_s13 + $0x3c] sm:$0x1]  ;;  %v2462_v62 = vrot.slane %v2450_v50, 9  ;;  %v979_v63 = vrot.slane %v2451_v56, 5 }
  0x86   : > { %v898_v59 = vsel %vm3131_vm5, %v893_v47, %v897_v40  ;;  %v1046_v1 = vld [vmem:[#allocation2 + $0x10c] sm:$0xff]  ;;  %v968_v3 = vsel %vm3125_vm4, %v2459_v22, %v967_v53  ;;  %1001 = vst [vmem:[#allocation2 + $0x20] sm:$0xf] %v964_v60  ;;  %v2463_v4 = vrot.slane %v2452_v58, 9  ;;  %v983_v5 = vrot.slane %v2453_v61, 5 }
  0x87   : > { %v2926_v2 = vld [vmem:[#allocation2 + $0xec] ss:$36 sps:$4 sm:$0xff]   ;;  %v912_v49 = vsel %vm3131_vm5, %v907_v52, %v911_v41  ;;  %927 = vst [vmem:[#allocation2 + $0xf4] sm:$0xf] %v898_v59  ;;  %v2497_v6 = vcombine.low %v1041_v57, %v1046_v1  ;;  %1002 = vst [vmem:[#allocation2 + $0x44] sm:$0xf] %v968_v3  ;;  %v980_v7 = vsel %vm3125_vm4, %v2462_v62, %v979_v63 }
  0x88   : > { %928 = vst [vmem:[#allocation2 + $0x118] sm:$0xf] %v912_v49  ;;  %v2446_v8 = vld [vmem:[%s3105_s13 + $0x20] sm:$0xe]  ;;  %v2447_v55 = vld [vmem:[%s3105_s13 + $0x24] sm:$0x1]  ;;  %1995 = vmatprep.mubr.bf16.mxu0 %v2926_v2  ;;  %v984_v10 = vsel %vm3125_vm4, %v2463_v4, %v983_v5 }
  0x89   : > { %v2448_v9 = vld [vmem:[%s3105_s13 + $0x28] sm:$0xe]  ;;  %1005 = vst [vmem:[#allocation2 + $0xb0] sm:$0xf] %v980_v7  ;;  %v2449_v11 = vld [vmem:[%s3105_s13 + $0x2c] sm:$0x1]  ;;  %1996 = vmatmul.mubr.bf16.gmra.mxu0 %v2497_v6 }
  0x8a   : > { %v2460_v12 = vrot.slane %v2446_v8, 9  ;;  %v971_v13 = vrot.slane %v2447_v55, 5  ;;  %v2461_v0 = vrot.slane %v2448_v9, 9  ;;  %1006 = vst [vmem:[#allocation2 + $0xd4] sm:$0xf] %v984_v10  ;;  %v975_v14 = vrot.slane %v2449_v11, 5 }
  0x8b   : > { %v2454_v15 = vld [vmem:[%s3105_s13 + $0x40] sm:$0xe]  ;;  %v2455_v16 = vld [vmem:[%s3105_s13 + $0x44] sm:$0x1]  ;;  %v2456_v18 = vld [vmem:[%s3105_s13 + $0x48] sm:$0xe] }
  0x8c   : > { %v972_v17 = vsel %vm3125_vm4, %v2460_v12, %v971_v13  ;;  %v2457_v19 = vld [vmem:[%s3105_s13 + $0x4c] sm:$0x1]  ;;  %v2464_v20 = vrot.slane %v2454_v15, 9  ;;  %v987_v21 = vrot.slane %v2455_v16, 5  ;;  %v976_v23 = vsel %vm3125_vm4, %v2461_v0, %v975_v14  ;;  %v2930_v30 = vld [vmem:[#allocation2 + $0xf0] ss:$36 sps:$4 sm:$0xff]  }
  0x8d   : > { %1003 = vst [vmem:[#allocation2 + $0x68] sm:$0xf] %v972_v17  ;;  %v2465_v24 = vrot.slane %v2456_v18, 9  ;;  %v991_v25 = vrot.slane %v2457_v19, 5  ;;  %1004 = vst [vmem:[#allocation2 + $0x8c] sm:$0xf] %v976_v23 }
  0x8e   : > { %v988_v26 = vsel %vm3125_vm4, %v2464_v20, %v987_v21  ;;  %v2933_v51 = vld [vmem:[#allocation2 + $0x20] ss:$36 sps:$4 sm:$0xff]   ;;  %s2579_s13 = sshll.u32 %s3075_s19, 6 }
  0x8f   : > { %v992_v27 = vsel %vm3125_vm4, %v2465_v24, %v991_v25  ;;  %1007 = vst [vmem:[#allocation2 + $0xf8] sm:$0xf] %v988_v26  ;;  %v2928_v28 = vld [vmem:[#allocation2 + $0xf4] ss:$36 sps:$4 sm:$0xff]   ;;  %2769 = vmatprep.mubr.bf16.mxu0 %v2933_v51  ;;  %s3538_s19 = scalar_lea.vmem %s3585_s2, %s2579_s13 }
  0x90   : > { %1008 = vst [vmem:[#allocation2 + $0x11c] sm:$0xf] %v992_v27  ;;  %2060 = vmatprep.mubr.bf16.mxu1 %v2928_v28 }
  0x91   : > { %v2934_v31 = vld [vmem:[#allocation2 + $0xb0] ss:$36 sps:$4 sm:$0xff]   ;;  %2061 = vmatmul.mubr.bf16.gmra.mxu1 %v2930_v30 }
  0x92   : > { %2773 = vmatprep.mubr.bf16.mxu1 %v2934_v31 }
  0x94   : > { %v2935_v32 = vld [vmem:[#allocation2 + $0x68] ss:$36 sps:$4 sm:$0xff]  }
  0x95   : > { %2770 = vmatmul.mubr.bf16.vlgmr.msra.gmra.mxu0 %v2935_v32 }
  0x97   : > { %v2936_v33 = vld [vmem:[#allocation2 + $0xf8] ss:$36 sps:$4 sm:$0xff]  }
  0x99   : > { %2774 = vmatmul.mubr.bf16.vlgmr.msra.gmra.mxu1 %v2936_v33 }
  0xee   : > { %v2597_v34 = vpop.f32.mrf.mxu0 }
  0xef   : > { %v2637_v54 = vpop.f32.mrf.mxu1 }
  0xf0   : > { %v2598_v35 = vpop.f32.mrf.mxu0 }
  0xf1   : > { %v2638_v37 = vpop.f32.mrf.mxu1  ;;  %v2599_v28 = vadd.f32 %v2598_v35, %v2597_v34 }
  0xf2   : > { %v2600_v36 = vpop.f32.mrf.mxu0  ;;  %v2639_v30 = vadd.f32 %v2638_v37, %v2637_v54 }
  0xf3   : > { %v2640_v39 = vpop.f32.mrf.mxu1 }
  0xf4   : > { %v2601_v38 = vpop.f32.mrf.mxu0 }
  0xf5   : > { %v2641_v41 = vpop.f32.mrf.mxu1 }
  0xf6   : > { %v2642_v33 = vadd.f32 %v2641_v41, %v2640_v39 }
  0xf7   : > { %v2643_v43 = vpop.f32.mrf.mxu1 }
  0xf9   : > { %v2644_v45 = vpop.f32.mrf.mxu1 }
  0xfa   : > { %v2645_v27 = vadd.f32 %v2644_v45, %v2643_v43 }
  0xfb   : > { %v2646_v47 = vpop.f32.mrf.mxu1 }
  0xfd   : > { %v2647_v29 = vpop.f32.mrf.mxu1 }
  0xff   : > { %v2603_v40 = vpop.f32.mrf.mxu0 }
 0x101   : > { %v2604_v42 = vpop.f32.mrf.mxu0 }
 0x102   : > { %v2605_v26 = vadd.f32 %v2604_v42, %v2603_v40  ;;  %v1909_v40 = vadd.f32 %v2639_v30, %v2599_v28 }
 0x103   : > { %v2606_v44 = vpop.f32.mrf.mxu0  ;;  %v2649_v50 = vpop.f32.mrf.mxu1 }
 0x105   : > { %v2607_v46 = vpop.f32.mrf.mxu0  ;;  %v2650_v53 = vpop.f32.mrf.mxu1 }
 0x106   : > { %v2651_v43 = vadd.f32 %v2650_v53, %v2649_v50 }
 0x107   : > { %v2609_v48 = vpop.f32.mrf.mxu0  ;;  %v3514_v58 = vpop.f32.mrf.mxu1 }
 0x108   : > { %3594 = vst [vmem:[#allocation5_spill] sm:$0xff] %v3514_v58  ;;  %v2648_v58 = vadd.f32 %v2647_v29, %v2646_v47 }
 0x109   : > { %v2610_v22 = vpop.f32.mrf.mxu0  ;;  %v3516_v59 = vpop.f32.mrf.mxu1 }
 0x10a   : > { %3595 = vst [vmem:[#allocation6_spill] sm:$0xff] %v3516_v59  ;;  %v2608_v59 = vadd.f32 %v2607_v46, %v2606_v44  ;;  %v2611_v42 = vadd.f32 %v2610_v22, %v2609_v48 }
 0x10b   : > { %v3510_v52 = vpop.f32.mrf.mxu0 }
 0x10c   : > { %3592 = vst [vmem:[#allocation3_spill] sm:$0xff] %v3510_v52  ;;  %v1917_v52 = vadd.f32 %v2645_v27, %v2605_v26 }
 0x10d   : > { %v3512_v56 = vpop.f32.mrf.mxu0 }
 0x10e   : > { %3593 = vst [vmem:[#allocation4_spill] sm:$0xff] %v3512_v56  ;;  %v2655_v61 = vpop.f32.mrf.mxu1 }
 0x10f   : > { %v3603_v53 = vld [vmem:[#allocation5_spill] sm:$0xff] }
 0x110   : > { %v2656_v63 = vpop.f32.mrf.mxu1 }
 0x111   : > { %v2657_v31 = vadd.f32 %v2656_v63, %v2655_v61  ;;  %v1925_v61 = vadd.f32 %v2651_v43, %v2611_v42  ;;  %v3604_v63 = vld [vmem:[#allocation6_spill] sm:$0xff] }
 0x112   : > { %v2615_v57 = vpop.f32.mrf.mxu0  ;;  %v2658_v2 = vpop.f32.mrf.mxu1 }
 0x113   : > { %v3601_v48 = vld [vmem:[#allocation3_spill] sm:$0xff] }
 0x114   : > { %v2616_v60 = vpop.f32.mrf.mxu0  ;;  %v2659_v4 = vpop.f32.mrf.mxu1 }
 0x115   : > { %v2617_v51 = vadd.f32 %v2616_v60, %v2615_v57  ;;  %v2660_v37 = vadd.f32 %v2659_v4, %v2658_v2  ;;  %v3602_v22 = vld [vmem:[#allocation4_spill] sm:$0xff] }
 0x116   : > { %v2618_v62 = vpop.f32.mrf.mxu0  ;;  %v2614_v50 = vadd.f32 %v3602_v22, %v3601_v48 }
 0x117   : > { %v1933_v34 = vadd.f32 %v2657_v31, %v2617_v51 }
 0x118   : > { %v2619_v1 = vpop.f32.mrf.mxu0 }
 0x119   : > { %v2620_v54 = vadd.f32 %v2619_v1, %v2618_v62  ;;  %v2654_v62 = vadd.f32 %v3604_v63, %v3603_v53 }
 0x11b   : > { %v1936_v2 = vadd.f32 %v2660_v37, %v2620_v54 }
 0x11c   : > { %v2677_v49 = vpop.f32.mrf.mxu0 }
 0x11e   : > { %v2678_v3 = vpop.f32.mrf.mxu0 }
 0x11f   : > { %v2679_v56 = vadd.f32 %v2678_v3, %v2677_v49 }
 0x120   : > { %v2680_v5 = vpop.f32.mrf.mxu0 }
 0x122   : > { %v2681_v7 = vpop.f32.mrf.mxu0 }
 0x123   : > { %v2682_v44 = vadd.f32 %v2681_v7, %v2680_v5 }
 0x125   : > { %v2717_v6 = vpop.f32.mrf.mxu1 }
 0x127   : > { %v2718_v8 = vpop.f32.mrf.mxu1 }
 0x128   : > { %v2719_v1 = vadd.f32 %v2718_v8, %v2717_v6 }
 0x129   : > { %v3518_v9 = vpop.f32.mrf.mxu1 }
 0x12a   : > { %3596 = vst [vmem:[#allocation7_spill] sm:$0xff] %v3518_v9  ;;  %v2602_v9 = vadd.f32 %v2601_v38, %v2600_v36  ;;  %v1920_v36 = vadd.f32 %v2648_v58, %v2608_v59  ;;  %v1974_v38 = vadd.f32 %v2679_v56, %v1909_v40 }
 0x12b   : > { %v2683_v55 = vpop.f32.mrf.mxu0  ;;  %v3520_v11 = vpop.f32.mrf.mxu1 }
 0x12c   : > { %3597 = vst [vmem:[#allocation8_spill] sm:$0xff] %v3520_v11  ;;  %v1912_v41 = vadd.f32 %v2642_v33, %v2602_v9 }
 0x12d   : > { %v2684_v10 = vpop.f32.mrf.mxu0 }
 0x12e   : > { %v2685_v11 = vadd.f32 %v2684_v10, %v2683_v55  ;;  %v1977_v59 = vadd.f32 %v2682_v44, %v1912_v41  ;;  %v2039_v55 = vadd.f32 %v2719_v1, %v1974_v38  ;;  %v2961_v41 = vmov (%p2142_p5), 0.0  }
 0x12f   : > { %v2686_v12 = vpop.f32.mrf.mxu0  ;;  %2148 = vst [vmem:[%s3586_s3] sm:$0x1] (%p2142_p5), %v2961_v41  ;;  %2149 = vst [vmem:[%s3587_s4] sm:$0x1] (%p2142_p5), %v2961_v41 }
 0x130   : > { %v1982_v45 = vadd.f32 %v2685_v11, %v1917_v52  ;;  %v1928_v11 = vadd.f32 %v2654_v62, %v2614_v50 }
 0x131   : > { %v2687_v0 = vpop.f32.mrf.mxu0 }
 0x132   : > { %v2688_v39 = vadd.f32 %v2687_v0, %v2686_v12  ;;  %v3605_v12 = vld [vmem:[#allocation7_spill] sm:$0xff] }
 0x134   : > { %v2723_v13 = vpop.f32.mrf.mxu1  ;;  %v1985_v49 = vadd.f32 %v2688_v39, %v1920_v36 }
 0x136   : > { %v2724_v14 = vpop.f32.mrf.mxu1 }
 0x137   : > { %v2725_v47 = vadd.f32 %v2724_v14, %v2723_v13  ;;  %v3606_v13 = vld [vmem:[#allocation8_spill] sm:$0xff] }
 0x138   : > { %v2726_v15 = vpop.f32.mrf.mxu1  ;;  %v2722_v0 = vadd.f32 %v3606_v13, %v3605_v12 }
 0x139   : > { %v2047_v56 = vadd.f32 %v2725_v47, %v1982_v45 }
 0x13a   : > { %v2689_v16 = vpop.f32.mrf.mxu0  ;;  %v2727_v18 = vpop.f32.mrf.mxu1  ;;  %v2042_v27 = vadd.f32 %v2722_v0, %v1977_v59 }
 0x13b   : > { %v2728_v3 = vadd.f32 %v2727_v18, %v2726_v15 }
 0x13c   : > { %v2690_v17 = vpop.f32.mrf.mxu0 }
 0x13d   : > { %v2691_v29 = vadd.f32 %v2690_v17, %v2689_v16 }
 0x13e   : > { %v2692_v19 = vpop.f32.mrf.mxu0 }
 0x13f   : > { %v1990_v9 = vadd.f32 %v2691_v29, %v1925_v61 }
 0x140   : > { %v2693_v23 = vpop.f32.mrf.mxu0 }
 0x141   : > { %v2694_v4 = vadd.f32 %v2693_v23, %v2692_v19  ;;  %v2050_v23 = vadd.f32 %v2728_v3, %v1985_v49 }
 0x142   : > { %v3522_v20 = vpop.f32.mrf.mxu1 }
 0x143   : > { %3598 = vst [vmem:[#allocation9_spill] sm:$0xff] %v3522_v20 }
 0x144   : > { %v3524_v21 = vpop.f32.mrf.mxu1 }
 0x145   : > { %3599 = vst [vmem:[#allocation10_spill] sm:$0xff] %v3524_v21 }
 0x146   : > { %v3526_v24 = vpop.f32.mrf.mxu1 }
 0x147   : > { %3600 = vst [vmem:[#allocation11_spill] sm:$0xff] %v3526_v24 }
 0x148   : > { %v3528_v20 = vpop.f32.mrf.mxu1 }
 0x149   : > { %v2695_v25 = vpop.f32.mrf.mxu0 }
 0x14a   : > { %v3607_v16 = vld [vmem:[#allocation9_spill] sm:$0xff] }
 0x14b   : > { %v2696_v32 = vpop.f32.mrf.mxu0 }
 0x14c   : > { %v2697_v24 = vadd.f32 %v2696_v32, %v2695_v25  ;;  %v3608_v17 = vld [vmem:[#allocation10_spill] sm:$0xff] }
 0x14d   : > { %v2698_v21 = vpop.f32.mrf.mxu0  ;;  %v2731_v18 = vadd.f32 %v3608_v17, %v3607_v16 }
 0x14e   : > { %v1998_v57 = vadd.f32 %v2697_v24, %v1933_v34  ;;  %v1993_v24 = vadd.f32 %v2694_v4, %v1928_v11  ;;  %v3609_v40 = vld [vmem:[#allocation11_spill] sm:$0xff] }
 0x14f   : > { %v2699_v35 = vpop.f32.mrf.mxu0  ;;  %v2055_v30 = vadd.f32 %v2731_v18, %v1990_v9  ;;  %v2734_v42 = vadd.f32 %v3528_v20, %v3609_v40 }
 0x150   : > { %v2700_v60 = vadd.f32 %v2699_v35, %v2698_v21 }
 0x151   : > { %v2735_v46 = vpop.f32.mrf.mxu1  ;;  %v2058_v37 = vadd.f32 %v2734_v42, %v1993_v24 }
 0x152   : > { %v2001_v10 = vadd.f32 %v2700_v60, %v1936_v2 }
 0x153   : > { %v2736_v52 = vpop.f32.mrf.mxu1 }
 0x154   : > { %v2737_v58 = vadd.f32 %v2736_v52, %v2735_v46 }
 0x155   : > { %v2738_v5 = vpop.f32.mrf.mxu1  ;;  %v2771_v7 = vpop.f32.mrf.mxu0 }
 0x156   : > { %v2112_v6 = vadd.f32 %v2771_v7, %v2047_v56  ;;  %v2063_v8 = vadd.f32 %v2737_v58, %v1998_v57 }
 0x157   : > { %v2739_v14 = vpop.f32.mrf.mxu1  ;;  %v2103_v15 = vpop.f32.mrf.mxu0 }
 0x158   : > { %v2740_v19 = vadd.f32 %v2739_v14, %v2738_v5  ;;  %2136 = vst [vmem:[%s3538_s19 + $0x10] sm:$0xff] %v2112_v6  ;;  %v2104_v21 = vadd.f32 %v2103_v15, %v2039_v55 }
 0x159   : > { %v2775_v25 = vpop.f32.mrf.mxu1  ;;  %v2772_v26 = vpop.f32.mrf.mxu0 }
 0x15a   : > { %v2128_v28 = vadd.f32 %v2775_v25, %v2063_v8  ;;  %2134 = vst [vmem:[%s3538_s19] sm:$0xff] %v2104_v21  ;;  %v2115_v51 = vadd.f32 %v2772_v26, %v2050_v23  ;;  %v2066_v31 = vadd.f32 %v2740_v19, %v2001_v10 }
 0x15b   : > { %v2119_v32 = vpop.f32.mrf.mxu1  ;;  %v2106_v33 = vpop.f32.mrf.mxu0 }
 0x15c   : > { %2140 = vst [vmem:[%s3538_s19 + $0x30] sm:$0xff] %v2128_v28  ;;  %v2120_v43 = vadd.f32 %v2119_v32, %v2055_v30  ;;  %2137 = vst [vmem:[%s3538_s19 + $0x18] sm:$0xff] %v2115_v51  ;;  %v2107_v34 = vadd.f32 %v2106_v33, %v2042_v27 }
 0x15d   : > { %v2776_v35 = vpop.f32.mrf.mxu1 }
 0x15e   : > { %2138 = vst [vmem:[%s3538_s19 + $0x20] sm:$0xff] %v2120_v43  ;;  %v2131_v54 = vadd.f32 %v2776_v35, %v2066_v31  ;;  %2135 = vst [vmem:[%s3538_s19 + $0x8] sm:$0xff] %v2107_v34  ;;  %2147 = sbr.rel (!%p2142_p5) target bundleno = 355 (0x163), region = 32 }
 0x15f   : > { %v2122_v45 = vpop.f32.mrf.mxu1 }
 0x160   : > { %2141 = vst [vmem:[%s3538_s19 + $0x38] sm:$0xff] %v2131_v54  ;;  %v2123_v39 = vadd.f32 %v2122_v45, %v2058_v37 }
 0x162   : > { %2139 = vst [vmem:[%s3538_s19 + $0x28] sm:$0xff] %v2123_v39 }
 0x163 PF: > { %v2151_v20 = vadd.f32 %v2107_v34, %v2104_v21  ;;  %v2167_v36 = vmul.f32 %v2104_v21, %v2104_v21  ;;  %v2168_v38 = vmul.f32 %v2107_v34, %v2107_v34  ;;  %v2169_v44 = vmul.f32 %v2112_v6, %v2112_v6  ;;  %v2150_v8 = vld [vmem:[%s3586_s3] sm:$0x1] }
 0x164   : > { %v2170_v47 = vmul.f32 %v2115_v51, %v2115_v51  ;;  %v2171_v60 = vmul.f32 %v2120_v43, %v2120_v43  ;;  %v2172_v22 = vmul.f32 %v2123_v39, %v2123_v39  ;;  %v2173_v63 = vmul.f32 %v2128_v28, %v2128_v28  ;;  %v2166_v13 = vld [vmem:[%s3587_s4] sm:$0x1] }
 0x165   : > { %v2152_v46 = vadd.f32 %v2151_v20, %v2112_v6  ;;  %v2175_v29 = vadd.f32 %v2168_v38, %v2167_v36  ;;  %v2174_v52 = vmul.f32 %v2131_v54, %v2131_v54 }
 0x167   : > { %v2153_v57 = vadd.f32 %v2152_v46, %v2115_v51  ;;  %v2176_v61 = vadd.f32 %v2175_v29, %v2169_v44 }
 0x169   : > { %v2154_v48 = vadd.f32 %v2153_v57, %v2120_v43  ;;  %v2177_v50 = vadd.f32 %v2176_v61, %v2170_v47 }
 0x16b   : > { %v2155_v53 = vadd.f32 %v2154_v48, %v2123_v39  ;;  %v2178_v62 = vadd.f32 %v2177_v50, %v2171_v60 }
 0x16d   : > { %v2156_v1 = vadd.f32 %v2155_v53, %v2128_v28  ;;  %v2179_v2 = vadd.f32 %v2178_v62, %v2172_v22 }
 0x16f   : > { %v2157_v49 = vadd.f32 %v2156_v1, %v2131_v54  ;;  %v2180_v58 = vadd.f32 %v2179_v2, %v2173_v63 }
 0x171   : > { %v2158_v56 = vrot.slane %v2157_v49, 4  ;;  %v2181_v59 = vadd.f32 %v2180_v58, %v2174_v52 }
 0x173   : > { %v2159_v3 = vadd.f32 %v2158_v56, %v2157_v49  ;;  %v2182_v4 = vrot.slane %v2181_v59, 4 }
 0x175   : > { %v2160_v5 = vrot.slane %v2159_v3, 2  ;;  %v2183_v7 = vadd.f32 %v2182_v4, %v2181_v59 }
 0x177   : > { %v2161_v55 = vadd.f32 %v2160_v5, %v2159_v3  ;;  %v2184_v9 = vrot.slane %v2183_v7, 2 }
 0x179   : > { %v2162_v10 = vrot.slane %v2161_v55, 1  ;;  %v2185_v6 = vadd.f32 %v2184_v9, %v2183_v7 }
 0x17b   : > { %v2163_v11 = vadd.f32 %v2162_v10, %v2161_v55  ;;  %v2186_v12 = vrot.slane %v2185_v6, 1 }
 0x17d   : > { %v2164_v0 = vadd.f32 %v2163_v11, %v2150_v8  ;;  %v2187_v14 = vadd.f32 %v2186_v12, %v2185_v6 }
 0x17f   : > { %2165 = vst [vmem:[%s3586_s3] sm:$0x1] %v2164_v0  ;;  %v2188_v15 = vadd.f32 %v2187_v14, %v2166_v13 }
 0x181   : > { %2189 = vst [vmem:[%s3587_s4] sm:$0x1] %v2188_v15 }
 0x182 PF: > { %s15_s17 = sadd.s32 1, %s2959_s17   ;;  %s3610_s15 = smov %s2955_s16 }
 0x183   : > { %p12_p6 = scmp.ge.s32.totalorder %s15_s17, 4   ;;  %s3611_s16 = smov %s3613_s18 }
 0x185   :  { %14 = sbr.rel (!%p12_p6) target bundleno = 2 (0x2), region = 92 }

</bundles_post_ra>
